<compile_context>
chip_gen: v6e
topology: v6e:2x2x1
jax: 0.10.0
libtpu: 0.0.40
codegen_flags: <defaults>
</compile_context>

<pallas_src>
import functools

import jax
import jax.numpy as jnp
from jax.experimental import pallas as pl
from jax.experimental.pallas import tpu as pltpu

KH = KW = 3          # kernel_size = 3
PAD = 1              # padding = 1 (stride = 1)
LANE = 128           # TPU lane width


def _conv3x3_im2col(xpad, w_ref, b_ref, H, W, CP):
    """3x3 conv via one im2col matmul.

    xpad : (H+2, W+2, CP) f32 value (zero halo already applied)
    w_ref: (9*CP, CP) Ref, dtype = matmul operand dtype (f32 or bf16)
    b_ref: (1, CP) f32 Ref
    returns (H*W, CP) f32 = conv(xpad) + bias
    """
    pieces = []
    for ky in range(KH):
        for kx in range(KW):
            # Static slices; taps are folded into the contraction dimension.
            pieces.append(xpad[ky:ky + H, kx:kx + W, :].reshape(H * W, CP))
    patches = jnp.concatenate(pieces, axis=-1)              # (H*W, 9*CP)
    acc = jnp.dot(patches.astype(w_ref.dtype), w_ref[...],
                  preferred_element_type=jnp.float32)        # single MXU matmul
    return acc + b_ref[...].astype(jnp.float32)              # f32 bias add


def fused_res_block_kernel(x_ref, w1_ref, b1_ref, w2_ref, b2_ref, o_ref,
                           xpad_ref, hpad_ref):
    # x_ref : (1, H, W, CP)      lane-dense NHWC input (channels padded to CP)
    # w*_ref: (9*CP, CP)         im2col-reshaped weights
    # b*_ref: (1, CP)            f32 bias
    # o_ref : (1, H, W, CP)      lane-dense output
    # xpad_ref / hpad_ref: (H+2, W+2, CP) f32 VMEM scratch (halo buffers)
    _, H, W, CP = x_ref.shape

    # ---- in-kernel zero padding of x (1-pixel halo) ----
    xpad_ref[...] = jnp.zeros_like(xpad_ref)
    xpad_ref[pl.ds(1, H), pl.ds(1, W), :] = x_ref[0].astype(jnp.float32)
    xpad = xpad_ref[...]                                     # (H+2, W+2, CP)

    # ---- conv1 + bias + ReLU (intermediate stays in VMEM) ----
    h = jnp.maximum(_conv3x3_im2col(xpad, w1_ref, b1_ref, H, W, CP), 0.0)

    hpad_ref[...] = jnp.zeros_like(hpad_ref)
    hpad_ref[pl.ds(1, H), pl.ds(1, W), :] = h.reshape(H, W, CP)

    # ---- conv2 + bias + residual add + ReLU ----
    y = _conv3x3_im2col(hpad_ref[...], w2_ref, b2_ref, H, W, CP)
    residual = x_ref[0].astype(jnp.float32).reshape(H * W, CP)
    y = jnp.maximum(y + residual, 0.0)

    o_ref[0] = y.reshape(H, W, CP).astype(o_ref.dtype)


def basic_res_block(x_nchw, w1, b1, w2, b2, *, matmul_dtype=jnp.float32):
    """Forward of BasicResBlock.

    x_nchw: (N, C, H, W) f32
    w1, w2: (3, 3, C, O) f32 (HWIO)     b1, b2: (O,) f32
    matmul_dtype: operand dtype for the MXU matmuls (f32 or bf16); accumulation,
                  bias, residual add and ReLU are always f32.
    returns (N, O, H, W) f32
    """
    N, C, H, W = x_nchw.shape
    kh, kw, c_in, O = w1.shape
    assert (kh, kw) == (KH, KW) and c_in == C and O == C, \
        "BasicResBlock requires in_channels == out_channels"

    # Pad channels up to a full lane group so the kernel is lane-dense
    # throughout (no-op when C is already a multiple of 128).
    CP = max(LANE, ((max(C, O) + LANE - 1) // LANE) * LANE)

    # NCHW -> NHWC (a real NHWC model would skip this entirely).
    x = jnp.transpose(x_nchw, (0, 2, 3, 1))
    if CP != C:
        x = jnp.pad(x, ((0, 0), (0, 0), (0, 0), (0, CP - C)))

    def prep_w(w):
        wp = jnp.zeros((KH, KW, CP, CP), jnp.float32).at[:, :, :C, :O].set(w)
        return wp.reshape(KH * KW * CP, CP).astype(matmul_dtype)

    def prep_b(b):
        return jnp.zeros((1, CP), jnp.float32).at[0, :O].set(b)

    w1p, w2p = prep_w(w1), prep_w(w2)
    b1p, b2p = prep_b(b1), prep_b(b2)

    out = pl.pallas_call(
        fused_res_block_kernel,
        out_shape=jax.ShapeDtypeStruct((N, H, W, CP), jnp.float32),
        grid_spec=pltpu.PrefetchScalarGridSpec(
            num_scalar_prefetch=0,
            grid=(N,),
            in_specs=[
                pl.BlockSpec((1, H, W, CP), lambda n: (n, 0, 0, 0)),
                pl.BlockSpec((KH * KW * CP, CP), lambda n: (0, 0)),
                pl.BlockSpec((1, CP), lambda n: (0, 0)),
                pl.BlockSpec((KH * KW * CP, CP), lambda n: (0, 0)),
                pl.BlockSpec((1, CP), lambda n: (0, 0)),
            ],
            out_specs=pl.BlockSpec((1, H, W, CP), lambda n: (n, 0, 0, 0)),
            scratch_shapes=[
                pltpu.VMEM((H + 2 * PAD, W + 2 * PAD, CP), jnp.float32),
                pltpu.VMEM((H + 2 * PAD, W + 2 * PAD, CP), jnp.float32),
            ]),
        compiler_params=pltpu.CompilerParams(
            dimension_semantics=("parallel",)),
    )(x, w1p, b1p, w2p, b2p)

    out = out[..., :O]                           # drop channel padding
    return jnp.transpose(out, (0, 3, 1, 2))      # NHWC -> NCHW (PyTorch iface)


def _reference(x_nchw, w1, b1, w2, b2, matmul_dtype=jnp.float32):
    """Pure-JAX reference (lax conv, NCHW/OIHW), mirroring the operand dtype."""
    def conv(x, w_hwio, b):
        w_oihw = jnp.transpose(w_hwio, (3, 2, 0, 1)).astype(matmul_dtype)
        y = jax.lax.conv_general_dilated(
            x.astype(matmul_dtype), w_oihw, window_strides=(1, 1),
            padding=((PAD, PAD), (PAD, PAD)),
            dimension_numbers=("NCHW", "OIHW", "NCHW"),
            preferred_element_type=jnp.float32)
        return y + b[None, :, None, None]

    h = jax.nn.relu(conv(x_nchw, w1, b1))
    out = conv(h, w2, b2) + x_nchw
    return jax.nn.relu(out)


if __name__ == "__main__":
    key = jax.random.PRNGKey(0)
    N, C, H, W = 2, 4, 16, 16
    O = C  # residual add requires out_channels == in_channels

    kx, k1, kb1, k2, kb2 = jax.random.split(key, 5)
    x = jax.random.normal(kx, (N, C, H, W), dtype=jnp.float32)
    fan_in = C * KH * KW
    w1 = jax.random.normal(k1, (KH, KW, C, O), dtype=jnp.float32) / jnp.sqrt(fan_in)
    b1 = jax.random.normal(kb1, (O,), dtype=jnp.float32) * 0.01
    w2 = jax.random.normal(k2, (KH, KW, C, O), dtype=jnp.float32) / jnp.sqrt(fan_in)
    b2 = jax.random.normal(kb2, (O,), dtype=jnp.float32) * 0.01

    # f32 matmul operands (exact path).
    fwd_f32 = jax.jit(basic_res_block)
    out_f32 = jax.block_until_ready(fwd_f32(x, w1, b1, w2, b2))
    ref_f32 = _reference(x, w1, b1, w2, b2, jnp.float32)
    assert out_f32.shape == (N, O, H, W)
    assert jnp.allclose(out_f32, ref_f32, atol=1e-4, rtol=1e-4), (
        float(jnp.max(jnp.abs(out_f32 - ref_f32))))

    # bf16 matmul operands (v6e / v7x MXU path), f32 accumulation everywhere.
    fwd_bf16 = jax.jit(functools.partial(basic_res_block,
                                         matmul_dtype=jnp.bfloat16))
    out_bf16 = jax.block_until_ready(fwd_bf16(x, w1, b1, w2, b2))
    ref_bf16 = _reference(x, w1, b1, w2, b2, jnp.bfloat16)
    assert jnp.allclose(out_bf16, ref_bf16, atol=2e-2, rtol=2e-2), (
        float(jnp.max(jnp.abs(out_bf16 - ref_bf16))))

    print("KERNEL_OK")
</pallas_src>

<mosaic_0001>
module attributes {stable_mosaic.version = 11 : i64} {
  func.func @fused_res_block_kernel(%arg0: i32, %arg1: memref<1x16x16x128xf32, #tpu.memory_space<vmem>>, %arg2: memref<1152x128xf32, #tpu.memory_space<vmem>>, %arg3: memref<1x128xf32, #tpu.memory_space<vmem>>, %arg4: memref<1152x128xf32, #tpu.memory_space<vmem>>, %arg5: memref<1x128xf32, #tpu.memory_space<vmem>>, %arg6: memref<1x16x16x128xf32, #tpu.memory_space<vmem>>, %arg7: memref<18x18x128xf32, #tpu.memory_space<vmem>>, %arg8: memref<18x18x128xf32, #tpu.memory_space<vmem>>) attributes {dimension_semantics = [#tpu.dimension_semantics<parallel>], iteration_bounds = array<i64: 2>, scalar_prefetch = 0 : i64, scratch_operands = 2 : i64, tpu.core_type = #tpu.core_type<tc>, window_params = [{transform_indices = @transform_0, window_bounds = array<i64: 1, 16, 16, 128>}, {pipeline_mode = #tpu.pipeline_mode<synchronous>, transform_indices = @transform_1, window_bounds = array<i64: 1152, 128>}, {pipeline_mode = #tpu.pipeline_mode<synchronous>, transform_indices = @transform_2, window_bounds = array<i64: 1, 128>}, {pipeline_mode = #tpu.pipeline_mode<synchronous>, transform_indices = @transform_3, window_bounds = array<i64: 1152, 128>}, {pipeline_mode = #tpu.pipeline_mode<synchronous>, transform_indices = @transform_4, window_bounds = array<i64: 1, 128>}, {transform_indices = @transform_5, window_bounds = array<i64: 1, 16, 16, 128>}]} {
    %cst = arith.constant 0.000000e+00 : f32
    %0 = vector.broadcast %cst : f32 to vector<18x18x128xf32>
    %c0 = arith.constant 0 : index
    %c0_0 = arith.constant 0 : index
    %c0_1 = arith.constant 0 : index
    %1 = vector.load %arg7[%c0, %c0_0, %c0_1] : memref<18x18x128xf32, #tpu.memory_space<vmem>>, vector<18x18x128xf32>
    tpu.vector_store %arg7[%c0, %c0_0, %c0_1], %0 {strides = array<i32>} : memref<18x18x128xf32, #tpu.memory_space<vmem>>, vector<18x18x128xf32>,
    %c0_2 = arith.constant 0 : index
    %c0_3 = arith.constant 0 : index
    %c0_4 = arith.constant 0 : index
    %c0_5 = arith.constant 0 : index
    %2 = vector.load %arg1[%c0_2, %c0_3, %c0_4, %c0_5] : memref<1x16x16x128xf32, #tpu.memory_space<vmem>>, vector<1x16x16x128xf32>
    %3 = vector.shape_cast %2 : vector<1x16x16x128xf32> to vector<16x16x128xf32>
    %c1 = arith.constant 1 : index
    %c1_6 = arith.constant 1 : index
    %c0_7 = arith.constant 0 : index
    %4 = vector.load %arg7[%c1, %c1_6, %c0_7] : memref<18x18x128xf32, #tpu.memory_space<vmem>>, vector<16x16x128xf32>
    tpu.vector_store %arg7[%c1, %c1_6, %c0_7], %3 {strides = array<i32>} : memref<18x18x128xf32, #tpu.memory_space<vmem>>, vector<16x16x128xf32>,
    %c0_8 = arith.constant 0 : index
    %c0_9 = arith.constant 0 : index
    %c0_10 = arith.constant 0 : index
    %5 = vector.load %arg7[%c0_8, %c0_9, %c0_10] : memref<18x18x128xf32, #tpu.memory_space<vmem>>, vector<18x18x128xf32>
    %6 = vector.extract_strided_slice %5 {offsets = [0, 0, 0], sizes = [16, 16, 128], strides = [1, 1, 1]} : vector<18x18x128xf32> to vector<16x16x128xf32>
    %7 = vector.shape_cast %6 : vector<16x16x128xf32> to vector<256x128xf32>
    %8 = vector.extract_strided_slice %5 {offsets = [0, 1, 0], sizes = [16, 16, 128], strides = [1, 1, 1]} : vector<18x18x128xf32> to vector<16x16x128xf32>
    %9 = vector.shape_cast %8 : vector<16x16x128xf32> to vector<256x128xf32>
    %10 = vector.extract_strided_slice %5 {offsets = [0, 2, 0], sizes = [16, 16, 128], strides = [1, 1, 1]} : vector<18x18x128xf32> to vector<16x16x128xf32>
    %11 = vector.shape_cast %10 : vector<16x16x128xf32> to vector<256x128xf32>
    %12 = vector.extract_strided_slice %5 {offsets = [1, 0, 0], sizes = [16, 16, 128], strides = [1, 1, 1]} : vector<18x18x128xf32> to vector<16x16x128xf32>
    %13 = vector.shape_cast %12 : vector<16x16x128xf32> to vector<256x128xf32>
    %14 = vector.extract_strided_slice %5 {offsets = [1, 1, 0], sizes = [16, 16, 128], strides = [1, 1, 1]} : vector<18x18x128xf32> to vector<16x16x128xf32>
    %15 = vector.shape_cast %14 : vector<16x16x128xf32> to vector<256x128xf32>
    %16 = vector.extract_strided_slice %5 {offsets = [1, 2, 0], sizes = [16, 16, 128], strides = [1, 1, 1]} : vector<18x18x128xf32> to vector<16x16x128xf32>
    %17 = vector.shape_cast %16 : vector<16x16x128xf32> to vector<256x128xf32>
    %18 = vector.extract_strided_slice %5 {offsets = [2, 0, 0], sizes = [16, 16, 128], strides = [1, 1, 1]} : vector<18x18x128xf32> to vector<16x16x128xf32>
    %19 = vector.shape_cast %18 : vector<16x16x128xf32> to vector<256x128xf32>
    %20 = vector.extract_strided_slice %5 {offsets = [2, 1, 0], sizes = [16, 16, 128], strides = [1, 1, 1]} : vector<18x18x128xf32> to vector<16x16x128xf32>
    %21 = vector.shape_cast %20 : vector<16x16x128xf32> to vector<256x128xf32>
    %22 = vector.extract_strided_slice %5 {offsets = [2, 2, 0], sizes = [16, 16, 128], strides = [1, 1, 1]} : vector<18x18x128xf32> to vector<16x16x128xf32>
    %23 = vector.shape_cast %22 : vector<16x16x128xf32> to vector<256x128xf32>
    %24 = tpu.concatenate %7, %9, %11, %13, %15, %17, %19, %21, %23 in 1 : vector<256x128xf32>, vector<256x128xf32>, vector<256x128xf32>, vector<256x128xf32>, vector<256x128xf32>, vector<256x128xf32>, vector<256x128xf32>, vector<256x128xf32>, vector<256x128xf32> -> vector<256x1152xf32>
    %c0_11 = arith.constant 0 : index
    %c0_12 = arith.constant 0 : index
    %25 = vector.load %arg2[%c0_11, %c0_12] : memref<1152x128xf32, #tpu.memory_space<vmem>>, vector<1152x128xf32>
    %cst_13 = arith.constant dense<0.000000e+00> : vector<256x128xf32>
    %26 = tpu.matmul %24, %25, %cst_13 {dimension_numbers = #tpu.dot_dimension_numbers<[1], [0], [0], [1], [0, 0, 1, 1], [], []>} : vector<256x1152xf32>, vector<1152x128xf32>, vector<256x128xf32> -> vector<256x128xf32>
    %c0_14 = arith.constant 0 : index
    %c0_15 = arith.constant 0 : index
    %27 = vector.load %arg3[%c0_14, %c0_15] : memref<1x128xf32, #tpu.memory_space<vmem>>, vector<1x128xf32>
    %28 = vector.broadcast %27 : vector<1x128xf32> to vector<256x128xf32>
    %29 = arith.addf %26, %28 : vector<256x128xf32>
    %cst_16 = arith.constant 0.000000e+00 : f32
    %30 = vector.broadcast %cst_16 : f32 to vector<256x128xf32>
    %31 = arith.maximumf %29, %30 : vector<256x128xf32>
    %cst_17 = arith.constant 0.000000e+00 : f32
    %32 = vector.broadcast %cst_17 : f32 to vector<18x18x128xf32>
    %c0_18 = arith.constant 0 : index
    %c0_19 = arith.constant 0 : index
    %c0_20 = arith.constant 0 : index
    %33 = vector.load %arg8[%c0_18, %c0_19, %c0_20] : memref<18x18x128xf32, #tpu.memory_space<vmem>>, vector<18x18x128xf32>
    tpu.vector_store %arg8[%c0_18, %c0_19, %c0_20], %32 {strides = array<i32>} : memref<18x18x128xf32, #tpu.memory_space<vmem>>, vector<18x18x128xf32>,
    %34 = vector.shape_cast %31 : vector<256x128xf32> to vector<16x16x128xf32>
    %c1_21 = arith.constant 1 : index
    %c1_22 = arith.constant 1 : index
    %c0_23 = arith.constant 0 : index
    %35 = vector.load %arg8[%c1_21, %c1_22, %c0_23] : memref<18x18x128xf32, #tpu.memory_space<vmem>>, vector<16x16x128xf32>
    tpu.vector_store %arg8[%c1_21, %c1_22, %c0_23], %34 {strides = array<i32>} : memref<18x18x128xf32, #tpu.memory_space<vmem>>, vector<16x16x128xf32>,
    %c0_24 = arith.constant 0 : index
    %c0_25 = arith.constant 0 : index
    %c0_26 = arith.constant 0 : index
    %36 = vector.load %arg8[%c0_24, %c0_25, %c0_26] : memref<18x18x128xf32, #tpu.memory_space<vmem>>, vector<18x18x128xf32>
    %37 = vector.extract_strided_slice %36 {offsets = [0, 0, 0], sizes = [16, 16, 128], strides = [1, 1, 1]} : vector<18x18x128xf32> to vector<16x16x128xf32>
    %38 = vector.shape_cast %37 : vector<16x16x128xf32> to vector<256x128xf32>
    %39 = vector.extract_strided_slice %36 {offsets = [0, 1, 0], sizes = [16, 16, 128], strides = [1, 1, 1]} : vector<18x18x128xf32> to vector<16x16x128xf32>
    %40 = vector.shape_cast %39 : vector<16x16x128xf32> to vector<256x128xf32>
    %41 = vector.extract_strided_slice %36 {offsets = [0, 2, 0], sizes = [16, 16, 128], strides = [1, 1, 1]} : vector<18x18x128xf32> to vector<16x16x128xf32>
    %42 = vector.shape_cast %41 : vector<16x16x128xf32> to vector<256x128xf32>
    %43 = vector.extract_strided_slice %36 {offsets = [1, 0, 0], sizes = [16, 16, 128], strides = [1, 1, 1]} : vector<18x18x128xf32> to vector<16x16x128xf32>
    %44 = vector.shape_cast %43 : vector<16x16x128xf32> to vector<256x128xf32>
    %45 = vector.extract_strided_slice %36 {offsets = [1, 1, 0], sizes = [16, 16, 128], strides = [1, 1, 1]} : vector<18x18x128xf32> to vector<16x16x128xf32>
    %46 = vector.shape_cast %45 : vector<16x16x128xf32> to vector<256x128xf32>
    %47 = vector.extract_strided_slice %36 {offsets = [1, 2, 0], sizes = [16, 16, 128], strides = [1, 1, 1]} : vector<18x18x128xf32> to vector<16x16x128xf32>
    %48 = vector.shape_cast %47 : vector<16x16x128xf32> to vector<256x128xf32>
    %49 = vector.extract_strided_slice %36 {offsets = [2, 0, 0], sizes = [16, 16, 128], strides = [1, 1, 1]} : vector<18x18x128xf32> to vector<16x16x128xf32>
    %50 = vector.shape_cast %49 : vector<16x16x128xf32> to vector<256x128xf32>
    %51 = vector.extract_strided_slice %36 {offsets = [2, 1, 0], sizes = [16, 16, 128], strides = [1, 1, 1]} : vector<18x18x128xf32> to vector<16x16x128xf32>
    %52 = vector.shape_cast %51 : vector<16x16x128xf32> to vector<256x128xf32>
    %53 = vector.extract_strided_slice %36 {offsets = [2, 2, 0], sizes = [16, 16, 128], strides = [1, 1, 1]} : vector<18x18x128xf32> to vector<16x16x128xf32>
    %54 = vector.shape_cast %53 : vector<16x16x128xf32> to vector<256x128xf32>
    %55 = tpu.concatenate %38, %40, %42, %44, %46, %48, %50, %52, %54 in 1 : vector<256x128xf32>, vector<256x128xf32>, vector<256x128xf32>, vector<256x128xf32>, vector<256x128xf32>, vector<256x128xf32>, vector<256x128xf32>, vector<256x128xf32>, vector<256x128xf32> -> vector<256x1152xf32>
    %c0_27 = arith.constant 0 : index
    %c0_28 = arith.constant 0 : index
    %56 = vector.load %arg4[%c0_27, %c0_28] : memref<1152x128xf32, #tpu.memory_space<vmem>>, vector<1152x128xf32>
    %cst_29 = arith.constant dense<0.000000e+00> : vector<256x128xf32>
    %57 = tpu.matmul %55, %56, %cst_29 {dimension_numbers = #tpu.dot_dimension_numbers<[1], [0], [0], [1], [0, 0, 1, 1], [], []>} : vector<256x1152xf32>, vector<1152x128xf32>, vector<256x128xf32> -> vector<256x128xf32>
    %c0_30 = arith.constant 0 : index
    %c0_31 = arith.constant 0 : index
    %58 = vector.load %arg5[%c0_30, %c0_31] : memref<1x128xf32, #tpu.memory_space<vmem>>, vector<1x128xf32>
    %59 = vector.broadcast %58 : vector<1x128xf32> to vector<256x128xf32>
    %60 = arith.addf %57, %59 : vector<256x128xf32>
    %c0_32 = arith.constant 0 : index
    %c0_33 = arith.constant 0 : index
    %c0_34 = arith.constant 0 : index
    %c0_35 = arith.constant 0 : index
    %61 = vector.load %arg1[%c0_32, %c0_33, %c0_34, %c0_35] : memref<1x16x16x128xf32, #tpu.memory_space<vmem>>, vector<1x16x16x128xf32>
    %62 = vector.shape_cast %61 : vector<1x16x16x128xf32> to vector<16x16x128xf32>
    %63 = vector.shape_cast %62 : vector<16x16x128xf32> to vector<256x128xf32>
    %64 = arith.addf %60, %63 : vector<256x128xf32>
    %cst_36 = arith.constant 0.000000e+00 : f32
    %65 = vector.broadcast %cst_36 : f32 to vector<256x128xf32>
    %66 = arith.maximumf %64, %65 : vector<256x128xf32>
    %67 = vector.shape_cast %66 : vector<256x128xf32> to vector<16x16x128xf32>
    %c0_37 = arith.constant 0 : index
    %c0_38 = arith.constant 0 : index
    %c0_39 = arith.constant 0 : index
    %c0_40 = arith.constant 0 : index
    %68 = vector.load %arg6[%c0_37, %c0_38, %c0_39, %c0_40] : memref<1x16x16x128xf32, #tpu.memory_space<vmem>>, vector<1x16x16x128xf32>
    %69 = vector.shape_cast %68 : vector<1x16x16x128xf32> to vector<16x16x128xf32>
    %70 = vector.shape_cast %67 : vector<16x16x128xf32> to vector<1x16x16x128xf32>
    tpu.vector_store %arg6[%c0_37, %c0_38, %c0_39, %c0_40], %70 {strides = array<i32>} : memref<1x16x16x128xf32, #tpu.memory_space<vmem>>, vector<1x16x16x128xf32>,
    return
  }
  func.func @transform_0(%arg0: i32) -> (i32, i32, i32, i32) {
    %c0_i32 = arith.constant 0 : i32
    %c0_i32_0 = arith.constant 0 : i32
    %c0_i32_1 = arith.constant 0 : i32
    %c0_i32_2 = arith.constant 0 : i32
    return %arg0, %c0_i32, %c0_i32_0, %c0_i32_1 : i32, i32, i32, i32
  }
  func.func @transform_1(%arg0: i32) -> (i32, i32) {
    %c0_i32 = arith.constant 0 : i32
    %c0_i32_0 = arith.constant 0 : i32
    %c0_i32_1 = arith.constant 0 : i32
    return %c0_i32, %c0_i32_0 : i32, i32
  }
  func.func @transform_2(%arg0: i32) -> (i32, i32) {
    %c0_i32 = arith.constant 0 : i32
    %c0_i32_0 = arith.constant 0 : i32
    %c0_i32_1 = arith.constant 0 : i32
    return %c0_i32, %c0_i32_0 : i32, i32
  }
  func.func @transform_3(%arg0: i32) -> (i32, i32) {
    %c0_i32 = arith.constant 0 : i32
    %c0_i32_0 = arith.constant 0 : i32
    %c0_i32_1 = arith.constant 0 : i32
    return %c0_i32, %c0_i32_0 : i32, i32
  }
  func.func @transform_4(%arg0: i32) -> (i32, i32) {
    %c0_i32 = arith.constant 0 : i32
    %c0_i32_0 = arith.constant 0 : i32
    %c0_i32_1 = arith.constant 0 : i32
    return %c0_i32, %c0_i32_0 : i32, i32
  }
  func.func @transform_5(%arg0: i32) -> (i32, i32, i32, i32) {
    %c0_i32 = arith.constant 0 : i32
    %c0_i32_0 = arith.constant 0 : i32
    %c0_i32_1 = arith.constant 0 : i32
    %c0_i32_2 = arith.constant 0 : i32
    return %arg0, %c0_i32, %c0_i32_0, %c0_i32_1 : i32, i32, i32, i32
  }
}

</mosaic_0001>

<bundles_post_ra>
// kernel: basic_res_block.1
= control target key start
LH: loop header
LB: loop body
LE: loop exit
PB: predicated region body
PF: predicated region fallthrough
CT: control target
= control target key end

     0   :  { %s4248_s18 = smov 0   ;;  %s7304_s0 = inlined_call_operand.vmem [shape: f32[2,16,16,128], index: 0, kind: input, shape index: {}]   ;;  %s7305_s1 = inlined_call_operand.vmem [shape: f32[1152,128], index: 1, kind: input, shape index: {}]   ;;  %s7306_s2 = inlined_call_operand.vmem [shape: f32[1,128], index: 2, kind: input, shape index: {}]   ;;  %s7307_s3 = inlined_call_operand.vmem [shape: f32[1152,128], index: 3, kind: input, shape index: {}]   ;;  %s7308_s4 = inlined_call_operand.vmem [shape: f32[1,128], index: 4, kind: input, shape index: {}]   ;;  %s7309_s5 = inlined_call_operand.vmem [shape: f32[2,16,16,128], index: 5, kind: output, shape index: {}]  }
   0x1 LB: > { %s3920_s19 = sadd.s32 4294967295, %s4215_s18   ;;  %p3924_p0 = scmp.ge.s32.totalorder %s4215_s18, 1  ;;  %s4215_s18 = sphi %s4248_s18, %s15_s18  }
   0x2   : > { %p187_p1 = scmp.lt.s32.totalorder %s4215_s18, 3 }
   0x4   : > { %p188_p2 = pnand %p3924_p0, %p187_p1 }
   0x6   : > { %191 = sbr.rel (%p188_p2) target bundleno = 1054 (0x41e), region = 40 }
   0xb   : > { %v4259_v0 = vld [vmem:[%s7305_s1 + $0x78] sm:$0xff]  ;;  %v4217_v2 = vmov 0.0   ;;  %v720_v3 = vld [vmem:[%s7305_s1 + $0x70] sm:$0xff]  ;;  %v719_v5 = vld [vmem:[%s7305_s1 + $0x68] sm:$0xff]  ;;  %p215_p3 = scmp.lt.s32.totalorder %s3920_s19, 1  ;;  %vm446_vm0 = vcmask 1046528  }
   0xc   : > { %v4264_v1 = vld [vmem:[%s7305_s1 + $0x178] sm:$0xff]  ;;  %857 = vmatprep.subr.mxu0 %v4217_v2  ;;  %225 = vst [vmem:[#allocation2] sm:$0xff] %v4217_v2  ;;  %227 = vst [vmem:[#allocation2 + $0x10] sm:$0x3] %v4217_v2  ;;  %1082 = vmatprep.subr.mxu1 %v4217_v2  ;;  %v752_v4 = vld [vmem:[%s7305_s1 + $0x170] sm:$0xff]  ;;  %vm559_vm1 = vcmask 1045504  }
   0xd   : > { %228 = vst [vmem:[#allocation2 + $0x18] sm:$0xff] %v4217_v2  ;;  %229 = vst [vmem:[#allocation2 + $0x20] sm:$0xff] %v4217_v2  ;;  %858 = vmatpush1.msra.mxu0 %v4259_v0  ;;  %1083 = vmatpush1.msra.mxu1 %v4264_v1  ;;  %v751_v6 = vld [vmem:[%s7305_s1 + $0x168] sm:$0xff]  ;;  %v718_v7 = vld [vmem:[%s7305_s1 + $0x60] sm:$0xff]  ;;  %s7554_s19 = smov (!%p215_p3, %s3920_s19), 1 }
   0xe   : > { %230 = vst [vmem:[#allocation2 + $0x28] sm:$0x3] %v4217_v2  ;;  %231 = vst [vmem:[#allocation2 + $0x30] sm:$0xff] %v4217_v2  ;;  %859 = vmatprep.subr.mxu0 %v4217_v2  ;;  %1084 = vmatprep.subr.mxu1 %v4217_v2  ;;  %v750_v8 = vld [vmem:[%s7305_s1 + $0x160] sm:$0xff]  ;;  %v717_v9 = vld [vmem:[%s7305_s1 + $0x58] sm:$0xff]  ;;  %s3933_s8 = sshll.u32 %s7554_s19, 8 }
   0xf   : > { %232 = vst [vmem:[#allocation2 + $0x38] sm:$0xff] %v4217_v2  ;;  %233 = vst [vmem:[#allocation2 + $0x40] sm:$0x3] %v4217_v2  ;;  %860 = vmatpush1.msra.mxu0 %v720_v3  ;;  %1085 = vmatpush1.msra.mxu1 %v752_v4  ;;  %v749_v10 = vld [vmem:[%s7305_s1 + $0x158] sm:$0xff]  ;;  %v716_v11 = vld [vmem:[%s7305_s1 + $0x50] sm:$0xff]  ;;  %s4453_s15 = scalar_lea.vmem %s7304_s0, %s3933_s8  ;;  %s7204_s13 = scalar_lea.vmem %s7309_s5, %s3933_s8 }
  0x10   : > { %234 = vst [vmem:[#allocation2 + $0x48] sm:$0xff] %v4217_v2  ;;  %235 = vst [vmem:[#allocation2 + $0x50] sm:$0xff] %v4217_v2  ;;  %861 = vmatprep.subr.mxu0 %v4217_v2  ;;  %1086 = vmatprep.subr.mxu1 %v4217_v2  ;;  %v748_v12 = vld [vmem:[%s7305_s1 + $0x150] sm:$0xff]  ;;  %v715_v13 = vld [vmem:[%s7305_s1 + $0x48] sm:$0xff] }
  0x11   : > { %236 = vst [vmem:[#allocation2 + $0x58] sm:$0x3] %v4217_v2  ;;  %237 = vst [vmem:[#allocation2 + $0x60] sm:$0xff] %v4217_v2  ;;  %862 = vmatpush1.msra.mxu0 %v719_v5  ;;  %1087 = vmatpush1.msra.mxu1 %v751_v6  ;;  %v747_v14 = vld [vmem:[%s7305_s1 + $0x148] sm:$0xff]  ;;  %v714_v15 = vld [vmem:[%s7305_s1 + $0x40] sm:$0xff] }
  0x12   : > { %238 = vst [vmem:[#allocation2 + $0x68] sm:$0xff] %v4217_v2  ;;  %239 = vst [vmem:[#allocation2 + $0x70] sm:$0x3] %v4217_v2  ;;  %863 = vmatprep.subr.mxu0 %v4217_v2  ;;  %1088 = vmatprep.subr.mxu1 %v4217_v2  ;;  %v746_v16 = vld [vmem:[%s7305_s1 + $0x140] sm:$0xff]  ;;  %v713_v17 = vld [vmem:[%s7305_s1 + $0x38] sm:$0xff] }
  0x13   : > { %240 = vst [vmem:[#allocation2 + $0x78] sm:$0xff] %v4217_v2  ;;  %241 = vst [vmem:[#allocation2 + $0x80] sm:$0xff] %v4217_v2  ;;  %864 = vmatpush1.msra.mxu0 %v718_v7  ;;  %1089 = vmatpush1.msra.mxu1 %v750_v8  ;;  %v745_v18 = vld [vmem:[%s7305_s1 + $0x138] sm:$0xff]  ;;  %v712_v19 = vld [vmem:[%s7305_s1 + $0x30] sm:$0xff] }
  0x14   : > { %242 = vst [vmem:[#allocation2 + $0x88] sm:$0x3] %v4217_v2  ;;  %243 = vst [vmem:[#allocation2 + $0x90] sm:$0xff] %v4217_v2  ;;  %865 = vmatprep.subr.mxu0 %v4217_v2  ;;  %1090 = vmatprep.subr.mxu1 %v4217_v2  ;;  %v744_v20 = vld [vmem:[%s7305_s1 + $0x130] sm:$0xff]  ;;  %v711_v21 = vld [vmem:[%s7305_s1 + $0x28] sm:$0xff] }
  0x15   : > { %244 = vst [vmem:[#allocation2 + $0x98] sm:$0xff] %v4217_v2  ;;  %245 = vst [vmem:[#allocation2 + $0xa0] sm:$0x3] %v4217_v2  ;;  %866 = vmatpush1.msra.mxu0 %v717_v9  ;;  %1091 = vmatpush1.msra.mxu1 %v749_v10  ;;  %v743_v22 = vld [vmem:[%s7305_s1 + $0x128] sm:$0xff]  ;;  %v710_v23 = vld [vmem:[%s7305_s1 + $0x20] sm:$0xff] }
  0x16   : > { %246 = vst [vmem:[#allocation2 + $0xa8] sm:$0xff] %v4217_v2  ;;  %247 = vst [vmem:[#allocation2 + $0xb0] sm:$0xff] %v4217_v2  ;;  %867 = vmatprep.subr.mxu0 %v4217_v2  ;;  %1092 = vmatprep.subr.mxu1 %v4217_v2  ;;  %v742_v24 = vld [vmem:[%s7305_s1 + $0x120] sm:$0xff]  ;;  %v709_v26 = vld [vmem:[%s7305_s1 + $0x18] sm:$0xff] }
  0x17   : > { %248 = vst [vmem:[#allocation2 + $0xb8] sm:$0x3] %v4217_v2  ;;  %249 = vst [vmem:[#allocation2 + $0xc0] sm:$0xff] %v4217_v2  ;;  %868 = vmatpush1.msra.mxu0 %v716_v11  ;;  %1093 = vmatpush1.msra.mxu1 %v748_v12  ;;  %v279_v25 = vld [vmem:[%s4453_s15] sm:$0xff]  ;;  %v280_v27 = vld [vmem:[%s4453_s15 + $0x8] sm:$0xff] }
  0x18   : > { %250 = vst [vmem:[#allocation2 + $0xc8] sm:$0xff] %v4217_v2  ;;  %251 = vst [vmem:[#allocation2 + $0xd0] sm:$0x3] %v4217_v2  ;;  %869 = vmatprep.subr.mxu0 %v4217_v2  ;;  %1094 = vmatprep.subr.mxu1 %v4217_v2  ;;  %v741_v28 = vld [vmem:[%s7305_s1 + $0x118] sm:$0xff]  ;;  %v281_v29 = vld [vmem:[%s4453_s15 + $0x10] sm:$0xff] }
  0x19   : > { %252 = vst [vmem:[#allocation2 + $0xd8] sm:$0xff] %v4217_v2  ;;  %253 = vst [vmem:[#allocation2 + $0xe0] sm:$0xff] %v4217_v2  ;;  %870 = vmatpush1.msra.mxu0 %v715_v13  ;;  %1095 = vmatpush1.msra.mxu1 %v747_v14  ;;  %v282_v30 = vld [vmem:[%s4453_s15 + $0x18] sm:$0xff]  ;;  %v708_v31 = vld [vmem:[%s7305_s1 + $0x10] sm:$0xff] }
  0x1a   : > { %254 = vst [vmem:[#allocation2 + $0xe8] sm:$0x3] %v4217_v2  ;;  %255 = vst [vmem:[#allocation2 + $0xf0] sm:$0xff] %v4217_v2  ;;  %871 = vmatprep.subr.mxu0 %v4217_v2  ;;  %1096 = vmatprep.subr.mxu1 %v4217_v2  ;;  %v283_v32 = vld [vmem:[%s4453_s15 + $0x20] sm:$0xff]  ;;  %v740_v33 = vld [vmem:[%s7305_s1 + $0x110] sm:$0xff] }
  0x1b   : > { %256 = vst [vmem:[#allocation2 + $0xf8] sm:$0xff] %v4217_v2  ;;  %257 = vst [vmem:[#allocation2 + $0x100] sm:$0x3] %v4217_v2  ;;  %872 = vmatpush1.msra.mxu0 %v714_v15  ;;  %1097 = vmatpush1.msra.mxu1 %v746_v16  ;;  %v284_v34 = vld [vmem:[%s4453_s15 + $0x28] sm:$0xff]  ;;  %v285_v35 = vld [vmem:[%s4453_s15 + $0x30] sm:$0xff] }
  0x1c   : > { %258 = vst [vmem:[#allocation2 + $0x108] sm:$0xff] %v4217_v2  ;;  %259 = vst [vmem:[#allocation2 + $0x110] sm:$0xff] %v4217_v2  ;;  %873 = vmatprep.subr.mxu0 %v4217_v2  ;;  %1098 = vmatprep.subr.mxu1 %v4217_v2  ;;  %v707_v36 = vld [vmem:[%s7305_s1 + $0x8] sm:$0xff]  ;;  %v286_v37 = vld [vmem:[%s4453_s15 + $0x38] sm:$0xff] }
  0x1d   : > { %260 = vst [vmem:[#allocation2 + $0x118] sm:$0x3] %v4217_v2  ;;  %261 = vst [vmem:[#allocation2 + $0x120] sm:$0xff] %v4217_v2  ;;  %874 = vmatpush1.msra.mxu0 %v713_v17  ;;  %1099 = vmatpush1.msra.mxu1 %v745_v18  ;;  %v739_v38 = vld [vmem:[%s7305_s1 + $0x108] sm:$0xff]  ;;  %v287_v39 = vld [vmem:[%s4453_s15 + $0x40] sm:$0xff] }
  0x1e   : > { %262 = vst [vmem:[#allocation2 + $0x128] sm:$0xff] %v4217_v2  ;;  %263 = vst [vmem:[#allocation2 + $0x130] sm:$0x3] %v4217_v2  ;;  %875 = vmatprep.subr.mxu0 %v4217_v2  ;;  %1100 = vmatprep.subr.mxu1 %v4217_v2  ;;  %v288_v40 = vld [vmem:[%s4453_s15 + $0x48] sm:$0xff]  ;;  %v289_v41 = vld [vmem:[%s4453_s15 + $0x50] sm:$0xff] }
  0x1f   : > { %264 = vst [vmem:[#allocation2 + $0x138] sm:$0xff] %v4217_v2  ;;  %265 = vst [vmem:[#allocation2 + $0x140] sm:$0xff] %v4217_v2  ;;  %876 = vmatpush1.msra.mxu0 %v712_v19  ;;  %1101 = vmatpush1.msra.mxu1 %v744_v20  ;;  %v706_v42 = vld [vmem:[%s7305_s1] sm:$0xff]  ;;  %v290_v44 = vld [vmem:[%s4453_s15 + $0x58] sm:$0xff] }
  0x20   : > { %266 = vst [vmem:[#allocation2 + $0x148] sm:$0x3] %v4217_v2  ;;  %267 = vst [vmem:[#allocation2 + $0x150] sm:$0xff] %v4217_v2  ;;  %877 = vmatprep.subr.mxu0 %v4217_v2  ;;  %1102 = vmatprep.subr.mxu1 %v4217_v2  ;;  %v738_v43 = vld [vmem:[%s7305_s1 + $0x100] sm:$0xff]  ;;  %v737_v46 = vld [vmem:[%s7305_s1 + $0xf8] sm:$0xff] }
  0x21   : > { %268 = vst [vmem:[#allocation2 + $0x158] sm:$0xff] %v4217_v2  ;;  %269 = vst [vmem:[#allocation2 + $0x160] sm:$0x3] %v4217_v2  ;;  %878 = vmatpush1.msra.mxu0 %v711_v21  ;;  %1103 = vmatpush1.msra.mxu1 %v743_v22  ;;  %v291_v45 = vld [vmem:[%s4453_s15 + $0x60] sm:$0xff]  ;;  %v769_v47 = vld [vmem:[%s7305_s1 + $0x1f8] sm:$0xff]  ;;  %v447_v21 = vrot.slane %v4217_v2, 1 }
  0x22   : > { %270 = vst [vmem:[#allocation2 + $0x168] sm:$0xff] %v4217_v2  ;;  %271 = vst [vmem:[#allocation2 + $0x170] sm:$0xff] %v4217_v2  ;;  %879 = vmatprep.subr.mxu0 %v4217_v2  ;;  %1104 = vmatprep.subr.mxu1 %v4217_v2  ;;  %v736_v48 = vld [vmem:[%s7305_s1 + $0xf0] sm:$0xff]  ;;  %v735_v50 = vld [vmem:[%s7305_s1 + $0xe8] sm:$0xff] }
  0x23   : > { %272 = vst [vmem:[#allocation2 + $0x178] sm:$0x3] %v4217_v2  ;;  %273 = vst [vmem:[#allocation2 + $0x180] sm:$0xff] %v4217_v2  ;;  %880 = vmatpush1.msra.mxu0 %v710_v23  ;;  %1105 = vmatpush1.msra.mxu1 %v742_v24  ;;  %v768_v49 = vld [vmem:[%s7305_s1 + $0x1f0] sm:$0xff]  ;;  %v767_v51 = vld [vmem:[%s7305_s1 + $0x1e8] sm:$0xff] }
  0x24   : > { %274 = vst [vmem:[#allocation2 + $0x188] sm:$0xff] %v4217_v2  ;;  %275 = vst [vmem:[#allocation2 + $0x190] sm:$0x3] %v4217_v2  ;;  %881 = vmatprep.subr.mxu0 %v4217_v2  ;;  %1106 = vmatprep.subr.mxu1 %v4217_v2  ;;  %v734_v52 = vld [vmem:[%s7305_s1 + $0xe0] sm:$0xff]  ;;  %v292_v54 = vld [vmem:[%s4453_s15 + $0x68] sm:$0xff] }
  0x25   : > { %278 = vst [vmem:[#allocation2 + $0x1a8] sm:$0x3] %v4217_v2  ;;  %2016 = vst [vmem:[#allocation3 + $0x10] sm:$0x3] %v4217_v2  ;;  %882 = vmatpush1.msra.mxu0 %v709_v26  ;;  %1107 = vmatpush1.msra.mxu1 %v741_v28  ;;  %v766_v53 = vld [vmem:[%s7305_s1 + $0x1e0] sm:$0xff]  ;;  %v293_v55 = vld [vmem:[%s4453_s15 + $0x70] sm:$0xff] }
  0x26   : > { %2017 = vst [vmem:[#allocation3 + $0x18] sm:$0xff] %v4217_v2  ;;  %2018 = vst [vmem:[#allocation3 + $0x20] sm:$0xff] %v4217_v2  ;;  %883 = vmatprep.subr.mxu0 %v4217_v2  ;;  %1108 = vmatprep.subr.mxu1 %v4217_v2  ;;  %v733_v56 = vld [vmem:[%s7305_s1 + $0xd8] sm:$0xff]  ;;  %v295_v59 = vld [vmem:[%s4453_s15 + $0x80] sm:$0xff] }
  0x27   : > { %2019 = vst [vmem:[#allocation3 + $0x28] sm:$0x3] %v4217_v2  ;;  %2020 = vst [vmem:[#allocation3 + $0x30] sm:$0xff] %v4217_v2  ;;  %884 = vmatpush1.msra.mxu0 %v708_v31  ;;  %1109 = vmatpush1.msra.mxu1 %v740_v33  ;;  %v765_v57 = vld [vmem:[%s7305_s1 + $0x1d8] sm:$0xff]  ;;  %v732_v60 = vld [vmem:[%s7305_s1 + $0xd0] sm:$0xff] }
  0x28   : > { %2021 = vst [vmem:[#allocation3 + $0x38] sm:$0xff] %v4217_v2  ;;  %2022 = vst [vmem:[#allocation3 + $0x40] sm:$0x3] %v4217_v2  ;;  %885 = vmatprep.subr.mxu0 %v4217_v2  ;;  %1110 = vmatprep.subr.mxu1 %v4217_v2  ;;  %v294_v58 = vld [vmem:[%s4453_s15 + $0x78] sm:$0xff]  ;;  %v764_v61 = vld [vmem:[%s7305_s1 + $0x1d0] sm:$0xff] }
  0x29   : > { %2023 = vst [vmem:[#allocation3 + $0x48] sm:$0xff] %v4217_v2  ;;  %2024 = vst [vmem:[#allocation3 + $0x50] sm:$0xff] %v4217_v2  ;;  %886 = vmatpush1.msra.mxu0 %v707_v36  ;;  %1111 = vmatpush1.msra.mxu1 %v739_v38  ;;  %v296_v62 = vld [vmem:[%s4453_s15 + $0x88] sm:$0xff]  ;;  %v297_v63 = vld [vmem:[%s4453_s15 + $0x90] sm:$0xff] }
  0x2a   : > { %2025 = vst [vmem:[#allocation3 + $0x58] sm:$0x3] %v4217_v2  ;;  %2026 = vst [vmem:[#allocation3 + $0x60] sm:$0xff] %v4217_v2  ;;  %887 = vmatprep.subr.mxu0 %v4217_v2  ;;  %1112 = vmatprep.subr.mxu1 %v4217_v2  ;;  %v731_v0 = vld [vmem:[%s7305_s1 + $0xc8] sm:$0xff]  ;;  %v298_v3 = vld [vmem:[%s4453_s15 + $0x98] sm:$0xff] }
  0x2b   : > { %2027 = vst [vmem:[#allocation3 + $0x68] sm:$0xff] %v4217_v2  ;;  %2028 = vst [vmem:[#allocation3 + $0x70] sm:$0x3] %v4217_v2  ;;  %888 = vmatpush1.msra.mxu0 %v706_v42  ;;  %1113 = vmatpush1.msra.mxu1 %v738_v43  ;;  %v763_v1 = vld [vmem:[%s7305_s1 + $0x1c8] sm:$0xff]  ;;  %v730_v4 = vld [vmem:[%s7305_s1 + $0xc0] sm:$0xff] }
  0x2c   : > { %2029 = vst [vmem:[#allocation3 + $0x78] sm:$0xff] %v4217_v2  ;;  %2030 = vst [vmem:[#allocation3 + $0x80] sm:$0xff] %v4217_v2  ;;  %889 = vmatprep.subr.mxu0 %v4217_v2  ;;  %1114 = vmatprep.subr.mxu1 %v4217_v2  ;;  %v762_v5 = vld [vmem:[%s7305_s1 + $0x1c0] sm:$0xff]  ;;  %v729_v7 = vld [vmem:[%s7305_s1 + $0xb8] sm:$0xff] }
  0x2d   : > { %2031 = vst [vmem:[#allocation3 + $0x88] sm:$0x3] %v4217_v2  ;;  %2032 = vst [vmem:[#allocation3 + $0x90] sm:$0xff] %v4217_v2  ;;  %890 = vmatpush2.msra.mxu0 %v737_v46  ;;  %1115 = vmatpush2.msra.mxu1 %v769_v47  ;;  %v299_v6 = vld [vmem:[%s4453_s15 + $0xa0] sm:$0xff]  ;;  %v761_v8 = vld [vmem:[%s7305_s1 + $0x1b8] sm:$0xff] }
  0x2e   : > { %2033 = vst [vmem:[#allocation3 + $0x98] sm:$0xff] %v4217_v2  ;;  %2034 = vst [vmem:[#allocation3 + $0xa0] sm:$0x3] %v4217_v2  ;;  %891 = vmatprep.subr.mxu0 %v4217_v2  ;;  %1116 = vmatprep.subr.mxu1 %v4217_v2  ;;  %v300_v9 = vld [vmem:[%s4453_s15 + $0xa8] sm:$0xff]  ;;  %v728_v10 = vld [vmem:[%s7305_s1 + $0xb0] sm:$0xff] }
  0x2f   : > { %2035 = vst [vmem:[#allocation3 + $0xa8] sm:$0xff] %v4217_v2  ;;  %2036 = vst [vmem:[#allocation3 + $0xb0] sm:$0xff] %v4217_v2  ;;  %892 = vmatpush2.msra.mxu0 %v736_v48  ;;  %1117 = vmatpush2.msra.mxu1 %v768_v49  ;;  %v760_v11 = vld [vmem:[%s7305_s1 + $0x1b0] sm:$0xff]  ;;  %v727_v12 = vld [vmem:[%s7305_s1 + $0xa8] sm:$0xff] }
  0x30   : > { %2037 = vst [vmem:[#allocation3 + $0xb8] sm:$0x3] %v4217_v2  ;;  %2038 = vst [vmem:[#allocation3 + $0xc0] sm:$0xff] %v4217_v2  ;;  %893 = vmatprep.subr.mxu0 %v4217_v2  ;;  %1118 = vmatprep.subr.mxu1 %v4217_v2  ;;  %v759_v13 = vld [vmem:[%s7305_s1 + $0x1a8] sm:$0xff]  ;;  %v301_v14 = vld [vmem:[%s4453_s15 + $0xb0] sm:$0xff] }
  0x31   : > { %2039 = vst [vmem:[#allocation3 + $0xc8] sm:$0xff] %v4217_v2  ;;  %2040 = vst [vmem:[#allocation3 + $0xd0] sm:$0x3] %v4217_v2  ;;  %894 = vmatpush2.msra.mxu0 %v735_v50  ;;  %1119 = vmatpush2.msra.mxu1 %v767_v51  ;;  %v726_v15 = vld [vmem:[%s7305_s1 + $0xa0] sm:$0xff]  ;;  %v302_v17 = vld [vmem:[%s4453_s15 + $0xb8] sm:$0xff] }
  0x32   : > { %2041 = vst [vmem:[#allocation3 + $0xd8] sm:$0xff] %v4217_v2  ;;  %2042 = vst [vmem:[#allocation3 + $0xe0] sm:$0xff] %v4217_v2  ;;  %895 = vmatprep.subr.mxu0 %v4217_v2  ;;  %1120 = vmatprep.subr.mxu1 %v4217_v2  ;;  %v758_v16 = vld [vmem:[%s7305_s1 + $0x1a0] sm:$0xff]  ;;  %v725_v19 = vld [vmem:[%s7305_s1 + $0x98] sm:$0xff] }
  0x33   : > { %2043 = vst [vmem:[#allocation3 + $0xe8] sm:$0x3] %v4217_v2  ;;  %2044 = vst [vmem:[#allocation3 + $0xf0] sm:$0xff] %v4217_v2  ;;  %896 = vmatpush2.msra.mxu0 %v734_v52  ;;  %1121 = vmatpush2.msra.mxu1 %v766_v53  ;;  %v303_v18 = vld [vmem:[%s4453_s15 + $0xc0] sm:$0xff]  ;;  %v757_v20 = vld [vmem:[%s7305_s1 + $0x198] sm:$0xff] }
  0x34   : > { %2045 = vst [vmem:[#allocation3 + $0xf8] sm:$0xff] %v4217_v2  ;;  %2046 = vst [vmem:[#allocation3 + $0x100] sm:$0x3] %v4217_v2  ;;  %897 = vmatprep.subr.mxu0 %v4217_v2  ;;  %1122 = vmatprep.subr.mxu1 %v4217_v2  ;;  %v304_v22 = vld [vmem:[%s4453_s15 + $0xc8] sm:$0xff]  ;;  %v724_v23 = vld [vmem:[%s7305_s1 + $0x90] sm:$0xff] }
  0x35   : > { %2047 = vst [vmem:[#allocation3 + $0x108] sm:$0xff] %v4217_v2  ;;  %2048 = vst [vmem:[#allocation3 + $0x110] sm:$0xff] %v4217_v2  ;;  %898 = vmatpush2.msra.mxu0 %v733_v56  ;;  %1123 = vmatpush2.msra.mxu1 %v765_v57  ;;  %v756_v24 = vld [vmem:[%s7305_s1 + $0x190] sm:$0xff]  ;;  %v755_v28 = vld [vmem:[%s7305_s1 + $0x188] sm:$0xff] }
  0x36   : > { %2049 = vst [vmem:[#allocation3 + $0x118] sm:$0x3] %v4217_v2  ;;  %2050 = vst [vmem:[#allocation3 + $0x120] sm:$0xff] %v4217_v2  ;;  %899 = vmatprep.subr.mxu0 %v4217_v2  ;;  %1124 = vmatprep.subr.mxu1 %v4217_v2  ;;  %v305_v26 = vld [vmem:[%s4453_s15 + $0xd0] sm:$0xff]  ;;  %v306_v31 = vld [vmem:[%s4453_s15 + $0xd8] sm:$0xff] }
  0x37   : > { %2051 = vst [vmem:[#allocation3 + $0x128] sm:$0xff] %v4217_v2  ;;  %2052 = vst [vmem:[#allocation3 + $0x130] sm:$0x3] %v4217_v2  ;;  %900 = vmatpush2.msra.mxu0 %v732_v60  ;;  %1125 = vmatpush2.msra.mxu1 %v764_v61  ;;  %v754_v36 = vld [vmem:[%s7305_s1 + $0x180] sm:$0xff]  ;;  %v308_v42 = vld [vmem:[%s4453_s15 + $0xe8] sm:$0xff] }
  0x38   : > { %2053 = vst [vmem:[#allocation3 + $0x138] sm:$0xff] %v4217_v2  ;;  %2054 = vst [vmem:[#allocation3 + $0x140] sm:$0xff] %v4217_v2  ;;  %901 = vmatprep.subr.mxu0 %v4217_v2  ;;  %1126 = vmatprep.subr.mxu1 %v4217_v2  ;;  %v310_v48 = vld [vmem:[%s4453_s15 + $0xf8] sm:$0xff]  ;;  %v782_v56 = vld [vmem:[%s7305_s1 + $0x260] sm:$0xff] }
  0x39   : > { %2055 = vst [vmem:[#allocation3 + $0x148] sm:$0x3] %v4217_v2  ;;  %2056 = vst [vmem:[#allocation3 + $0x150] sm:$0xff] %v4217_v2  ;;  %902 = vmatpush2.msra.mxu0 %v731_v0  ;;  %1127 = vmatpush2.msra.mxu1 %v763_v1  ;;  %v780_v1 = vld [vmem:[%s7305_s1 + $0x250] sm:$0xff] }
  0x3a   : > { %2057 = vst [vmem:[#allocation3 + $0x158] sm:$0xff] %v4217_v2  ;;  %2058 = vst [vmem:[#allocation3 + $0x160] sm:$0x3] %v4217_v2  ;;  %903 = vmatprep.subr.mxu0 %v4217_v2  ;;  %1128 = vmatprep.subr.mxu1 %v4217_v2 }
  0x3b   : > { %2059 = vst [vmem:[#allocation3 + $0x168] sm:$0xff] %v4217_v2  ;;  %2060 = vst [vmem:[#allocation3 + $0x170] sm:$0xff] %v4217_v2  ;;  %904 = vmatpush2.msra.mxu0 %v730_v4  ;;  %1129 = vmatpush2.msra.mxu1 %v762_v5 }
  0x3c   : > { %2061 = vst [vmem:[#allocation3 + $0x178] sm:$0x3] %v4217_v2  ;;  %2062 = vst [vmem:[#allocation3 + $0x180] sm:$0xff] %v4217_v2  ;;  %905 = vmatprep.subr.mxu0 %v4217_v2  ;;  %1130 = vmatprep.subr.mxu1 %v4217_v2 }
  0x3d   : > { %2063 = vst [vmem:[#allocation3 + $0x188] sm:$0xff] %v4217_v2  ;;  %2064 = vst [vmem:[#allocation3 + $0x190] sm:$0x3] %v4217_v2  ;;  %906 = vmatpush2.msra.mxu0 %v729_v7  ;;  %1131 = vmatpush2.msra.mxu1 %v761_v8  ;;  %v779_v8 = vld [vmem:[%s7305_s1 + $0x248] sm:$0xff] }
  0x3e   : > { %2067 = vst [vmem:[#allocation3 + $0x1a8] sm:$0x3] %v4217_v2  ;;  %312 = vst [vmem:[#allocation2 + $0x19] sm:$0xff] %v279_v25  ;;  %907 = vmatprep.subr.mxu0 %v4217_v2  ;;  %1132 = vmatprep.subr.mxu1 %v4217_v2  ;;  %v346_v25 = vld [vmem:[#allocation2 + $0x10] sm:$0x3] }
  0x3f   : > { %313 = vst [vmem:[#allocation2 + $0x21] sm:$0xff] %v280_v27  ;;  %314 = vst [vmem:[#allocation2 + $0x31] sm:$0xff] %v281_v29  ;;  %908 = vmatpush2.msra.mxu0 %v728_v10  ;;  %1133 = vmatpush2.msra.mxu1 %v760_v11  ;;  %v723_v27 = vld [vmem:[%s7305_s1 + $0x88] sm:$0xff]  ;;  %v560_v29 = vrot.slane %v4217_v2, 2  ;;  %v450_v33 = vrot.slane %v346_v25, 1 }
  0x40   : > { %315 = vst [vmem:[#allocation2 + $0x39] sm:$0xff] %v282_v30  ;;  %316 = vst [vmem:[#allocation2 + $0x49] sm:$0xff] %v283_v32  ;;  %909 = vmatprep.subr.mxu0 %v4217_v2  ;;  %1134 = vmatprep.subr.mxu1 %v4217_v2  ;;  %v722_v32 = vld [vmem:[%s7305_s1 + $0x80] sm:$0xff] }
  0x41   : > { %317 = vst [vmem:[#allocation2 + $0x51] sm:$0xff] %v284_v34  ;;  %318 = vst [vmem:[#allocation2 + $0x61] sm:$0xff] %v285_v35  ;;  %910 = vmatpush2.msra.mxu0 %v727_v12  ;;  %1135 = vmatpush2.msra.mxu1 %v759_v13  ;;  %v307_v35 = vld [vmem:[%s4453_s15 + $0xe0] sm:$0xff]  ;;  %v451_v43 = vsel %vm446_vm0, %v447_v21, %v450_v33  ;;  %v773_v33 = vld [vmem:[%s7305_s1 + $0x218] sm:$0xff] }
  0x42   : > { %319 = vst [vmem:[#allocation2 + $0x69] sm:$0xff] %v286_v37  ;;  %320 = vst [vmem:[#allocation2 + $0x79] sm:$0xff] %v287_v39  ;;  %911 = vmatprep.subr.mxu0 %v4217_v2  ;;  %1136 = vmatprep.subr.mxu1 %v4217_v2  ;;  %v785_v39 = vld [vmem:[%s7305_s1 + $0x278] sm:$0xff]  ;;  %v778_v12 = vld [vmem:[%s7305_s1 + $0x240] sm:$0xff] }
  0x43   : > { %321 = vst [vmem:[#allocation2 + $0x81] sm:$0xff] %v288_v40  ;;  %322 = vst [vmem:[#allocation2 + $0x91] sm:$0xff] %v289_v41  ;;  %912 = vmatpush2.msra.mxu0 %v726_v15  ;;  %1137 = vmatpush2.msra.mxu1 %v758_v16  ;;  %v563_v40 = vrot.slane %v346_v25, 2  ;;  %v777_v16 = vld [vmem:[%s7305_s1 + $0x238] sm:$0xff]  ;;  %v775_v25 = vld [vmem:[%s7305_s1 + $0x228] sm:$0xff] }
  0x44   : > { %323 = vst [vmem:[#allocation2 + $0x99] sm:$0xff] %v290_v44  ;;  %324 = vst [vmem:[#allocation2 + $0xa9] sm:$0xff] %v291_v45  ;;  %913 = vmatprep.subr.mxu0 %v4217_v2  ;;  %1138 = vmatprep.subr.mxu1 %v4217_v2  ;;  %v309_v44 = vld [vmem:[%s4453_s15 + $0xf0] sm:$0xff] }
  0x45   : > { %325 = vst [vmem:[#allocation2 + $0xb1] sm:$0xff] %v292_v54  ;;  %326 = vst [vmem:[#allocation2 + $0xc1] sm:$0xff] %v293_v55  ;;  %914 = vmatpush2.msra.mxu0 %v725_v19  ;;  %1139 = vmatpush2.msra.mxu1 %v757_v20  ;;  %v347_v34 = vld [vmem:[#allocation2 + $0x18] sm:$0xff]  ;;  %v784_v45 = vld [vmem:[%s7305_s1 + $0x270] sm:$0xff]  ;;  %v564_v49 = vsel %vm559_vm1, %v560_v29, %v563_v40 }
  0x46   : > { %327 = vst [vmem:[#allocation2 + $0xc9] sm:$0xff] %v294_v58  ;;  %328 = vst [vmem:[#allocation2 + $0xd9] sm:$0xff] %v295_v59  ;;  %915 = vmatprep.subr.mxu0 %v4217_v2  ;;  %1140 = vmatprep.subr.mxu1 %v4217_v2  ;;  %v4652_v30 = vld [vmem:[#allocation2 + $0x20] sm:$0xff]  ;;  %v452_v37 = vrot.slane %v347_v34, 1  ;;  %v349_v41 = vld [vmem:[#allocation2 + $0x28] sm:$0x3] }
  0x47   : > { %329 = vst [vmem:[#allocation2 + $0xe1] sm:$0xff] %v296_v62  ;;  %330 = vst [vmem:[#allocation2 + $0xf1] sm:$0xff] %v297_v63  ;;  %916 = vmatpush2.msra.mxu0 %v724_v23  ;;  %1141 = vmatpush2.msra.mxu1 %v756_v24  ;;  %v453_v38 = vrot.slane %v4652_v30, 1  ;;  %v455_v47 = vrot.slane %v349_v41, 1  ;;  %v565_v50 = vrot.slane %v347_v34, 2  ;;  %v566_v51 = vrot.slane %v4652_v30, 2 }
  0x48   : > { %331 = vst [vmem:[#allocation2 + $0xf9] sm:$0xff] %v298_v3  ;;  %332 = vst [vmem:[#allocation2 + $0x109] sm:$0xff] %v299_v6  ;;  %917 = vmatprep.subr.mxu0 %v4217_v2  ;;  %1142 = vmatprep.subr.mxu1 %v4217_v2  ;;  %v4685_v52 = vld [vmem:[#allocation2 + $0x38] sm:$0xff]  ;;  %v4689_v53 = vld [vmem:[#allocation2 + $0x30] sm:$0xff]  ;;  %v568_v60 = vrot.slane %v349_v41, 2 }
  0x49   : > { %333 = vst [vmem:[#allocation2 + $0x111] sm:$0xff] %v300_v9  ;;  %334 = vst [vmem:[#allocation2 + $0x121] sm:$0xff] %v301_v14  ;;  %918 = vmatpush2.msra.mxu0 %v723_v27  ;;  %921 = vmatprep.mubr.f32.mxu0 %v447_v21  ;;  %v4679_v46 = vsel %vm446_vm0, %v452_v37, %v453_v38  ;;  %v783_v54 = vld [vmem:[%s7305_s1 + $0x268] sm:$0xff]  ;;  %v4697_v55 = vsel %vm446_vm0, %v453_v38, %v455_v47  ;;  %v457_v57 = vrot.slane %v4689_v53, 1  ;;  %v352_v61 = vld [vmem:[#allocation2 + $0x40] sm:$0x3] }
  0x4a   : > { %335 = vst [vmem:[#allocation2 + $0x129] sm:$0xff] %v302_v17  ;;  %336 = vst [vmem:[#allocation2 + $0x139] sm:$0xff] %v303_v18  ;;  %919 = vmatprep.subr.mxu0 %v4217_v2  ;;  %1143 = vmatpush2.msra.mxu1 %v755_v28  ;;  %v458_v58 = vrot.slane %v4685_v52, 1  ;;  %v4706_v59 = vsel %vm559_vm1, %v565_v50, %v566_v51  ;;  %v781_v62 = vld [vmem:[%s7305_s1 + $0x258] sm:$0xff]  ;;  %v460_v0 = vrot.slane %v352_v61, 1  ;;  %v570_v4 = vrot.slane %v4689_v53, 2 }
  0x4b   : > { %337 = vst [vmem:[#allocation2 + $0x141] sm:$0xff] %v304_v22  ;;  %338 = vst [vmem:[#allocation2 + $0x151] sm:$0xff] %v305_v26  ;;  %920 = vmatpush2.msra.mxu0 %v722_v32  ;;  %1144 = vmatprep.subr.mxu1 %v4217_v2  ;;  %v4723_v3 = vsel %vm559_vm1, %v566_v51, %v568_v60  ;;  %v571_v5 = vrot.slane %v4685_v52, 2  ;;  %v4727_v6 = vld [vmem:[#allocation2 + $0x50] sm:$0xff]  ;;  %v4730_v7 = vld [vmem:[#allocation2 + $0x48] sm:$0xff]  ;;  %v573_v14 = vrot.slane %v352_v61, 2 }
  0x4c   : > { %339 = vst [vmem:[#allocation2 + $0x159] sm:$0xff] %v306_v31  ;;  %340 = vst [vmem:[#allocation2 + $0x169] sm:$0xff] %v307_v35  ;;  %922 = vmatmul.mubr.f32.vlgmr.msra.gmra.mxu0 %v4217_v2  ;;  %1307 = vmatprep.subr.mxu0 %v4217_v2  ;;  %v4715_v63 = vsel %vm446_vm0, %v457_v57, %v458_v58  ;;  %v4739_v9 = vsel %vm446_vm0, %v458_v58, %v460_v0  ;;  %v462_v10 = vrot.slane %v4730_v7, 1  ;;  %v355_v15 = vld [vmem:[#allocation2 + $0x58] sm:$0x3]  ;;  %v776_v19 = vld [vmem:[%s7305_s1 + $0x230] sm:$0xff] }
  0x4d   : > { %341 = vst [vmem:[#allocation2 + $0x171] sm:$0xff] %v308_v42  ;;  %1145 = vmatpush2.msra.mxu1 %v754_v36  ;;  %1146 = vmatprep.mubr.f32.mxu1 %v347_v34  ;;  %342 = vst [vmem:[#allocation2 + $0x181] sm:$0xff] %v309_v44  ;;  %v463_v11 = vrot.slane %v4727_v6, 1  ;;  %v4749_v13 = vsel %vm559_vm1, %v570_v4, %v571_v5  ;;  %v465_v18 = vrot.slane %v355_v15, 1  ;;  %v575_v21 = vrot.slane %v4730_v7, 2  ;;  %v4771_v23 = vld [vmem:[#allocation2 + $0x68] sm:$0xff] }
  0x4e   : > { %1308 = vmatpush1.msra.mxu0 %v785_v39  ;;  %1147 = vmatmul.mubr.f32.vlgmr.msra.gmra.mxu1 %v560_v29  ;;  %343 = vst [vmem:[#allocation2 + $0x189] sm:$0xff] %v310_v48  ;;  %v4767_v20 = vsel %vm559_vm1, %v571_v5, %v573_v14  ;;  %v576_v22 = vrot.slane %v4727_v6, 2  ;;  %v4774_v24 = vld [vmem:[#allocation2 + $0x60] sm:$0xff]  ;;  %v468_v28 = vrot.slane %v4771_v23, 1  ;;  %v578_v31 = vrot.slane %v355_v15, 2  ;;  %v772_v36 = vld [vmem:[%s7305_s1 + $0x210] sm:$0xff] }
  0x4f   : > { %926 = vmatprep.mubr.f32.mxu0 %v451_v43  ;;  %1309 = vmatprep.subr.mxu0 %v4217_v2  ;;  %v4759_v17 = vsel %vm446_vm0, %v462_v10, %v463_v11  ;;  %v4783_v26 = vsel %vm446_vm0, %v463_v11, %v465_v18  ;;  %v467_v27 = vrot.slane %v4774_v24, 1  ;;  %v774_v29 = vld [vmem:[%s7305_s1 + $0x220] sm:$0xff]  ;;  %v358_v32 = vld [vmem:[#allocation2 + $0x70] sm:$0x3]  ;;  %v580_v38 = vrot.slane %v4774_v24, 2  ;;  %v4818_v41 = vld [vmem:[#allocation2 + $0x78] sm:$0xff] }
  0x50   : > { %927 = vmatmul.mubr.f32.gmra.mxu0 %v4217_v2  ;;  %1151 = vmatprep.mubr.f32.mxu1 %v4652_v30  ;;  %v470_v35 = vrot.slane %v358_v32, 1  ;;  %v4811_v37 = vsel %vm559_vm1, %v576_v22, %v578_v31  ;;  %v581_v39 = vrot.slane %v4771_v23, 2  ;;  %v4815_v40 = vld [vmem:[#allocation2 + $0x80] sm:$0xff]  ;;  %v771_v42 = vld [vmem:[%s7305_s1 + $0x208] sm:$0xff]  ;;  %v472_v44 = vrot.slane %v4818_v41, 1  ;;  %v4861_v61 = vld [vmem:[#allocation2 + $0x98] sm:$0xff] }
  0x51   : > { %1310 = vmatpush1.msra.mxu0 %v784_v45  ;;  %931 = vmatprep.mubr.f32.mxu0 %v4679_v46  ;;  %v473_v45 = vrot.slane %v4815_v40, 1  ;;  %v770_v47 = vld [vmem:[%s7305_s1 + $0x200] sm:$0xff]  ;;  %v361_v50 = vld [vmem:[#allocation2 + $0x88] sm:$0x3]  ;;  %v585_v58 = vrot.slane %v4818_v41, 2  ;;  %v586_v60 = vrot.slane %v4815_v40, 2 }
  0x52   : > { %1152 = vmatmul.mubr.f32.gmra.mxu1 %v564_v49  ;;  %1311 = vmatprep.subr.mxu0 %v4217_v2  ;;  %v4827_v43 = vsel %vm446_vm0, %v468_v28, %v470_v35  ;;  %v4837_v48 = vsel %vm559_vm1, %v580_v38, %v581_v39  ;;  %v583_v49 = vrot.slane %v358_v32, 2  ;;  %v4840_v51 = vld [vmem:[#allocation2] sm:$0xff]  ;;  %v816_v0 = vld [vmem:[%s7305_s1 + $0x370] sm:$0xff]  ;;  %v478_v5 = vrot.slane %v4861_v61, 1  ;;  %v815_v14 = vld [vmem:[%s7305_s1 + $0x368] sm:$0xff] }
  0x53   : > { %1156 = vmatprep.mubr.f32.mxu1 %v4689_v53  ;;  %1312 = vmatpush1.msra.mxu0 %v783_v54  ;;  %v475_v54 = vrot.slane %v361_v50, 1  ;;  %v4883_v10 = vsel %vm559_vm1, %v585_v58, %v586_v60  ;;  %v588_v11 = vrot.slane %v361_v50, 2  ;;  %v367_v38 = vld [vmem:[#allocation2 + $0xb8] sm:$0x3] }
  0x54   : > { %932 = vmatmul.mubr.f32.gmra.mxu0 %v347_v34  ;;  %1313 = vmatprep.subr.mxu0 %v4217_v2  ;;  %v4803_v34 = vsel %vm446_vm0, %v467_v27, %v468_v28  ;;  %v4857_v57 = vsel %vm559_vm1, %v581_v39, %v583_v49  ;;  %v4908_v27 = vld [vmem:[#allocation2 + $0xa8] sm:$0xff]  ;;  %v814_v28 = vld [vmem:[%s7305_s1 + $0x360] sm:$0xff]  ;;  %v812_v39 = vld [vmem:[%s7305_s1 + $0x350] sm:$0xff] }
  0x55   : > { %936 = vmatprep.mubr.f32.mxu0 %v4697_v55  ;;  %1314 = vmatpush1.msra.mxu0 %v782_v56  ;;  %v817_v56 = vld [vmem:[%s7305_s1 + $0x378] sm:$0xff]  ;;  %v4898_v18 = vsel %vm559_vm1, %v586_v60, %v588_v11  ;;  %v482_v31 = vrot.slane %v4908_v27, 1  ;;  %v595_v49 = vrot.slane %v4908_v27, 2 }
  0x56   : > { %1157 = vmatmul.mubr.f32.gmra.mxu1 %v4706_v59  ;;  %1315 = vmatprep.subr.mxu0 %v4217_v2  ;;  %v797_v11 = vld [vmem:[%s7305_s1 + $0x2d8] sm:$0xff] }
  0x57   : > { %1161 = vmatprep.mubr.f32.mxu1 %v4685_v52  ;;  %1316 = vmatpush1.msra.mxu0 %v781_v62  ;;  %v4864_v62 = vld [vmem:[#allocation2 + $0x90] sm:$0xff] }
  0x58   : > { %937 = vmatmul.mubr.f32.gmra.mxu0 %v4652_v30  ;;  %1317 = vmatprep.subr.mxu0 %v4217_v2  ;;  %v4793_v30 = vsel %vm559_vm1, %v575_v21, %v576_v22  ;;  %v477_v4 = vrot.slane %v4864_v62, 1  ;;  %v591_v21 = vrot.slane %v4861_v61, 2  ;;  %v4902_v22 = vld [vmem:[#allocation2 + $0xb0] sm:$0xff] }
  0x59   : > { %941 = vmatprep.mubr.f32.mxu0 %v4715_v63  ;;  %1318 = vmatpush1.msra.mxu0 %v780_v1  ;;  %v4873_v1 = vsel %vm446_vm0, %v473_v45, %v475_v54  ;;  %v483_v32 = vrot.slane %v4902_v22, 1  ;;  %v596_v50 = vrot.slane %v4902_v22, 2  ;;  %v4953_v54 = vld [vmem:[#allocation2 + $0xc0] sm:$0xff] }
  0x5a   : > { %1162 = vmatmul.mubr.f32.gmra.mxu1 %v4723_v3  ;;  %1319 = vmatprep.subr.mxu0 %v4217_v2  ;;  %v4893_v15 = vsel %vm446_vm0, %v477_v4, %v478_v5  ;;  %v487_v60 = vrot.slane %v4953_v54, 1 }
  0x5b   : > { %1166 = vmatprep.mubr.f32.mxu1 %v4730_v7  ;;  %1320 = vmatpush1.msra.mxu0 %v779_v8  ;;  %v800_v8 = vld [vmem:[%s7305_s1 + $0x2f0] sm:$0xff]  ;;  %v4968_v4 = vsel %vm559_vm1, %v595_v49, %v596_v50 }
  0x5c   : > { %942 = vmatmul.mubr.f32.gmra.mxu0 %v4689_v53  ;;  %1321 = vmatprep.subr.mxu0 %v4217_v2 }
  0x5d   : > { %946 = vmatprep.mubr.f32.mxu0 %v4739_v9  ;;  %1322 = vmatpush1.msra.mxu0 %v778_v12  ;;  %v364_v12 = vld [vmem:[#allocation2 + $0xa0] sm:$0x3] }
  0x5e   : > { %1167 = vmatmul.mubr.f32.gmra.mxu1 %v4749_v13  ;;  %1323 = vmatprep.subr.mxu0 %v4217_v2 }
  0x5f   : > { %1171 = vmatprep.mubr.f32.mxu1 %v4727_v6  ;;  %1324 = vmatpush1.msra.mxu0 %v777_v16  ;;  %v480_v16 = vrot.slane %v364_v12, 1 }
  0x60   : > { %947 = vmatmul.mubr.f32.gmra.mxu0 %v4685_v52  ;;  %1325 = vmatprep.subr.mxu0 %v4217_v2  ;;  %v4849_v52 = vsel %vm446_vm0, %v472_v44, %v473_v45  ;;  %v485_v44 = vrot.slane %v367_v38, 1  ;;  %v798_v45 = vld [vmem:[%s7305_s1 + $0x2e0] sm:$0xff] }
  0x61   : > { %951 = vmatprep.mubr.f32.mxu0 %v4759_v17  ;;  %1326 = vmatpush1.msra.mxu0 %v776_v19  ;;  %v590_v19 = vrot.slane %v4864_v62, 2 }
  0x62   : > { %1172 = vmatmul.mubr.f32.gmra.mxu1 %v4767_v20  ;;  %1327 = vmatprep.subr.mxu0 %v4217_v2  ;;  %v4961_v58 = vsel %vm446_vm0, %v483_v32, %v485_v44  ;;  %v796_v44 = vld [vmem:[%s7305_s1 + $0x2d0] sm:$0xff] }
  0x63   : > { %1176 = vmatprep.mubr.f32.mxu1 %v4774_v24  ;;  %1328 = vmatpush1.msra.mxu0 %v775_v25  ;;  %v799_v25 = vld [vmem:[%s7305_s1 + $0x2e8] sm:$0xff]  ;;  %v4927_v35 = vsel %vm559_vm1, %v590_v19, %v591_v21  ;;  %v809_v19 = vld [vmem:[%s7305_s1 + $0x338] sm:$0xff] }
  0x64   : > { %952 = vmatmul.mubr.f32.gmra.mxu0 %v4730_v7  ;;  %1329 = vmatprep.subr.mxu0 %v4217_v2 }
  0x65   : > { %956 = vmatprep.mubr.f32.mxu0 %v4783_v26  ;;  %1330 = vmatpush1.msra.mxu0 %v774_v29  ;;  %v4918_v29 = vsel %vm446_vm0, %v478_v5, %v480_v16  ;;  %v598_v5 = vrot.slane %v367_v38, 2 }
  0x66   : > { %1177 = vmatmul.mubr.f32.gmra.mxu1 %v4793_v30  ;;  %1331 = vmatprep.subr.mxu0 %v4217_v2 }
  0x67   : > { %1181 = vmatprep.mubr.f32.mxu1 %v4771_v23  ;;  %1332 = vmatpush1.msra.mxu0 %v773_v33  ;;  %v813_v33 = vld [vmem:[%s7305_s1 + $0x358] sm:$0xff] }
  0x68   : > { %957 = vmatmul.mubr.f32.gmra.mxu0 %v4727_v6  ;;  %1333 = vmatprep.subr.mxu0 %v4217_v2 }
  0x69   : > { %961 = vmatprep.mubr.f32.mxu0 %v4803_v34  ;;  %1334 = vmatpush1.msra.mxu0 %v772_v36  ;;  %v593_v36 = vrot.slane %v364_v12, 2  ;;  %v810_v12 = vld [vmem:[%s7305_s1 + $0x340] sm:$0xff] }
  0x6a   : > { %1182 = vmatmul.mubr.f32.gmra.mxu1 %v4811_v37  ;;  %1335 = vmatprep.subr.mxu0 %v4217_v2  ;;  %v801_v2 = vld [vmem:[%s7305_s1 + $0x2f8] sm:$0xff] }
  0x6b   : > { %1186 = vmatprep.mubr.f32.mxu1 %v4818_v41  ;;  %1336 = vmatpush1.msra.mxu0 %v771_v42  ;;  %v4937_v42 = vsel %vm446_vm0, %v482_v31, %v483_v32  ;;  %v4993_v31 = vld [vmem:[#allocation2 + $0xe0] sm:$0xff]  ;;  %v4996_v32 = vld [vmem:[#allocation2 + $0xd8] sm:$0xff] }
  0x6c   : > { %962 = vmatmul.mubr.f32.gmra.mxu0 %v4774_v24  ;;  %1337 = vmatprep.subr.mxu0 %v4840_v51  ;;  %7419 = vst [vmem:[#allocation4_spill] sm:$0xff] %v4993_v31  ;;  %7420 = vst [vmem:[#allocation5_spill] sm:$0xff] %v4996_v32  ;;  %v492_v38 = vrot.slane %v4996_v32, 1 }
  0x6d   : > { %966 = vmatprep.mubr.f32.mxu0 %v4827_v43  ;;  %1338 = vmatpush1.msra.mxu0 %v770_v47  ;;  %v4945_v47 = vsel %vm559_vm1, %v591_v21, %v593_v36  ;;  %v4989_v21 = vsel %vm559_vm1, %v596_v50, %v598_v5  ;;  %v373_v50 = vld [vmem:[#allocation2 + $0xe8] sm:$0x3] }
  0x6e   : > { %1187 = vmatmul.mubr.f32.gmra.mxu1 %v4837_v48  ;;  %1339 = vmatprep.subr.mxu0 %v4840_v51 }
  0x6f   : > { %1191 = vmatprep.mubr.f32.mxu1 %v4815_v40  ;;  %1340 = vmatpush2.msra.mxu0 %v801_v2  ;;  %v4949_v2 = vld [vmem:[#allocation2 + $0xc8] sm:$0xff] }
  0x70   : > { %967 = vmatmul.mubr.f32.gmra.mxu0 %v4771_v23  ;;  %1532 = vmatprep.subr.mxu1 %v4840_v51 }
  0x71   : > { %971 = vmatprep.mubr.f32.mxu0 %v4849_v52  ;;  %1533 = vmatpush1.msra.mxu1 %v817_v56  ;;  %v811_v56 = vld [vmem:[%s7305_s1 + $0x348] sm:$0xff] }
  0x72   : > { %1192 = vmatmul.mubr.f32.gmra.mxu1 %v4857_v57  ;;  %1341 = vmatprep.subr.mxu0 %v4840_v51 }
  0x73   : > { %1196 = vmatprep.mubr.f32.mxu1 %v4864_v62  ;;  %1534 = vmatprep.subr.mxu1 %v4840_v51 }
  0x74   : > { %972 = vmatmul.mubr.f32.gmra.mxu0 %v4818_v41  ;;  %1535 = vmatpush1.msra.mxu1 %v816_v0  ;;  %v488_v0 = vrot.slane %v4949_v2, 1 }
  0x75   : > { %976 = vmatprep.mubr.f32.mxu0 %v4873_v1  ;;  %1342 = vmatpush2.msra.mxu0 %v800_v8  ;;  %v370_v8 = vld [vmem:[#allocation2 + $0xd0] sm:$0x3] }
  0x76   : > { %1197 = vmatmul.mubr.f32.gmra.mxu1 %v4883_v10  ;;  %1536 = vmatprep.subr.mxu1 %v4840_v51  ;;  %v490_v16 = vrot.slane %v370_v8, 1  ;;  %v603_v49 = vrot.slane %v370_v8, 2  ;;  %v605_v8 = vrot.slane %v4996_v32, 2 }
  0x77   : > { %1201 = vmatprep.mubr.f32.mxu1 %v4861_v61  ;;  %1537 = vmatpush1.msra.mxu1 %v815_v14  ;;  %v4982_v14 = vsel %vm446_vm0, %v487_v60, %v488_v0 }
  0x78   : > { %977 = vmatmul.mubr.f32.gmra.mxu0 %v4815_v40  ;;  %1343 = vmatprep.subr.mxu0 %v4840_v51  ;;  %v5005_v36 = vsel %vm446_vm0, %v488_v0, %v490_v16  ;;  %v495_v0 = vrot.slane %v373_v50, 1  ;;  %v795_v16 = vld [vmem:[%s7305_s1 + $0x2c8] sm:$0xff] }
  0x79   : > { %981 = vmatprep.mubr.f32.mxu0 %v4893_v15  ;;  %1538 = vmatprep.subr.mxu1 %v4840_v51 }
  0x7a   : > { %1202 = vmatmul.mubr.f32.gmra.mxu1 %v4898_v18  ;;  %1344 = vmatpush2.msra.mxu0 %v799_v25  ;;  %v600_v25 = vrot.slane %v4953_v54, 2 }
  0x7b   : > { %1206 = vmatprep.mubr.f32.mxu1 %v4908_v27  ;;  %1539 = vmatpush1.msra.mxu1 %v814_v28  ;;  %v601_v28 = vrot.slane %v4949_v2, 2 }
  0x7c   : > { %982 = vmatmul.mubr.f32.gmra.mxu0 %v4864_v62  ;;  %1540 = vmatprep.subr.mxu1 %v4840_v51 }
  0x7d   : > { %986 = vmatprep.mubr.f32.mxu0 %v4918_v29  ;;  %1541 = vmatpush1.msra.mxu1 %v813_v33  ;;  %v808_v33 = vld [vmem:[%s7305_s1 + $0x330] sm:$0xff]  ;;  %v5030_v5 = vsel %vm559_vm1, %v601_v28, %v603_v49 }
  0x7e   : > { %1207 = vmatmul.mubr.f32.gmra.mxu1 %v4927_v35  ;;  %1345 = vmatprep.subr.mxu0 %v4840_v51  ;;  %7422 = vst [vmem:[#allocation7_spill] sm:$0xff] %v5030_v5 }
  0x7f   : > { %1211 = vmatprep.mubr.f32.mxu1 %v4902_v22  ;;  %1542 = vmatprep.subr.mxu1 %v4840_v51 }
  0x80   : > { %987 = vmatmul.mubr.f32.gmra.mxu0 %v4861_v61  ;;  %1543 = vmatpush1.msra.mxu1 %v812_v39  ;;  %v493_v39 = vrot.slane %v4993_v31, 1 }
  0x81   : > { %991 = vmatprep.mubr.f32.mxu0 %v4937_v42  ;;  %1346 = vmatpush2.msra.mxu0 %v798_v45  ;;  %v5015_v45 = vsel %vm559_vm1, %v600_v25, %v601_v28  ;;  %v806_v25 = vld [vmem:[%s7305_s1 + $0x320] sm:$0xff] }
  0x82   : > { %1212 = vmatmul.mubr.f32.gmra.mxu1 %v4945_v47  ;;  %1544 = vmatprep.subr.mxu1 %v4840_v51  ;;  %v5025_v60 = vsel %vm446_vm0, %v492_v38, %v493_v39  ;;  %v5050_v28 = vsel %vm446_vm0, %v493_v39, %v495_v0  ;;  %v804_v39 = vld [vmem:[%s7305_s1 + $0x310] sm:$0xff] }
  0x83   : > { %1216 = vmatprep.mubr.f32.mxu1 %v4953_v54  ;;  %1545 = vmatpush1.msra.mxu1 %v811_v56  ;;  %v807_v56 = vld [vmem:[%s7305_s1 + $0x328] sm:$0xff]  ;;  %7421 = vst [vmem:[#allocation6_spill] sm:$0xff] %v5025_v60  ;;  %7425 = vst [vmem:[#allocation10_spill] sm:$0xff] %v5050_v28 }
  0x84   : > { %992 = vmatmul.mubr.f32.gmra.mxu0 %v4908_v27  ;;  %1347 = vmatprep.subr.mxu0 %v4840_v51 }
  0x85   : > { %996 = vmatprep.mubr.f32.mxu0 %v4961_v58  ;;  %1546 = vmatprep.subr.mxu1 %v4840_v51 }
  0x86   : > { %1217 = vmatmul.mubr.f32.gmra.mxu1 %v4968_v4  ;;  %1348 = vmatpush2.msra.mxu0 %v797_v11  ;;  %v606_v11 = vrot.slane %v4993_v31, 2 }
  0x87   : > { %1221 = vmatprep.mubr.f32.mxu1 %v4949_v2  ;;  %1547 = vmatpush1.msra.mxu1 %v810_v12  ;;  %v5034_v12 = vld [vmem:[#allocation2 + $0xf8] sm:$0xff] }
  0x88   : > { %997 = vmatmul.mubr.f32.gmra.mxu0 %v4902_v22  ;;  %1548 = vmatprep.subr.mxu1 %v4840_v51  ;;  %7423 = vst [vmem:[#allocation8_spill] sm:$0xff] %v5034_v12  ;;  %v498_v38 = vrot.slane %v5034_v12, 1  ;;  %v5059_v49 = vsel %vm559_vm1, %v605_v8, %v606_v11 }
  0x89   : > { %1001 = vmatprep.mubr.f32.mxu0 %v4982_v14  ;;  %1549 = vmatpush1.msra.mxu1 %v809_v19  ;;  %v5040_v19 = vld [vmem:[#allocation2 + $0xf0] sm:$0xff]  ;;  %7426 = vst [vmem:[#allocation11_spill] sm:$0xff] %v5059_v49 }
  0x8a   : > { %1222 = vmatmul.mubr.f32.gmra.mxu1 %v4989_v21  ;;  %1349 = vmatprep.subr.mxu0 %v4840_v51  ;;  %7424 = vst [vmem:[#allocation9_spill] sm:$0xff] %v5040_v19 }
  0x8b   : > { %1226 = vmatprep.mubr.f32.mxu1 %v4996_v32  ;;  %1550 = vmatprep.subr.mxu1 %v4840_v51 }
  0x8c   : > { %1002 = vmatmul.mubr.f32.gmra.mxu0 %v4953_v54  ;;  %1551 = vmatpush1.msra.mxu1 %v808_v33  ;;  %v497_v33 = vrot.slane %v5040_v19, 1 }
  0x8d   : > { %1006 = vmatprep.mubr.f32.mxu0 %v5005_v36  ;;  %1350 = vmatpush2.msra.mxu0 %v796_v44  ;;  %v805_v44 = vld [vmem:[%s7305_s1 + $0x318] sm:$0xff] }
  0x8e   : > { %1227 = vmatmul.mubr.f32.gmra.mxu1 %v5015_v45  ;;  %1552 = vmatprep.subr.mxu1 %v4840_v51  ;;  %v5069_v0 = vsel %vm446_vm0, %v497_v33, %v498_v38  ;;  %v5085_v33 = vld [vmem:[#allocation2 + $0x108] sm:$0xff] }
  0x8f   : > { %1231 = vmatprep.mubr.f32.mxu1 %v4993_v31  ;;  %1553 = vmatpush1.msra.mxu1 %v807_v56  ;;  %v608_v56 = vrot.slane %v373_v50, 2  ;;  %v794_v50 = vld [vmem:[%s7305_s1 + $0x2c0] sm:$0xff]  ;;  %7429 = vst [vmem:[#allocation14_spill] sm:$0xff] %v5085_v33 }
  0x90   : > { %1007 = vmatmul.mubr.f32.gmra.mxu0 %v4949_v2  ;;  %1351 = vmatprep.subr.mxu0 %v4840_v51 }
  0x91   : > { %1011 = vmatprep.mubr.f32.mxu0 %v5025_v60  ;;  %1554 = vmatprep.subr.mxu1 %v4840_v51  ;;  %v376_v60 = vld [vmem:[#allocation2 + $0x100] sm:$0x3] }
  0x92   : > { %1232 = vmatmul.mubr.f32.gmra.mxu1 %v5030_v5  ;;  %1352 = vmatpush2.msra.mxu0 %v795_v16  ;;  %v500_v8 = vrot.slane %v376_v60, 1  ;;  %v5077_v16 = vsel %vm559_vm1, %v606_v11, %v608_v56  ;;  %v502_v56 = vrot.slane %v5085_v33, 1  ;;  %v379_v5 = vld [vmem:[#allocation2 + $0x118] sm:$0x3] }
  0x93   : > { %1236 = vmatprep.mubr.f32.mxu1 %v5040_v19  ;;  %1555 = vmatpush1.msra.mxu1 %v806_v25  ;;  %7427 = vst [vmem:[#allocation12_spill] sm:$0xff] %v5077_v16  ;;  %v610_v25 = vrot.slane %v5040_v19, 2 }
  0x94   : > { %1012 = vmatmul.mubr.f32.gmra.mxu0 %v4996_v32  ;;  %1556 = vmatprep.subr.mxu1 %v4840_v51  ;;  %v5093_v11 = vsel %vm446_vm0, %v498_v38, %v500_v8  ;;  %v802_v38 = vld [vmem:[%s7305_s1 + $0x300] sm:$0xff]  ;;  %v833_v8 = vld [vmem:[%s7305_s1 + $0x3f8] sm:$0xff] }
  0x95   : > { %1016 = vmatprep.mubr.f32.mxu0 %v5050_v28  ;;  %1557 = vmatpush1.msra.mxu1 %v805_v44  ;;  %v611_v44 = vrot.slane %v5034_v12, 2  ;;  %v803_v28 = vld [vmem:[%s7305_s1 + $0x308] sm:$0xff]  ;;  %7430 = vst [vmem:[#allocation15_spill] sm:$0xff] %v5093_v11 }
  0x96   : > { %1237 = vmatmul.mubr.f32.gmra.mxu1 %v5059_v49  ;;  %1353 = vmatprep.subr.mxu0 %v4840_v51  ;;  %v5081_v49 = vld [vmem:[#allocation2 + $0x110] sm:$0xff] }
  0x97   : > { %1241 = vmatprep.mubr.f32.mxu1 %v5034_v12  ;;  %7428 = vst [vmem:[#allocation13_spill] sm:$0xff] %v5081_v49  ;;  %1558 = vmatprep.subr.mxu1 %v4840_v51  ;;  %v503_v32 = vrot.slane %v5081_v49, 1 }
  0x98   : > { %1017 = vmatmul.mubr.f32.gmra.mxu0 %v4993_v31  ;;  %1559 = vmatpush1.msra.mxu1 %v804_v39  ;;  %v5100_v39 = vsel %vm559_vm1, %v610_v25, %v611_v44  ;;  %v613_v31 = vrot.slane %v376_v60, 2 }
  0x99   : > { %1021 = vmatprep.mubr.f32.mxu0 %v5069_v0  ;;  %1354 = vmatpush2.msra.mxu0 %v794_v50  ;;  %7431 = vst [vmem:[#allocation16_spill] sm:$0xff] %v5100_v39  ;;  %v793_v50 = vld [vmem:[%s7305_s1 + $0x2b8] sm:$0xff]  ;;  %v5114_v60 = vsel %vm446_vm0, %v502_v56, %v503_v32  ;;  %v5128_v56 = vld [vmem:[#allocation2 + $0x120] sm:$0xff] }
  0x9a   : > { %1242 = vmatmul.mubr.f32.gmra.mxu1 %v5077_v16  ;;  %1560 = vmatprep.subr.mxu1 %v4840_v51  ;;  %7432 = vst [vmem:[#allocation17_spill] sm:$0xff] %v5114_v60  ;;  %v5121_v25 = vsel %vm559_vm1, %v611_v44, %v613_v31  ;;  %v5125_v16 = vld [vmem:[#allocation2 + $0x128] sm:$0xff]  ;;  %7435 = vst [vmem:[#allocation20_spill] sm:$0xff] %v5128_v56  ;;  %v832_v31 = vld [vmem:[%s7305_s1 + $0x3f0] sm:$0xff] }
  0x9b   : > { %1246 = vmatprep.mubr.f32.mxu1 %v5085_v33  ;;  %1561 = vmatpush1.msra.mxu1 %v803_v28  ;;  %v505_v28 = vrot.slane %v379_v5, 1  ;;  %7433 = vst [vmem:[#allocation18_spill] sm:$0xff] %v5121_v25  ;;  %7434 = vst [vmem:[#allocation19_spill] sm:$0xff] %v5125_v16 }
  0x9c   : > { %1022 = vmatmul.mubr.f32.gmra.mxu0 %v5040_v19  ;;  %1355 = vmatprep.subr.mxu0 %v4840_v51  ;;  %v616_v19 = vrot.slane %v5081_v49, 2 }
  0x9d   : > { %1026 = vmatprep.mubr.f32.mxu0 %v5093_v11  ;;  %1562 = vmatprep.subr.mxu1 %v4840_v51  ;;  %v615_v11 = vrot.slane %v5085_v33, 2  ;;  %v5137_v44 = vsel %vm446_vm0, %v503_v32, %v505_v28  ;;  %v831_v32 = vld [vmem:[%s7305_s1 + $0x3e8] sm:$0xff] }
  0x9e   : > { %1247 = vmatmul.mubr.f32.gmra.mxu1 %v5100_v39  ;;  %1356 = vmatpush2.msra.mxu0 %v793_v50  ;;  %7436 = vst [vmem:[#allocation21_spill] sm:$0xff] %v5137_v44  ;;  %v507_v50 = vrot.slane %v5128_v56, 1  ;;  %v5166_v39 = vld [vmem:[#allocation2 + $0x140] sm:$0xff] }
  0x9f   : > { %1251 = vmatprep.mubr.f32.mxu1 %v5081_v49  ;;  %1563 = vmatpush1.msra.mxu1 %v802_v38  ;;  %v508_v38 = vrot.slane %v5125_v16, 1  ;;  %7440 = vst [vmem:[#allocation25_spill] sm:$0xff] %v5166_v39 }
  0xa0   : > { %1027 = vmatmul.mubr.f32.gmra.mxu0 %v5034_v12  ;;  %1564 = vmatprep.subr.mxu1 %v4840_v51  ;;  %v618_v12 = vrot.slane %v379_v5, 2 }
  0xa1   : > { %1031 = vmatprep.mubr.f32.mxu0 %v5114_v60  ;;  %1565 = vmatpush2.msra.mxu1 %v833_v8  ;;  %v792_v60 = vld [vmem:[%s7305_s1 + $0x2b0] sm:$0xff]  ;;  %v5147_v8 = vsel %vm559_vm1, %v615_v11, %v616_v19  ;;  %v5157_v28 = vsel %vm446_vm0, %v507_v50, %v508_v38  ;;  %v5172_v50 = vld [vmem:[#allocation2 + $0x138] sm:$0xff] }
  0xa2   : > { %1252 = vmatmul.mubr.f32.gmra.mxu1 %v5121_v25  ;;  %1357 = vmatprep.subr.mxu0 %v4840_v51  ;;  %7437 = vst [vmem:[#allocation22_spill] sm:$0xff] %v5147_v8  ;;  %v382_v25 = vld [vmem:[#allocation2 + $0x130] sm:$0x3]  ;;  %7438 = vst [vmem:[#allocation23_spill] sm:$0xff] %v5157_v28  ;;  %v5162_v5 = vsel %vm559_vm1, %v616_v19, %v618_v12  ;;  %v830_v12 = vld [vmem:[%s7305_s1 + $0x3e0] sm:$0xff] }
  0xa3   : > { %1256 = vmatprep.mubr.f32.mxu1 %v5128_v56  ;;  %1566 = vmatprep.subr.mxu1 %v4840_v51  ;;  %v510_v11 = vrot.slane %v382_v25, 1  ;;  %7439 = vst [vmem:[#allocation24_spill] sm:$0xff] %v5162_v5  ;;  %7441 = vst [vmem:[#allocation26_spill] sm:$0xff] %v5172_v50 }
  0xa4   : > { %1032 = vmatmul.mubr.f32.gmra.mxu0 %v5085_v33  ;;  %1567 = vmatpush2.msra.mxu1 %v832_v31  ;;  %v620_v31 = vrot.slane %v5128_v56, 2  ;;  %v621_v33 = vrot.slane %v5125_v16, 2 }
  0xa5   : > { %1036 = vmatprep.mubr.f32.mxu0 %v5137_v44  ;;  %1358 = vmatpush2.msra.mxu0 %v792_v60  ;;  %v791_v60 = vld [vmem:[%s7305_s1 + $0x2a8] sm:$0xff]  ;;  %v5182_v19 = vsel %vm446_vm0, %v508_v38, %v510_v11  ;;  %v623_v44 = vrot.slane %v382_v25, 2  ;;  %v828_v38 = vld [vmem:[%s7305_s1 + $0x3d0] sm:$0xff]  ;;  %v790_v25 = vld [vmem:[%s7305_s1 + $0x2a0] sm:$0xff] }
  0xa6   : > { %1257 = vmatmul.mubr.f32.gmra.mxu1 %v5147_v8  ;;  %1568 = vmatprep.subr.mxu1 %v4840_v51  ;;  %7442 = vst [vmem:[#allocation27_spill] sm:$0xff] %v5182_v19  ;;  %v829_v8 = vld [vmem:[%s7305_s1 + $0x3d8] sm:$0xff] }
  0xa7   : > { %1261 = vmatprep.mubr.f32.mxu1 %v5125_v16  ;;  %1569 = vmatpush2.msra.mxu1 %v831_v32  ;;  %v512_v32 = vrot.slane %v5172_v50, 1 }
  0xa8   : > { %1037 = vmatmul.mubr.f32.gmra.mxu0 %v5081_v49  ;;  %1359 = vmatprep.subr.mxu0 %v4840_v51  ;;  %v513_v49 = vrot.slane %v5166_v39, 1 }
  0xa9   : > { %1041 = vmatprep.mubr.f32.mxu0 %v5157_v28  ;;  %1570 = vmatprep.subr.mxu1 %v4840_v51  ;;  %v5191_v28 = vsel %vm559_vm1, %v620_v31, %v621_v33 }
  0xaa   : > { %1262 = vmatmul.mubr.f32.gmra.mxu1 %v5162_v5  ;;  %1360 = vmatpush2.msra.mxu0 %v791_v60  ;;  %7443 = vst [vmem:[#allocation28_spill] sm:$0xff] %v5191_v28  ;;  %v385_v5 = vld [vmem:[#allocation2 + $0x148] sm:$0x3]  ;;  %v5201_v11 = vsel %vm446_vm0, %v512_v32, %v513_v49  ;;  %v625_v60 = vrot.slane %v5172_v50, 2  ;;  %v5214_v32 = vld [vmem:[#allocation2 + $0x158] sm:$0xff] }
  0xab   : > { %1266 = vmatprep.mubr.f32.mxu1 %v5172_v50  ;;  %1571 = vmatpush2.msra.mxu1 %v830_v12  ;;  %v515_v31 = vrot.slane %v385_v5, 1  ;;  %v626_v12 = vrot.slane %v5166_v39, 2  ;;  %7445 = vst [vmem:[#allocation30_spill] sm:$0xff] %v5214_v32 }
  0xac   : > { %1042 = vmatmul.mubr.f32.gmra.mxu0 %v5128_v56  ;;  %1572 = vmatprep.subr.mxu1 %v4840_v51  ;;  %v628_v56 = vrot.slane %v385_v5, 2 }
  0xad   : > { %1046 = vmatprep.mubr.f32.mxu0 %v5182_v19  ;;  %1573 = vmatpush2.msra.mxu1 %v829_v8  ;;  %v5209_v8 = vsel %vm559_vm1, %v621_v33, %v623_v44  ;;  %v827_v19 = vld [vmem:[%s7305_s1 + $0x3c8] sm:$0xff]  ;;  %v5225_v33 = vsel %vm446_vm0, %v513_v49, %v515_v31  ;;  %v826_v49 = vld [vmem:[%s7305_s1 + $0x3c0] sm:$0xff]  ;;  %v825_v31 = vld [vmem:[%s7305_s1 + $0x3b8] sm:$0xff] }
  0xae   : > { %1267 = vmatmul.mubr.f32.gmra.mxu1 %v5191_v28  ;;  %1361 = vmatprep.subr.mxu0 %v4840_v51  ;;  %7444 = vst [vmem:[#allocation29_spill] sm:$0xff] %v5209_v8  ;;  %v5217_v28 = vld [vmem:[#allocation2 + $0x150] sm:$0xff]  ;;  %7446 = vst [vmem:[#allocation31_spill] sm:$0xff] %v5225_v33 }
  0xaf   : > { %1271 = vmatprep.mubr.f32.mxu1 %v5166_v39  ;;  %1574 = vmatprep.subr.mxu1 %v4840_v51  ;;  %v517_v44 = vrot.slane %v5217_v28, 1 }
  0xb0   : > { %1047 = vmatmul.mubr.f32.gmra.mxu0 %v5125_v16  ;;  %1575 = vmatpush2.msra.mxu1 %v828_v38  ;;  %v518_v16 = vrot.slane %v5214_v32, 1  ;;  %v5232_v38 = vsel %vm559_vm1, %v625_v60, %v626_v12  ;;  %v5253_v60 = vsel %vm559_vm1, %v626_v12, %v628_v56  ;;  %v824_v56 = vld [vmem:[%s7305_s1 + $0x3b0] sm:$0xff] }
  0xb1   : > { %1051 = vmatprep.mubr.f32.mxu0 %v5201_v11  ;;  %1362 = vmatpush2.msra.mxu0 %v790_v25  ;;  %7447 = vst [vmem:[#allocation32_spill] sm:$0xff] %v5232_v38  ;;  %v789_v25 = vld [vmem:[%s7305_s1 + $0x298] sm:$0xff]  ;;  %7449 = vst [vmem:[#allocation34_spill] sm:$0xff] %v5253_v60 }
  0xb2   : > { %1272 = vmatmul.mubr.f32.gmra.mxu1 %v5209_v8  ;;  %1576 = vmatprep.subr.mxu1 %v4840_v51  ;;  %v388_v8 = vld [vmem:[#allocation2 + $0x160] sm:$0x3]  ;;  %v5246_v5 = vsel %vm446_vm0, %v517_v44, %v518_v16  ;;  %v5260_v44 = vld [vmem:[#allocation2 + $0x168] sm:$0xff] }
  0xb3   : > { %1276 = vmatprep.mubr.f32.mxu1 %v5217_v28  ;;  %1577 = vmatpush2.msra.mxu1 %v827_v19  ;;  %7448 = vst [vmem:[#allocation33_spill] sm:$0xff] %v5246_v5  ;;  %v520_v19 = vrot.slane %v388_v8, 1 }
  0xb4   : > { %1052 = vmatmul.mubr.f32.gmra.mxu0 %v5172_v50  ;;  %1363 = vmatprep.subr.mxu0 %v4840_v51  ;;  %v631_v50 = vrot.slane %v5214_v32, 2 }
  0xb5   : > { %1056 = vmatprep.mubr.f32.mxu0 %v5225_v33  ;;  %1578 = vmatprep.subr.mxu1 %v4840_v51  ;;  %v630_v33 = vrot.slane %v5217_v28, 2  ;;  %v5269_v12 = vsel %vm446_vm0, %v518_v16, %v520_v19  ;;  %v391_v16 = vld [vmem:[#allocation2 + $0x178] sm:$0x3]  ;;  %v823_v19 = vld [vmem:[%s7305_s1 + $0x3a8] sm:$0xff] }
  0xb6   : > { %1277 = vmatmul.mubr.f32.gmra.mxu1 %v5232_v38  ;;  %1364 = vmatpush2.msra.mxu0 %v789_v25  ;;  %v5257_v38 = vld [vmem:[#allocation2 + $0x170] sm:$0xff]  ;;  %7450 = vst [vmem:[#allocation35_spill] sm:$0xff] %v5269_v12 }
  0xb7   : > { %1281 = vmatprep.mubr.f32.mxu1 %v5214_v32  ;;  %1579 = vmatpush2.msra.mxu1 %v826_v49  ;;  %v788_v25 = vld [vmem:[%s7305_s1 + $0x290] sm:$0xff]  ;;  %v522_v49 = vrot.slane %v5260_v44, 1 }
  0xb8   : > { %1057 = vmatmul.mubr.f32.gmra.mxu0 %v5166_v39  ;;  %1580 = vmatprep.subr.mxu1 %v4840_v51  ;;  %v525_v39 = vrot.slane %v391_v16, 1 }
  0xb9   : > { %1061 = vmatprep.mubr.f32.mxu0 %v5246_v5  ;;  %1581 = vmatpush2.msra.mxu1 %v825_v31  ;;  %v523_v5 = vrot.slane %v5257_v38, 1  ;;  %v5279_v31 = vsel %vm559_vm1, %v630_v33, %v631_v50 }
  0xba   : > { %1282 = vmatmul.mubr.f32.gmra.mxu1 %v5253_v60  ;;  %1365 = vmatprep.subr.mxu0 %v4840_v51  ;;  %7451 = vst [vmem:[#allocation36_spill] sm:$0xff] %v5279_v31  ;;  %v633_v60 = vrot.slane %v388_v8, 2 }
  0xbb   : > { %1286 = vmatprep.mubr.f32.mxu1 %v5260_v44  ;;  %1582 = vmatprep.subr.mxu1 %v4840_v51  ;;  %v5290_v33 = vsel %vm446_vm0, %v522_v49, %v523_v5  ;;  %v5303_v49 = vld [vmem:[#allocation2 + $0x180] sm:$0xff] }
  0xbc   : > { %1062 = vmatmul.mubr.f32.gmra.mxu0 %v5217_v28  ;;  %1583 = vmatpush2.msra.mxu1 %v824_v56  ;;  %v5294_v8 = vsel %vm559_vm1, %v631_v50, %v633_v60  ;;  %v787_v56 = vld [vmem:[%s7305_s1 + $0x288] sm:$0xff]  ;;  %v822_v50 = vld [vmem:[%s7305_s1 + $0x3a0] sm:$0xff]  ;;  %v5312_v60 = vsel %vm446_vm0, %v523_v5, %v525_v39  ;;  %v820_v39 = vld [vmem:[%s7305_s1 + $0x390] sm:$0xff] }
  0xbd   : > { %1066 = vmatprep.mubr.f32.mxu0 %v5269_v12  ;;  %1366 = vmatpush2.msra.mxu0 %v788_v25  ;;  %7452 = vst [vmem:[#allocation37_spill] sm:$0xff] %v5294_v8  ;;  %v635_v25 = vrot.slane %v5260_v44, 2  ;;  %v638_v12 = vrot.slane %v391_v16, 2  ;;  %v786_v5 = vld [vmem:[%s7305_s1 + $0x280] sm:$0xff] }
  0xbe   : > { %1287 = vmatmul.mubr.f32.gmra.mxu1 %v5279_v31  ;;  %1584 = vmatprep.subr.mxu1 %v4840_v51  ;;  %v636_v31 = vrot.slane %v5257_v38, 2 }
  0xbf   : > { %1291 = vmatprep.mubr.f32.mxu1 %v5257_v38  ;;  %1585 = vmatpush2.msra.mxu1 %v823_v19  ;;  %v821_v19 = vld [vmem:[%s7305_s1 + $0x398] sm:$0xff] }
  0xc0   : > { %1067 = vmatmul.mubr.f32.gmra.mxu0 %v5214_v32  ;;  %1367 = vmatprep.subr.mxu0 %v4840_v51  ;;  %v5319_v32 = vsel %vm559_vm1, %v635_v25, %v636_v31  ;;  %v5337_v16 = vsel %vm559_vm1, %v636_v31, %v638_v12  ;;  %v849_v25 = vld [vmem:[%s7305_s1 + $0x478] sm:$0xff]  ;;  %v818_v12 = vld [vmem:[%s7305_s1 + $0x380] sm:$0xff]  ;;  %v848_v31 = vld [vmem:[%s7305_s1 + $0x470] sm:$0xff] }
  0xc1   : > { %1071 = vmatprep.mubr.f32.mxu0 %v5290_v33  ;;  %1586 = vmatprep.subr.mxu1 %v4840_v51 }
  0xc2   : > { %1292 = vmatmul.mubr.f32.gmra.mxu1 %v5294_v8  ;;  %1368 = vmatpush2.msra.mxu0 %v787_v56  ;;  %v5323_v8 = vld [vmem:[#allocation2 + $0x188] sm:$0xff] }
  0xc3   : > { %1296 = vmatprep.mubr.f32.mxu1 %v5303_v49  ;;  %1587 = vmatpush2.msra.mxu1 %v822_v50  ;;  %v819_v56 = vld [vmem:[%s7305_s1 + $0x388] sm:$0xff]  ;;  %v4201_v50 = vld [vmem:[#allocation2 + $0x38] sm:$0xff] }
  0xc4   : > { %1072 = vmatmul.mubr.f32.gmra.mxu0 %v5260_v44  ;;  %1588 = vmatprep.subr.mxu1 %v4840_v51 }
  0xc5   : > { %1076 = vmatprep.mubr.f32.mxu0 %v5312_v60  ;;  %1589 = vmatpush2.msra.mxu1 %v821_v19  ;;  %v7462_v19 = vld [vmem:[#allocation16_spill] sm:$0xff] }
  0xc6   : > { %1297 = vmatmul.mubr.f32.gmra.mxu1 %v5319_v32  ;;  %1369 = vmatprep.subr.mxu0 %v4840_v51 }
  0xc7   : > { %1590 = vmatprep.subr.mxu1 %v4840_v51  ;;  %1301 = vmatprep.mubr.f32.mxu1 %v5323_v8 }
  0xc8   : > { %1077 = vmatmul.mubr.f32.gmra.mxu0 %v5257_v38  ;;  %1591 = vmatpush2.msra.mxu1 %v820_v39 }
  0xc9   : > { %1370 = vmatpush2.msra.mxu0 %v786_v5  ;;  %1592 = vmatprep.subr.mxu1 %v4840_v51 }
  0xca   : > { %1302 = vmatmul.mubr.f32.gmra.mxu1 %v5337_v16  ;;  %1371 = vmatprep.mubr.f32.mxu0 %v4706_v59  ;;  %v846_v59 = vld [vmem:[%s7305_s1 + $0x460] sm:$0xff] }
  0xcb   : > { %1593 = vmatpush2.msra.mxu1 %v819_v56  ;;  %4031 = vmatprep.subr.mxu0 %v849_v25  ;;  %v7463_v56 = vld [vmem:[#allocation8_spill] sm:$0xff] }
  0xcc   : > { %1372 = vmatmul.mubr.f32.vlgmr.msra.gmra.mxu0 %v4679_v46  ;;  %1594 = vmatprep.subr.mxu1 %v4840_v51  ;;  %v847_v46 = vld [vmem:[%s7305_s1 + $0x468] sm:$0xff] }
  0xcd   : > { %1595 = vmatpush2.msra.mxu1 %v818_v12  ;;  %1596 = vmatprep.mubr.f32.mxu1 %v4715_v63  ;;  %v7464_v12 = vld [vmem:[#allocation17_spill] sm:$0xff] }
  0xce   : > { %4032 = vmatpush3.msra.mxu0 %v849_v25  ;;  %1597 = vmatmul.mubr.f32.vlgmr.msra.gmra.mxu1 %v4689_v53  ;;  %v845_v53 = vld [vmem:[%s7305_s1 + $0x458] sm:$0xff] }
  0xcf   : > { %1376 = vmatprep.mubr.f32.mxu0 %v4723_v3  ;;  %1601 = vmatprep.mubr.f32.mxu1 %v4739_v9  ;;  %v843_v3 = vld [vmem:[%s7305_s1 + $0x448] sm:$0xff] }
  0xd0   : > { %1377 = vmatmul.mubr.f32.gmra.mxu0 %v4697_v55  ;;  %4033 = vmatprep.subr.mxu0 %v848_v31  ;;  %v844_v55 = vld [vmem:[%s7305_s1 + $0x450] sm:$0xff] }
  0xd1   : > { %1381 = vmatprep.mubr.f32.mxu0 %v4749_v13  ;;  %4034 = vmatpush3.msra.mxu0 %v848_v31 }
  0xd2   : > { %1602 = vmatmul.mubr.f32.gmra.mxu1 %v4201_v50  ;;  %4035 = vmatprep.subr.mxu0 %v847_v46  ;;  %v7465_v50 = vld [vmem:[#allocation18_spill] sm:$0xff] }
  0xd3   : > { %1606 = vmatprep.mubr.f32.mxu1 %v4759_v17  ;;  %4036 = vmatpush3.msra.mxu0 %v847_v46 }
  0xd4   : > { %1382 = vmatmul.mubr.f32.gmra.mxu0 %v4715_v63  ;;  %4037 = vmatprep.subr.mxu0 %v846_v59  ;;  %v842_v63 = vld [vmem:[%s7305_s1 + $0x440] sm:$0xff] }
  0xd5   : > { %1386 = vmatprep.mubr.f32.mxu0 %v4767_v20  ;;  %4038 = vmatpush3.msra.mxu0 %v846_v59 }
  0xd6   : > { %1607 = vmatmul.mubr.f32.gmra.mxu1 %v4730_v7  ;;  %4039 = vmatprep.subr.mxu0 %v845_v53  ;;  %v841_v7 = vld [vmem:[%s7305_s1 + $0x438] sm:$0xff] }
  0xd7   : > { %1611 = vmatprep.mubr.f32.mxu1 %v4783_v26  ;;  %4040 = vmatpush3.msra.mxu0 %v845_v53 }
  0xd8   : > { %1387 = vmatmul.mubr.f32.gmra.mxu0 %v4739_v9  ;;  %4041 = vmatprep.subr.mxu0 %v844_v55  ;;  %v840_v9 = vld [vmem:[%s7305_s1 + $0x430] sm:$0xff] }
  0xd9   : > { %1391 = vmatprep.mubr.f32.mxu0 %v4793_v30  ;;  %4042 = vmatpush3.msra.mxu0 %v844_v55 }
  0xda   : > { %1612 = vmatmul.mubr.f32.gmra.mxu1 %v4727_v6  ;;  %4043 = vmatprep.subr.mxu0 %v843_v3  ;;  %v839_v6 = vld [vmem:[%s7305_s1 + $0x428] sm:$0xff] }
  0xdb   : > { %1616 = vmatprep.mubr.f32.mxu1 %v4803_v34  ;;  %4044 = vmatpush3.msra.mxu0 %v843_v3  ;;  %v7466_v3 = vld [vmem:[#allocation14_spill] sm:$0xff] }
  0xdc   : > { %1392 = vmatmul.mubr.f32.gmra.mxu0 %v4759_v17  ;;  %4045 = vmatprep.subr.mxu0 %v842_v63  ;;  %v838_v17 = vld [vmem:[%s7305_s1 + $0x420] sm:$0xff] }
  0xdd   : > { %1396 = vmatprep.mubr.f32.mxu0 %v4811_v37  ;;  %4046 = vmatpush3.msra.mxu0 %v842_v63 }
  0xde   : > { %1617 = vmatmul.mubr.f32.gmra.mxu1 %v4774_v24  ;;  %4047 = vmatprep.subr.mxu0 %v841_v7  ;;  %v837_v24 = vld [vmem:[%s7305_s1 + $0x418] sm:$0xff] }
  0xdf   : > { %1621 = vmatprep.mubr.f32.mxu1 %v4827_v43  ;;  %4048 = vmatpush3.msra.mxu0 %v841_v7  ;;  %v7467_v7 = vld [vmem:[#allocation21_spill] sm:$0xff] }
  0xe0   : > { %1397 = vmatmul.mubr.f32.gmra.mxu0 %v4783_v26  ;;  %4049 = vmatprep.subr.mxu0 %v840_v9  ;;  %v836_v26 = vld [vmem:[%s7305_s1 + $0x410] sm:$0xff] }
  0xe1   : > { %1401 = vmatprep.mubr.f32.mxu0 %v4837_v48  ;;  %4050 = vmatpush3.msra.mxu0 %v840_v9 }
  0xe2   : > { %1622 = vmatmul.mubr.f32.gmra.mxu1 %v4771_v23  ;;  %4051 = vmatprep.subr.mxu0 %v839_v6  ;;  %v835_v23 = vld [vmem:[%s7305_s1 + $0x408] sm:$0xff] }
  0xe3   : > { %1626 = vmatprep.mubr.f32.mxu1 %v4849_v52  ;;  %4052 = vmatpush3.msra.mxu0 %v839_v6 }
  0xe4   : > { %1402 = vmatmul.mubr.f32.gmra.mxu0 %v4803_v34  ;;  %4053 = vmatprep.subr.mxu0 %v838_v17  ;;  %v834_v34 = vld [vmem:[%s7305_s1 + $0x400] sm:$0xff] }
  0xe5   : > { %1406 = vmatprep.mubr.f32.mxu0 %v4857_v57  ;;  %4054 = vmatpush3.msra.mxu0 %v838_v17 }
  0xe6   : > { %1627 = vmatmul.mubr.f32.gmra.mxu1 %v4818_v41  ;;  %4055 = vmatprep.subr.mxu0 %v837_v24  ;;  %v7454_v41 = vld [vmem:[#allocation7_spill] sm:$0xff] }
  0xe7   : > { %1631 = vmatprep.mubr.f32.mxu1 %v4873_v1  ;;  %4056 = vmatpush3.msra.mxu0 %v837_v24  ;;  %v7468_v24 = vld [vmem:[#allocation22_spill] sm:$0xff] }
  0xe8   : > { %1407 = vmatmul.mubr.f32.gmra.mxu0 %v4827_v43  ;;  %4057 = vmatprep.subr.mxu0 %v836_v26  ;;  %v7455_v43 = vld [vmem:[#allocation5_spill] sm:$0xff] }
  0xe9   : > { %1411 = vmatprep.mubr.f32.mxu0 %v4883_v10  ;;  %4058 = vmatpush3.msra.mxu0 %v836_v26 }
  0xea   : > { %1632 = vmatmul.mubr.f32.gmra.mxu1 %v4815_v40  ;;  %4059 = vmatprep.subr.mxu0 %v835_v23  ;;  %v7453_v40 = vld [vmem:[#allocation6_spill] sm:$0xff] }
  0xeb   : > { %1636 = vmatprep.mubr.f32.mxu1 %v4893_v15  ;;  %4060 = vmatpush3.msra.mxu0 %v835_v23 }
  0xec   : > { %1412 = vmatmul.mubr.f32.gmra.mxu0 %v4849_v52  ;;  %4061 = vmatprep.subr.mxu0 %v834_v34  ;;  %v7457_v52 = vld [vmem:[#allocation11_spill] sm:$0xff] }
  0xed   : > { %1416 = vmatprep.mubr.f32.mxu0 %v4898_v18  ;;  %4062 = vmatpush3.msra.mxu0 %v834_v34  ;;  %v7469_v34 = vld [vmem:[#allocation13_spill] sm:$0xff] }
  0xee   : > { %1637 = vmatmul.mubr.f32.gmra.mxu1 %v4864_v62  ;;  %2612 = vmatprep.subr.mxu1 %v4840_v51  ;;  %v5466_v62 = vld [vmem:[%s7306_s2] ss:$0 sm:$0xff] }
  0xef   : > { %1641 = vmatprep.mubr.f32.mxu1 %v4918_v29  ;;  %2837 = vmatprep.subr.mxu0 %v4840_v51  ;;  %v7456_v51 = vld [vmem:[#allocation10_spill] sm:$0xff] }
  0xf0   : > { %1417 = vmatmul.mubr.f32.gmra.mxu0 %v4873_v1 }
  0xf1   : > { %1421 = vmatprep.mubr.f32.mxu0 %v4927_v35 }
  0xf2   : > { %1642 = vmatmul.mubr.f32.gmra.mxu1 %v4861_v61  ;;  %v7458_v61 = vld [vmem:[#allocation4_spill] sm:$0xff] }
  0xf3   : > { %1646 = vmatprep.mubr.f32.mxu1 %v4937_v42 }
  0xf4   : > { %1422 = vmatmul.mubr.f32.gmra.mxu0 %v4893_v15 }
  0xf5   : > { %1426 = vmatprep.mubr.f32.mxu0 %v4945_v47 }
  0xf6   : > { %1647 = vmatmul.mubr.f32.gmra.mxu1 %v4908_v27 }
  0xf7   : > { %1651 = vmatprep.mubr.f32.mxu1 %v4961_v58 }
  0xf8   : > { %1427 = vmatmul.mubr.f32.gmra.mxu0 %v4918_v29 }
  0xf9   : > { %1431 = vmatprep.mubr.f32.mxu0 %v4968_v4 }
  0xfa   : > { %1652 = vmatmul.mubr.f32.gmra.mxu1 %v4902_v22  ;;  %v7459_v22 = vld [vmem:[#allocation12_spill] sm:$0xff] }
  0xfb   : > { %1656 = vmatprep.mubr.f32.mxu1 %v4982_v14 }
  0xfc   : > { %1432 = vmatmul.mubr.f32.gmra.mxu0 %v4937_v42  ;;  %v7460_v42 = vld [vmem:[#allocation9_spill] sm:$0xff] }
  0xfd   : > { %1436 = vmatprep.mubr.f32.mxu0 %v4989_v21 }
  0xfe   : > { %1657 = vmatmul.mubr.f32.gmra.mxu1 %v4953_v54  ;;  %v7461_v54 = vld [vmem:[#allocation15_spill] sm:$0xff] }
  0xff   : > { %1661 = vmatprep.mubr.f32.mxu1 %v5005_v36 }
 0x100   : > { %1437 = vmatmul.mubr.f32.gmra.mxu0 %v4961_v58 }
 0x101   : > { %1441 = vmatprep.mubr.f32.mxu0 %v5015_v45 }
 0x102   : > { %1662 = vmatmul.mubr.f32.gmra.mxu1 %v4949_v2 }
 0x103   : > { %1666 = vmatprep.mubr.f32.mxu1 %v7453_v40 }
 0x104   : > { %1442 = vmatmul.mubr.f32.gmra.mxu0 %v4982_v14 }
 0x105   : > { %1446 = vmatprep.mubr.f32.mxu0 %v7454_v41 }
 0x106   : > { %1667 = vmatmul.mubr.f32.gmra.mxu1 %v7455_v43  ;;  %v7470_v43 = vld [vmem:[#allocation23_spill] sm:$0xff] }
 0x107   : > { %1671 = vmatprep.mubr.f32.mxu1 %v7456_v51 }
 0x108   : > { %1447 = vmatmul.mubr.f32.gmra.mxu0 %v5005_v36 }
 0x109   : > { %1451 = vmatprep.mubr.f32.mxu0 %v7457_v52 }
 0x10a   : > { %1672 = vmatmul.mubr.f32.gmra.mxu1 %v7458_v61 }
 0x10b   : > { %1676 = vmatprep.mubr.f32.mxu1 %v5069_v0 }
 0x10c   : > { %v923_v1 = vpop.f32.mrf.mxu0  ;;  %1452 = vmatmul.mubr.f32.gmra.mxu0 %v7453_v40 }
 0x10d   : > { %v924_v15 = vadd.f32 %v5466_v62, %v923_v1  ;;  %1456 = vmatprep.mubr.f32.mxu0 %v7459_v22  ;;  %v5501_v1 = vld [vmem:[#allocation2] sm:$0xff] }
 0x10e   : > { %v925_v27 = vpop.f32.mrf.mxu0  ;;  %v1148_v29 = vpop.f32.mrf.mxu1  ;;  %1677 = vmatmul.mubr.f32.gmra.mxu1 %v7460_v42 }
 0x10f   : > { %v5473_v2 = vadd.f32 %v1148_v29, %v924_v15  ;;  %1681 = vmatprep.mubr.f32.mxu1 %v7461_v54  ;;  %v7471_v27 = vld [vmem:[#allocation24_spill] sm:$0xff]  ;;  %v2475_v29 = vld [vmem:[%s7307_s3 + $0x70] sm:$0xff] }
 0x110   : > { %v928_v58 = vpop.f32.mrf.mxu0  ;;  %v1150_v14 = vpop.f32.mrf.mxu1  ;;  %1457 = vmatmul.mubr.f32.gmra.mxu0 %v7456_v51 }
 0x111   : > { %v929_v36 = vadd.f32 %v5466_v62, %v928_v58  ;;  %1461 = vmatprep.mubr.f32.mxu0 %v7462_v19  ;;  %v7472_v58 = vld [vmem:[#allocation20_spill] sm:$0xff] }
 0x112   : > { %v930_v39 = vpop.f32.mrf.mxu0  ;;  %v1153_v5 = vpop.f32.mrf.mxu1  ;;  %1682 = vmatmul.mubr.f32.gmra.mxu1 %v7463_v56 }
 0x113   : > { %v5480_v25 = vadd.f32 %v1153_v5, %v929_v36  ;;  %1686 = vmatprep.mubr.f32.mxu1 %v7464_v12  ;;  %v7473_v36 = vld [vmem:[#allocation27_spill] sm:$0xff] }
 0x114   : > { %v933_v31 = vpop.f32.mrf.mxu0  ;;  %v1155_v46 = vpop.f32.mrf.mxu1  ;;  %1462 = vmatmul.mubr.f32.gmra.mxu0 %v5069_v0  ;;  %v2476_v0 = vld [vmem:[%s7307_s3 + $0x78] sm:$0xff] }
 0x115   : > { %v934_v59 = vadd.f32 %v5466_v62, %v933_v31  ;;  %1466 = vmatprep.mubr.f32.mxu0 %v7465_v50  ;;  %2613 = vmatpush1.msra.mxu1 %v2476_v0  ;;  %v2474_v31 = vld [vmem:[%s7307_s3 + $0x68] sm:$0xff] }
 0x116   : > { %v935_v53 = vpop.f32.mrf.mxu0  ;;  %v1158_v55 = vpop.f32.mrf.mxu1  ;;  %1687 = vmatmul.mubr.f32.gmra.mxu1 %v7466_v3  ;;  %2614 = vmatprep.subr.mxu1 %v5501_v1 }
 0x117   : > { %v5487_v63 = vadd.f32 %v1158_v55, %v934_v59  ;;  %1691 = vmatprep.mubr.f32.mxu1 %v7467_v7  ;;  %2615 = vmatpush1.msra.mxu1 %v2475_v29  ;;  %v7475_v53 = vld [vmem:[#allocation19_spill] sm:$0xff]  ;;  %v7479_v29 = vld [vmem:[#allocation32_spill] sm:$0xff] }
 0x118   : > { %v938_v9 = vpop.f32.mrf.mxu0  ;;  %v1160_v6 = vpop.f32.mrf.mxu1  ;;  %1467 = vmatmul.mubr.f32.gmra.mxu0 %v7461_v54  ;;  %2616 = vmatprep.subr.mxu1 %v5501_v1 }
 0x119   : > { %v939_v17 = vadd.f32 %v5466_v62, %v938_v9  ;;  %1471 = vmatprep.mubr.f32.mxu0 %v7468_v24  ;;  %2617 = vmatpush1.msra.mxu1 %v2474_v31  ;;  %v7476_v6 = vld [vmem:[#allocation29_spill] sm:$0xff] }
 0x11a   : > { %v940_v26 = vpop.f32.mrf.mxu0  ;;  %v1163_v23 = vpop.f32.mrf.mxu1  ;;  %1692 = vmatmul.mubr.f32.gmra.mxu1 %v7469_v34  ;;  %2618 = vmatprep.subr.mxu1 %v5501_v1 }
 0x11b   : > { %v5497_v40 = vadd.f32 %v1163_v23, %v939_v17  ;;  %1696 = vmatprep.mubr.f32.mxu1 %v7470_v43  ;;  %v2473_v17 = vld [vmem:[%s7307_s3 + $0x60] sm:$0xff]  ;;  %v7477_v23 = vld [vmem:[#allocation26_spill] sm:$0xff] }
 0x11c   : > { %v943_v51 = vpop.f32.mrf.mxu0  ;;  %v1165_v61 = vpop.f32.mrf.mxu1  ;;  %1472 = vmatmul.mubr.f32.gmra.mxu0 %v7464_v12  ;;  %v7474_v12 = vld [vmem:[#allocation28_spill] sm:$0xff]  ;;  %2619 = vmatpush1.msra.mxu1 %v2473_v17  ;;  %v7483_v17 = vld [vmem:[#allocation35_spill] sm:$0xff] }
 0x11d   : > { %v944_v15 = vadd.f32 %v5466_v62, %v943_v51  ;;  %1476 = vmatprep.mubr.f32.mxu0 %v7471_v27  ;;  %v7478_v51 = vld [vmem:[#allocation31_spill] sm:$0xff]  ;;  %2620 = vmatprep.subr.mxu1 %v5501_v1 }
 0x11e   : > { %v945_v42 = vpop.f32.mrf.mxu0  ;;  %v1168_v54 = vpop.f32.mrf.mxu1  ;;  %1697 = vmatmul.mubr.f32.gmra.mxu1 %v7472_v58 }
 0x11f   : > { %v5510_v14 = vadd.f32 %v1168_v54, %v944_v15  ;;  %1701 = vmatprep.mubr.f32.mxu1 %v7473_v36  ;;  %v2472_v42 = vld [vmem:[%s7307_s3 + $0x58] sm:$0xff] }
 0x120   : > { %v948_v39 = vpop.f32.mrf.mxu0  ;;  %v1170_v5 = vpop.f32.mrf.mxu1  ;;  %1477 = vmatmul.mubr.f32.gmra.mxu0 %v7467_v7  ;;  %2621 = vmatpush1.msra.mxu1 %v2472_v42 }
 0x121   : > { %v949_v56 = vadd.f32 %v5466_v62, %v948_v39  ;;  %1481 = vmatprep.mubr.f32.mxu0 %v7474_v12  ;;  %v7480_v39 = vld [vmem:[#allocation25_spill] sm:$0xff]  ;;  %2622 = vmatprep.subr.mxu1 %v5501_v1 }
 0x122   : > { %v950_v46 = vpop.f32.mrf.mxu0  ;;  %v1173_v59 = vpop.f32.mrf.mxu1  ;;  %1702 = vmatmul.mubr.f32.gmra.mxu1 %v7475_v53  ;;  %v2471_v53 = vld [vmem:[%s7307_s3 + $0x50] sm:$0xff] }
 0x123   : > { %v5521_v55 = vadd.f32 %v1173_v59, %v949_v56  ;;  %1706 = vmatprep.mubr.f32.mxu1 %v5201_v11  ;;  %v7481_v56 = vld [vmem:[#allocation33_spill] sm:$0xff]  ;;  %v7482_v59 = vld [vmem:[#allocation34_spill] sm:$0xff]  ;;  %2623 = vmatpush1.msra.mxu1 %v2471_v53  ;;  %v2469_v53 = vld [vmem:[%s7307_s3 + $0x40] sm:$0xff] }
 0x124   : > { %v953_v3 = vpop.f32.mrf.mxu0  ;;  %v1175_v7 = vpop.f32.mrf.mxu1  ;;  %1482 = vmatmul.mubr.f32.gmra.mxu0 %v7470_v43  ;;  %2624 = vmatprep.subr.mxu1 %v5501_v1 }
 0x125   : > { %v954_v9 = vadd.f32 %v5466_v62, %v953_v3  ;;  %1486 = vmatprep.mubr.f32.mxu0 %v7476_v6 }
 0x126   : > { %v955_v0 = vpop.f32.mrf.mxu0  ;;  %v1178_v26 = vpop.f32.mrf.mxu1  ;;  %1707 = vmatmul.mubr.f32.gmra.mxu1 %v7477_v23  ;;  %v7484_v23 = vld [vmem:[#allocation36_spill] sm:$0xff] }
 0x127   : > { %v5532_v34 = vadd.f32 %v1178_v26, %v954_v9  ;;  %1711 = vmatprep.mubr.f32.mxu1 %v7478_v51 }
 0x128   : > { %v958_v43 = vpop.f32.mrf.mxu0  ;;  %v1180_v61 = vpop.f32.mrf.mxu1  ;;  %1487 = vmatmul.mubr.f32.gmra.mxu0 %v7473_v36 }
 0x129   : > { %v959_v15 = vadd.f32 %v5466_v62, %v958_v43  ;;  %1491 = vmatprep.mubr.f32.mxu0 %v7479_v29  ;;  %v2470_v43 = vld [vmem:[%s7307_s3 + $0x48] sm:$0xff] }
 0x12a   : > { %v960_v54 = vpop.f32.mrf.mxu0  ;;  %v1183_v58 = vpop.f32.mrf.mxu1  ;;  %1712 = vmatmul.mubr.f32.gmra.mxu1 %v7480_v39  ;;  %v676_v39 = vrot.slane %v5323_v8, 1 }
 0x12b   : > { %v5543_v5 = vadd.f32 %v1183_v58, %v959_v15  ;;  %1716 = vmatprep.mubr.f32.mxu1 %v7481_v56  ;;  %v7485_v15 = vld [vmem:[#allocation30_spill] sm:$0xff]  ;;  %2625 = vmatpush1.msra.mxu1 %v2470_v43  ;;  %v675_v58 = vrot.slane %v5303_v49, 1 }
 0x12c   : > { %v963_v36 = vpop.f32.mrf.mxu0  ;;  %v1185_v31 = vpop.f32.mrf.mxu1  ;;  %1492 = vmatmul.mubr.f32.gmra.mxu0 %v5201_v11  ;;  %2626 = vmatprep.subr.mxu1 %v5501_v1 }
 0x12d   : > { %v964_v46 = vadd.f32 %v5466_v62, %v963_v36  ;;  %1496 = vmatprep.mubr.f32.mxu0 %v7482_v59  ;;  %v7486_v31 = vld [vmem:[#allocation37_spill] sm:$0xff]  ;;  %2627 = vmatpush1.msra.mxu1 %v2469_v53 }
 0x12e   : > { %v965_v3 = vpop.f32.mrf.mxu0  ;;  %v1188_v7 = vpop.f32.mrf.mxu1  ;;  %1717 = vmatmul.mubr.f32.gmra.mxu1 %v5217_v28  ;;  %2628 = vmatprep.subr.mxu1 %v5501_v1 }
 0x12f   : > { %v5554_v9 = vadd.f32 %v1188_v7, %v964_v46  ;;  %1721 = vmatprep.mubr.f32.mxu1 %v7483_v17  ;;  %v394_v46 = vld [vmem:[#allocation2 + $0x190] sm:$0x3] }
 0x130   : > { %v968_v11 = vpop.f32.mrf.mxu0  ;;  %v1190_v0 = vpop.f32.mrf.mxu1  ;;  %1497 = vmatmul.mubr.f32.gmra.mxu0 %v7478_v51  ;;  %v678_v43 = vrot.slane %v394_v46, 1 }
 0x131   : > { %v969_v26 = vadd.f32 %v5466_v62, %v968_v11  ;;  %1501 = vmatprep.mubr.f32.mxu0 %v7484_v23 }
 0x132   : > { %v970_v28 = vpop.f32.mrf.mxu0  ;;  %v1193_v61 = vpop.f32.mrf.mxu1  ;;  %1722 = vmatmul.mubr.f32.gmra.mxu1 %v7485_v15  ;;  %v679_v53 = vsel %vm446_vm0, %v676_v39, %v678_v43 }
 0x133   : > { %v5565_v42 = vadd.f32 %v1193_v61, %v969_v26  ;;  %1726 = vmatprep.mubr.f32.mxu1 %v5290_v33  ;;  %v677_v26 = vsel %vm446_vm0, %v675_v58, %v676_v39  ;;  %v685_v39 = vrot.slane %v394_v46, 2 }
 0x134   : > { %v973_v51 = vpop.f32.mrf.mxu0  ;;  %v1195_v54 = vpop.f32.mrf.mxu1  ;;  %1502 = vmatmul.mubr.f32.gmra.mxu0 %v7481_v56 }
 0x135   : > { %v974_v36 = vadd.f32 %v5466_v62, %v973_v51  ;;  %1506 = vmatprep.mubr.f32.mxu0 %v7486_v31  ;;  %v682_v51 = vrot.slane %v5303_v49, 2 }
 0x136   : > { %v975_v3 = vpop.f32.mrf.mxu0  ;;  %v1198_v7 = vpop.f32.mrf.mxu1  ;;  %1727 = vmatmul.mubr.f32.gmra.mxu1 %v5260_v44  ;;  %v2468_v44 = vld [vmem:[%s7307_s3 + $0x38] sm:$0xff] }
 0x137   : > { %v5578_v56 = vadd.f32 %v1198_v7, %v974_v36  ;;  %1731 = vmatprep.mubr.f32.mxu1 %v5312_v60  ;;  %2629 = vmatpush1.msra.mxu1 %v2468_v44  ;;  %v5597_v3 = vrot.slane %v5501_v1, 1  ;;  %v5602_v7 = vld [vmem:[#allocation2 + $0x1a8] sm:$0x3] }
 0x138   : > { %v978_v11 = vpop.f32.mrf.mxu0  ;;  %v1200_v0 = vpop.f32.mrf.mxu1  ;;  %1507 = vmatmul.mubr.f32.gmra.mxu0 %v7483_v17  ;;  %v683_v17 = vrot.slane %v5323_v8, 2  ;;  %2630 = vmatprep.subr.mxu1 %v5501_v1 }
 0x139   : > { %v979_v28 = vadd.f32 %v5466_v62, %v978_v11  ;;  %1511 = vmatprep.mubr.f32.mxu0 %v5319_v32  ;;  %v2467_v11 = vld [vmem:[%s7307_s3 + $0x30] sm:$0xff] }
 0x13a   : > { %v980_v61 = vpop.f32.mrf.mxu0  ;;  %v1203_v15 = vpop.f32.mrf.mxu1  ;;  %1732 = vmatmul.mubr.f32.gmra.mxu1 %v5257_v38 }
 0x13b   : > { %v5592_v54 = vadd.f32 %v1203_v15, %v979_v28  ;;  %1736 = vmatprep.mubr.f32.mxu1 %v677_v26  ;;  %2631 = vmatpush1.msra.mxu1 %v2467_v11  ;;  %v695_v15 = vrot.slane %v5602_v7, 1 }
 0x13c   : > { %v983_v58 = vpop.f32.mrf.mxu0  ;;  %v1205_v36 = vpop.f32.mrf.mxu1  ;;  %1512 = vmatmul.mubr.f32.gmra.mxu0 %v5290_v33  ;;  %v5609_v33 = vsel %vm559_vm1, %v682_v51, %v683_v17  ;;  %2632 = vmatprep.subr.mxu1 %v5501_v1 }
 0x13d   : > { %v984_v38 = vadd.f32 %v5466_v62, %v983_v58  ;;  %1516 = vmatprep.mubr.f32.mxu0 %v5337_v16  ;;  %v5623_v36 = vsel %vm559_vm1, %v683_v17, %v685_v39 }
 0x13e   : > { %v985_v0 = vpop.f32.mrf.mxu0  ;;  %v1208_v28 = vpop.f32.mrf.mxu1  ;;  %1737 = vmatmul.mubr.f32.gmra.mxu1 %v5303_v49  ;;  %v2466_v49 = vld [vmem:[%s7307_s3 + $0x28] sm:$0xff] }
 0x13f   : > { %v5611_v43 = vadd.f32 %v1208_v28, %v984_v38  ;;  %1741 = vmatprep.mubr.f32.mxu1 %v679_v53  ;;  %2633 = vmatpush1.msra.mxu1 %v2466_v49  ;;  %v696_v0 = vsel %vm446_vm0, %v5597_v3, %v695_v15 }
 0x140   : > { %v988_v44 = vpop.f32.mrf.mxu0  ;;  %v1210_v61 = vpop.f32.mrf.mxu1  ;;  %1517 = vmatmul.mubr.f32.gmra.mxu0 %v5312_v60  ;;  %2634 = vmatprep.subr.mxu1 %v5501_v1 }
 0x141   : > { %v989_v58 = vadd.f32 %v5466_v62, %v988_v44  ;;  %1521 = vmatprep.mubr.f32.mxu0 %v5609_v33 }
 0x142   : > { %v990_v46 = vpop.f32.mrf.mxu0  ;;  %v1213_v51 = vpop.f32.mrf.mxu1  ;;  %1742 = vmatmul.mubr.f32.gmra.mxu1 %v5323_v8  ;;  %v2465_v8 = vld [vmem:[%s7307_s3 + $0x20] sm:$0xff] }
 0x143   : > { %v5625_v60 = vadd.f32 %v1213_v51, %v989_v58  ;;  %1746 = vmatprep.mubr.f32.mxu1 %v5597_v3  ;;  %2635 = vmatpush1.msra.mxu1 %v2465_v8  ;;  %v2464_v58 = vld [vmem:[%s7307_s3 + $0x18] sm:$0xff] }
 0x144   : > { %v993_v38 = vpop.f32.mrf.mxu0  ;;  %v1215_v11 = vpop.f32.mrf.mxu1  ;;  %1522 = vmatmul.mubr.f32.gmra.mxu0 %v677_v26  ;;  %2636 = vmatprep.subr.mxu1 %v5501_v1 }
 0x145   : > { %v994_v28 = vadd.f32 %v5466_v62, %v993_v38  ;;  %1526 = vmatprep.mubr.f32.mxu0 %v5623_v36  ;;  %2637 = vmatpush1.msra.mxu1 %v2464_v58 }
 0x146   : > { %v995_v17 = vpop.f32.mrf.mxu0  ;;  %v1218_v39 = vpop.f32.mrf.mxu1  ;;  %1747 = vmatmul.mubr.f32.gmra.mxu1 %v5501_v1  ;;  %2638 = vmatprep.subr.mxu1 %v5501_v1 }
 0x147   : > { %v5637_v44 = vadd.f32 %v1218_v39, %v994_v28  ;;  %1751 = vmatprep.mubr.f32.mxu1 %v696_v0 }
 0x148   : > { %v998_v26 = vpop.f32.mrf.mxu0  ;;  %v1220_v61 = vpop.f32.mrf.mxu1  ;;  %1527 = vmatmul.mubr.f32.gmra.mxu0 %v679_v53 }
 0x149   : > { %v999_v15 = vadd.f32 %v5466_v62, %v998_v26  ;;  %4063 = vmatprep.mubr.f32.mxu0 %v4749_v13  ;;  %v2463_v13 = vld [vmem:[%s7307_s3 + $0x10] sm:$0xff] }
 0x14a   : > { %v1000_v49 = vpop.f32.mrf.mxu0  ;;  %v1223_v46 = vpop.f32.mrf.mxu1  ;;  %1752 = vmatmul.mubr.f32.gmra.mxu1 %v5501_v1 }
 0x14b   : > { %v5646_v51 = vadd.f32 %v1223_v46, %v999_v15  ;;  %2639 = vmatpush1.msra.mxu1 %v2463_v13  ;;  %2676 = vmatprep.mubr.f32.mxu1 %v5597_v3 }
 0x14c   : > { %v1003_v38 = vpop.f32.mrf.mxu0  ;;  %v1225_v11 = vpop.f32.mrf.mxu1  ;;  %4064 = vmatmul.mubr.f32.vlgmr.msra.gmra.mxu0 %v4767_v20  ;;  %2640 = vmatprep.subr.mxu1 %v5501_v1 }
 0x14d   : > { %v1004_v53 = vadd.f32 %v5466_v62, %v1003_v38  ;;  %4066 = vmatprep.mubr.f32.mxu0 %v4793_v30  ;;  %v2462_v30 = vld [vmem:[%s7307_s3 + $0x8] sm:$0xff] }
 0x14e   : > { %v1005_v0 = vpop.f32.mrf.mxu0  ;;  %v1228_v28 = vpop.f32.mrf.mxu1  ;;  %2641 = vmatpush1.msra.mxu1 %v2462_v30  ;;  %v2491_v30 = vld [vmem:[%s7307_s3 + $0xf0] sm:$0xff] }
 0x14f   : > { %v5655_v8 = vadd.f32 %v1228_v28, %v1004_v53  ;;  %2642 = vmatprep.subr.mxu1 %v5501_v1 }
 0x150   : > { %v1008_v17 = vpop.f32.mrf.mxu0  ;;  %v1230_v39 = vpop.f32.mrf.mxu1  ;;  %4067 = vmatmul.mubr.f32.gmra.mxu0 %v4811_v37 }
 0x151   : > { %v1009_v20 = vadd.f32 %v5466_v62, %v1008_v17  ;;  %4069 = vmatprep.mubr.f32.mxu0 %v4837_v48  ;;  %v2461_v48 = vld [vmem:[%s7307_s3] sm:$0xff] }
 0x152   : > { %v1010_v26 = vpop.f32.mrf.mxu0  ;;  %v1233_v61 = vpop.f32.mrf.mxu1  ;;  %2643 = vmatpush1.msra.mxu1 %v2461_v48 }
 0x153   : > { %v5664_v15 = vadd.f32 %v1233_v61, %v1009_v20  ;;  %2644 = vmatprep.subr.mxu1 %v5501_v1 }
 0x154   : > { %v1013_v58 = vpop.f32.mrf.mxu0  ;;  %v1235_v49 = vpop.f32.mrf.mxu1  ;;  %4070 = vmatmul.mubr.f32.gmra.mxu0 %v4857_v57 }
 0x155   : > { %v1014_v37 = vadd.f32 %v5466_v62, %v1013_v58  ;;  %4072 = vmatprep.mubr.f32.mxu0 %v4883_v10  ;;  %v2492_v10 = vld [vmem:[%s7307_s3 + $0xf8] sm:$0xff] }
 0x156   : > { %v1015_v46 = vpop.f32.mrf.mxu0  ;;  %v1238_v38 = vpop.f32.mrf.mxu1  ;;  %2645 = vmatpush2.msra.mxu1 %v2492_v10  ;;  %v2504_v10 = vld [vmem:[%s7307_s3 + $0x158] sm:$0xff] }
 0x157   : > { %v5673_v11 = vadd.f32 %v1238_v38, %v1014_v37  ;;  %2646 = vmatprep.subr.mxu1 %v5501_v1  ;;  %v2506_v37 = vld [vmem:[%s7307_s3 + $0x168] sm:$0xff] }
 0x158   : > { %v1018_v53 = vpop.f32.mrf.mxu0  ;;  %v1240_v13 = vpop.f32.mrf.mxu1  ;;  %4073 = vmatmul.mubr.f32.gmra.mxu0 %v4898_v18  ;;  %v2508_v18 = vld [vmem:[%s7307_s3 + $0x178] sm:$0xff]  ;;  %2647 = vmatpush2.msra.mxu1 %v2491_v30  ;;  %v2490_v46 = vld [vmem:[%s7307_s3 + $0xe8] sm:$0xff] }
 0x159   : > { %v1019_v57 = vadd.f32 %v5466_v62, %v1018_v53  ;;  %4075 = vmatprep.mubr.f32.mxu0 %v4927_v35  ;;  %2838 = vmatpush1.msra.mxu0 %v2508_v18  ;;  %v2502_v30 = vld [vmem:[%s7307_s3 + $0x148] sm:$0xff] }
 0x15a   : > { %v1020_v0 = vpop.f32.mrf.mxu0  ;;  %v1243_v28 = vpop.f32.mrf.mxu1  ;;  %2839 = vmatprep.subr.mxu0 %v5501_v1  ;;  %2648 = vmatprep.subr.mxu1 %v5501_v1 }
 0x15b   : > { %v5682_v17 = vadd.f32 %v1243_v28, %v1019_v57  ;;  %2649 = vmatpush2.msra.mxu1 %v2490_v46  ;;  %v2489_v28 = vld [vmem:[%s7307_s3 + $0xe0] sm:$0xff] }
 0x15c   : > { %v1023_v39 = vpop.f32.mrf.mxu0  ;;  %v1245_v20 = vpop.f32.mrf.mxu1  ;;  %4076 = vmatmul.mubr.f32.gmra.mxu0 %v4945_v47  ;;  %v2507_v47 = vld [vmem:[%s7307_s3 + $0x170] sm:$0xff]  ;;  %2650 = vmatprep.subr.mxu1 %v5501_v1 }
 0x15d   : > { %v1024_v35 = vadd.f32 %v5466_v62, %v1023_v39  ;;  %4078 = vmatprep.mubr.f32.mxu0 %v4968_v4  ;;  %2840 = vmatpush1.msra.mxu0 %v2507_v47 }
 0x15e   : > { %v1025_v26 = vpop.f32.mrf.mxu0  ;;  %v1248_v61 = vpop.f32.mrf.mxu1  ;;  %2841 = vmatprep.subr.mxu0 %v5501_v1  ;;  %2651 = vmatpush2.msra.mxu1 %v2489_v28  ;;  %v2486_v28 = vld [vmem:[%s7307_s3 + $0xc8] sm:$0xff] }
 0x15f   : > { %v5698_v58 = vadd.f32 %v1248_v61, %v1024_v35  ;;  %2842 = vmatpush1.msra.mxu0 %v2506_v37  ;;  %2652 = vmatprep.subr.mxu1 %v5501_v1  ;;  %v2488_v61 = vld [vmem:[%s7307_s3 + $0xd8] sm:$0xff] }
 0x160   : > { %v1028_v4 = vpop.f32.mrf.mxu0  ;;  %v1250_v49 = vpop.f32.mrf.mxu1  ;;  %4079 = vmatmul.mubr.f32.gmra.mxu0 %v4989_v21  ;;  %2843 = vmatprep.subr.mxu0 %v5501_v1  ;;  %v2505_v21 = vld [vmem:[%s7307_s3 + $0x160] sm:$0xff] }
 0x161   : > { %v1029_v48 = vadd.f32 %v5466_v62, %v1028_v4  ;;  %4081 = vmatprep.mubr.f32.mxu0 %v5015_v45  ;;  %2844 = vmatpush1.msra.mxu0 %v2505_v21 }
 0x162   : > { %v1030_v38 = vpop.f32.mrf.mxu0  ;;  %v1253_v53 = vpop.f32.mrf.mxu1  ;;  %2845 = vmatprep.subr.mxu0 %v5501_v1  ;;  %2653 = vmatpush2.msra.mxu1 %v2488_v61 }
 0x163   : > { %v5715_v13 = vadd.f32 %v1253_v53, %v1029_v48  ;;  %2846 = vmatpush1.msra.mxu0 %v2504_v10  ;;  %2654 = vmatprep.subr.mxu1 %v5501_v1  ;;  %v2500_v48 = vld [vmem:[%s7307_s3 + $0x138] sm:$0xff]  ;;  %v2487_v38 = vld [vmem:[%s7307_s3 + $0xd0] sm:$0xff]  ;;  %v2498_v10 = vld [vmem:[%s7307_s3 + $0x128] sm:$0xff] }
 0x164   : > { %v1033_v45 = vpop.f32.mrf.mxu0  ;;  %v1255_v57 = vpop.f32.mrf.mxu1  ;;  %4082 = vmatmul.mubr.f32.gmra.mxu0 %v7454_v41  ;;  %2847 = vmatprep.subr.mxu0 %v5501_v1  ;;  %v2503_v41 = vld [vmem:[%s7307_s3 + $0x150] sm:$0xff] }
 0x165   : > { %v1034_v0 = vadd.f32 %v5466_v62, %v1033_v45  ;;  %4084 = vmatprep.mubr.f32.mxu0 %v7457_v52  ;;  %2848 = vmatpush1.msra.mxu0 %v2503_v41 }
 0x166   : > { %v1035_v39 = vpop.f32.mrf.mxu0  ;;  %v1258_v20 = vpop.f32.mrf.mxu1  ;;  %2849 = vmatprep.subr.mxu0 %v5501_v1  ;;  %2655 = vmatpush2.msra.mxu1 %v2487_v38 }
 0x167   : > { %v5732_v18 = vadd.f32 %v1258_v20, %v1034_v0  ;;  %2850 = vmatpush1.msra.mxu0 %v2502_v30  ;;  %2656 = vmatprep.subr.mxu1 %v5501_v1 }
 0x168   : > { %v1038_v52 = vpop.f32.mrf.mxu0  ;;  %v1260_v35 = vpop.f32.mrf.mxu1  ;;  %4085 = vmatmul.mubr.f32.gmra.mxu0 %v7459_v22  ;;  %2851 = vmatprep.subr.mxu0 %v5501_v1  ;;  %v2501_v22 = vld [vmem:[%s7307_s3 + $0x140] sm:$0xff] }
 0x169   : > { %v1039_v26 = vadd.f32 %v5466_v62, %v1038_v52  ;;  %4087 = vmatprep.mubr.f32.mxu0 %v7462_v19  ;;  %2852 = vmatpush1.msra.mxu0 %v2501_v22  ;;  %v2496_v35 = vld [vmem:[%s7307_s3 + $0x118] sm:$0xff] }
 0x16a   : > { %v1040_v47 = vpop.f32.mrf.mxu0  ;;  %v1263_v4 = vpop.f32.mrf.mxu1  ;;  %2853 = vmatprep.subr.mxu0 %v5501_v1  ;;  %2657 = vmatpush2.msra.mxu1 %v2486_v28  ;;  %v5831_v28 = vrot.slane %v5501_v1, 2 }
 0x16b   : > { %v5749_v49 = vadd.f32 %v1263_v4, %v1039_v26  ;;  %2854 = vmatpush1.msra.mxu0 %v2500_v48  ;;  %2658 = vmatprep.subr.mxu1 %v5501_v1  ;;  %v2485_v26 = vld [vmem:[%s7307_s3 + $0xc0] sm:$0xff]  ;;  %v2484_v48 = vld [vmem:[%s7307_s3 + $0xb8] sm:$0xff] }
 0x16c   : > { %v1043_v19 = vpop.f32.mrf.mxu0  ;;  %v1265_v37 = vpop.f32.mrf.mxu1  ;;  %4088 = vmatmul.mubr.f32.gmra.mxu0 %v7465_v50  ;;  %2855 = vmatprep.subr.mxu0 %v5501_v1  ;;  %v2499_v50 = vld [vmem:[%s7307_s3 + $0x130] sm:$0xff] }
 0x16d   : > { %v1044_v46 = vadd.f32 %v5466_v62, %v1043_v19  ;;  %4090 = vmatprep.mubr.f32.mxu0 %v7468_v24  ;;  %2856 = vmatpush1.msra.mxu0 %v2499_v50  ;;  %v2494_v19 = vld [vmem:[%s7307_s3 + $0x108] sm:$0xff]  ;;  %v2524_v50 = vld [vmem:[%s7307_s3 + $0x1f8] sm:$0xff] }
 0x16e   : > { %v1045_v53 = vpop.f32.mrf.mxu0  ;;  %v1268_v21 = vpop.f32.mrf.mxu1  ;;  %2857 = vmatprep.subr.mxu0 %v5501_v1  ;;  %2659 = vmatpush2.msra.mxu1 %v2485_v26 }
 0x16f   : > { %v5766_v45 = vadd.f32 %v1268_v21, %v1044_v46  ;;  %2858 = vmatpush1.msra.mxu0 %v2498_v10  ;;  %2660 = vmatprep.subr.mxu1 %v5501_v1 }
 0x170   : > { %v1048_v24 = vpop.f32.mrf.mxu0  ;;  %v1270_v57 = vpop.f32.mrf.mxu1  ;;  %4091 = vmatmul.mubr.f32.gmra.mxu0 %v7471_v27  ;;  %2859 = vmatprep.subr.mxu0 %v5501_v1  ;;  %v2497_v27 = vld [vmem:[%s7307_s3 + $0x120] sm:$0xff] }
 0x171   : > { %v1049_v0 = vadd.f32 %v5466_v62, %v1048_v24  ;;  %4093 = vmatprep.mubr.f32.mxu0 %v7474_v12  ;;  %2860 = vmatpush1.msra.mxu0 %v2497_v27  ;;  %v2483_v57 = vld [vmem:[%s7307_s3 + $0xb0] sm:$0xff]  ;;  %v2522_v27 = vld [vmem:[%s7307_s3 + $0x1e8] sm:$0xff] }
 0x172   : > { %v1050_v39 = vpop.f32.mrf.mxu0  ;;  %v1273_v20 = vpop.f32.mrf.mxu1  ;;  %2861 = vmatprep.subr.mxu0 %v5501_v1  ;;  %2661 = vmatpush2.msra.mxu1 %v2484_v48 }
 0x173   : > { %v5783_v41 = vadd.f32 %v1273_v20, %v1049_v0  ;;  %2862 = vmatpush1.msra.mxu0 %v2496_v35  ;;  %2662 = vmatprep.subr.mxu1 %v5501_v1  ;;  %v2482_v35 = vld [vmem:[%s7307_s3 + $0xa8] sm:$0xff] }
 0x174   : > { %v1053_v12 = vpop.f32.mrf.mxu0  ;;  %v1275_v52 = vpop.f32.mrf.mxu1  ;;  %4094 = vmatmul.mubr.f32.gmra.mxu0 %v7476_v6  ;;  %2863 = vmatprep.subr.mxu0 %v5501_v1  ;;  %v2495_v6 = vld [vmem:[%s7307_s3 + $0x110] sm:$0xff] }
 0x175   : > { %v1054_v30 = vadd.f32 %v5466_v62, %v1053_v12  ;;  %4096 = vmatprep.mubr.f32.mxu0 %v7479_v29  ;;  %2864 = vmatpush1.msra.mxu0 %v2495_v6  ;;  %v702_v52 = vrot.slane %v5602_v7, 2 }
 0x176   : > { %v1055_v61 = vpop.f32.mrf.mxu0  ;;  %v1278_v47 = vpop.f32.mrf.mxu1  ;;  %2865 = vmatprep.subr.mxu0 %v5501_v1  ;;  %2663 = vmatpush2.msra.mxu1 %v2483_v57  ;;  %v2517_v57 = vld [vmem:[%s7307_s3 + $0x1c0] sm:$0xff] }
 0x177   : > { %v5800_v4 = vadd.f32 %v1278_v47, %v1054_v30  ;;  %2866 = vmatpush1.msra.mxu0 %v2494_v19  ;;  %2664 = vmatprep.subr.mxu1 %v5501_v1  ;;  %v2520_v47 = vld [vmem:[%s7307_s3 + $0x1d8] sm:$0xff] }
 0x178   : > { %v1058_v29 = vpop.f32.mrf.mxu0  ;;  %v1280_v22 = vpop.f32.mrf.mxu1  ;;  %4097 = vmatmul.mubr.f32.gmra.mxu0 %v7482_v59  ;;  %2867 = vmatprep.subr.mxu0 %v5501_v1  ;;  %v2493_v59 = vld [vmem:[%s7307_s3 + $0x100] sm:$0xff] }
 0x179   : > { %v1059_v37 = vadd.f32 %v5466_v62, %v1058_v29  ;;  %4099 = vmatprep.mubr.f32.mxu0 %v7484_v23  ;;  %2868 = vmatpush1.msra.mxu0 %v2493_v59  ;;  %v703_v29 = vsel %vm559_vm1, %v5831_v28, %v702_v52  ;;  %v2481_v22 = vld [vmem:[%s7307_s3 + $0xa0] sm:$0xff]  ;;  %v2518_v59 = vld [vmem:[%s7307_s3 + $0x1c8] sm:$0xff] }
 0x17a   : > { %v1060_v46 = vpop.f32.mrf.mxu0  ;;  %v1283_v38 = vpop.f32.mrf.mxu1  ;;  %2869 = vmatprep.subr.mxu0 %v5501_v1  ;;  %2665 = vmatpush2.msra.mxu1 %v2482_v35  ;;  %v2479_v35 = vld [vmem:[%s7307_s3 + $0x90] sm:$0xff] }
 0x17b   : > { %v5817_v53 = vadd.f32 %v1283_v38, %v1059_v37  ;;  %2870 = vmatpush2.msra.mxu0 %v2524_v50  ;;  %2666 = vmatprep.subr.mxu1 %v5501_v1  ;;  %v2519_v37 = vld [vmem:[%s7307_s3 + $0x1d0] sm:$0xff] }
 0x17c   : > { %v1063_v23 = vpop.f32.mrf.mxu0  ;;  %v1285_v21 = vpop.f32.mrf.mxu1  ;;  %4100 = vmatmul.mubr.f32.gmra.mxu0 %v7486_v31  ;;  %2871 = vmatprep.subr.mxu0 %v5501_v1  ;;  %v2523_v31 = vld [vmem:[%s7307_s3 + $0x1f0] sm:$0xff] }
 0x17d   : > { %v1064_v24 = vadd.f32 %v5466_v62, %v1063_v23  ;;  %4102 = vmatprep.mubr.f32.mxu0 %v5319_v32  ;;  %2872 = vmatpush2.msra.mxu0 %v2523_v31  ;;  %v2480_v21 = vld [vmem:[%s7307_s3 + $0x98] sm:$0xff] }
 0x17e   : > { %v1065_v10 = vpop.f32.mrf.mxu0  ;;  %v1288_v0 = vpop.f32.mrf.mxu1  ;;  %2873 = vmatprep.subr.mxu0 %v5501_v1  ;;  %2667 = vmatpush2.msra.mxu1 %v2481_v22  ;;  %v2516_v31 = vld [vmem:[%s7307_s3 + $0x1b8] sm:$0xff] }
 0x17f   : > { %v5837_v39 = vadd.f32 %v1288_v0, %v1064_v24  ;;  %2874 = vmatpush2.msra.mxu0 %v2522_v27  ;;  %2668 = vmatprep.subr.mxu1 %v5501_v1 }
 0x180   : > { %v1068_v32 = vpop.f32.mrf.mxu0  ;;  %v1290_v20 = vpop.f32.mrf.mxu1  ;;  %4103 = vmatmul.mubr.f32.gmra.mxu0 %v5337_v16  ;;  %2875 = vmatprep.subr.mxu0 %v5501_v1  ;;  %v2521_v16 = vld [vmem:[%s7307_s3 + $0x1e0] sm:$0xff] }
 0x181   : > { %v1069_v12 = vadd.f32 %v5466_v62, %v1068_v32  ;;  %4105 = vmatprep.mubr.f32.mxu0 %v5609_v33  ;;  %2876 = vmatpush2.msra.mxu0 %v2521_v16 }
 0x182   : > { %v1070_v30 = vpop.f32.mrf.mxu0  ;;  %v1293_v26 = vpop.f32.mrf.mxu1  ;;  %2877 = vmatprep.subr.mxu0 %v5501_v1  ;;  %2669 = vmatpush2.msra.mxu1 %v2480_v21  ;;  %v2511_v21 = vld [vmem:[%s7307_s3 + $0x190] sm:$0xff] }
 0x183   : > { %v5855_v61 = vadd.f32 %v1293_v26, %v1069_v12  ;;  %2878 = vmatpush2.msra.mxu0 %v2520_v47  ;;  %2670 = vmatprep.subr.mxu1 %v5501_v1  ;;  %v2515_v12 = vld [vmem:[%s7307_s3 + $0x1b0] sm:$0xff] }
 0x184   : > { %v1073_v7 = vpop.f32.mrf.mxu0  ;;  %v1295_v33 = vpop.f32.mrf.mxu1  ;;  %4106 = vmatmul.mubr.f32.gmra.mxu0 %v5623_v36  ;;  %2879 = vmatprep.subr.mxu0 %v5501_v1 }
 0x185   : > { %v1074_v6 = vadd.f32 %v5466_v62, %v1073_v7  ;;  %4108 = vmatprep.mubr.f32.mxu0 %v5831_v28  ;;  %2880 = vmatpush2.msra.mxu0 %v2519_v37  ;;  %v2478_v7 = vld [vmem:[%s7307_s3 + $0x88] sm:$0xff]  ;;  %v5929_v37 = vld [vmem:[#allocation3 + $0x10] sm:$0x3] }
 0x186   : > { %v1075_v19 = vpop.f32.mrf.mxu0  ;;  %v1298_v36 = vpop.f32.mrf.mxu1  ;;  %2881 = vmatprep.subr.mxu0 %v5501_v1  ;;  %2671 = vmatpush2.msra.mxu1 %v2479_v35  ;;  %v2540_v35 = vld [vmem:[%s7307_s3 + $0x278] sm:$0xff] }
 0x187   : > { %v5874_v48 = vadd.f32 %v1298_v36, %v1074_v6  ;;  %2882 = vmatpush2.msra.mxu0 %v2518_v59  ;;  %2672 = vmatprep.subr.mxu1 %v5501_v1  ;;  %v2513_v6 = vld [vmem:[%s7307_s3 + $0x1a0] sm:$0xff]  ;;  %v2512_v36 = vld [vmem:[%s7307_s3 + $0x198] sm:$0xff] }
 0x188   : > { %v1078_v46 = vpop.f32.mrf.mxu0  ;;  %v1300_v38 = vpop.f32.mrf.mxu1  ;;  %4109 = vmatmul.mubr.f32.gmra.mxu0 %v703_v29  ;;  %2883 = vmatprep.subr.mxu0 %v5501_v1 }
 0x189   : > { %v1079_v23 = vadd.f32 %v5466_v62, %v1078_v46  ;;  %2884 = vmatpush2.msra.mxu0 %v2517_v57  ;;  %2673 = vmatpush2.msra.mxu1 %v2478_v7  ;;  %v2206_v38 = vrot.slane %v5929_v37, 1 }
 0x18a   : > { %v1080_v50 = vpop.f32.mrf.mxu0  ;;  %v1303_v24 = vpop.f32.mrf.mxu1  ;;  %2885 = vmatprep.subr.mxu0 %v5501_v1  ;;  %2674 = vmatprep.subr.mxu1 %v5501_v1 }
 0x18b   : > { %v5889_v10 = vadd.f32 %v1303_v24, %v1079_v23  ;;  %2886 = vmatpush2.msra.mxu0 %v2516_v31 }
 0x18c   : > { %v1305_v62 = vpop.f32.mrf.mxu1  ;;  %v1373_v0 = vpop.f32.mrf.mxu0  ;;  %2887 = vmatprep.subr.mxu0 %v5501_v1 }
 0x18d   : > { %v1374_v32 = vadd.f32 %v1373_v0, %v5473_v2  ;;  %2888 = vmatpush2.msra.mxu0 %v2515_v12  ;;  %v2514_v2 = vld [vmem:[%s7307_s3 + $0x1a8] sm:$0xff] }
 0x18e   : > { %v1375_v20 = vpop.f32.mrf.mxu0  ;;  %v1598_v27 = vpop.f32.mrf.mxu1  ;;  %2889 = vmatprep.subr.mxu0 %v5501_v1  ;;  %v2510_v62 = vld [vmem:[%s7307_s3 + $0x188] sm:$0xff] }
 0x18f   : > { %v5901_v52 = vadd.f32 %v1598_v27, %v1374_v32  ;;  %2890 = vmatpush2.msra.mxu0 %v2514_v2 }
 0x190   : > { %v1378_v30 = vpop.f32.mrf.mxu0  ;;  %v1600_v26 = vpop.f32.mrf.mxu1  ;;  %2891 = vmatprep.subr.mxu0 %v5501_v1 }
 0x191   : > { %v1379_v16 = vadd.f32 %v1378_v30, %v5480_v25  ;;  %2892 = vmatpush2.msra.mxu0 %v2513_v6  ;;  %v2477_v25 = vld [vmem:[%s7307_s3 + $0x80] sm:$0xff] }
 0x192   : > { %v1380_v33 = vpop.f32.mrf.mxu0  ;;  %v1603_v47 = vpop.f32.mrf.mxu1  ;;  %2675 = vmatpush2.msra.mxu1 %v2477_v25  ;;  %2893 = vmatprep.subr.mxu0 %v5501_v1 }
 0x193   : > { %v5919_v29 = vadd.f32 %v1603_v47, %v1379_v16  ;;  %2894 = vmatpush2.msra.mxu0 %v2512_v36  ;;  %2677 = vmatmul.mubr.f32.vlgmr.msra.gmra.mxu1 %v5501_v1  ;;  %v2539_v47 = vld [vmem:[%s7307_s3 + $0x270] sm:$0xff] }
 0x194   : > { %v1383_v22 = vpop.f32.mrf.mxu0  ;;  %v1605_v19 = vpop.f32.mrf.mxu1  ;;  %2895 = vmatprep.subr.mxu0 %v5501_v1  ;;  %3062 = vmatprep.subr.mxu1 %v5501_v1 }
 0x195   : > { %v1384_v46 = vadd.f32 %v1383_v22, %v5487_v63  ;;  %2896 = vmatpush2.msra.mxu0 %v2511_v21  ;;  %v2207_v63 = vsel %vm446_vm0, %v5597_v3, %v2206_v38  ;;  %v2509_v3 = vld [vmem:[%s7307_s3 + $0x180] sm:$0xff]  ;;  %3063 = vmatpush1.msra.mxu1 %v2540_v35 }
 0x196   : > { %v1385_v59 = vpop.f32.mrf.mxu0  ;;  %v1608_v23 = vpop.f32.mrf.mxu1  ;;  %2897 = vmatprep.subr.mxu0 %v5501_v1  ;;  %2681 = vmatprep.mubr.f32.mxu1 %v2207_v63 }
 0x197   : > { %v5939_v50 = vadd.f32 %v1608_v23, %v1384_v46  ;;  %2898 = vmatpush2.msra.mxu0 %v2510_v62  ;;  %2682 = vmatmul.mubr.f32.gmra.mxu1 %v5501_v1  ;;  %v2538_v46 = vld [vmem:[%s7307_s3 + $0x268] sm:$0xff]  ;;  %v5977_v23 = vld [vmem:[#allocation2] sm:$0xff] }
 0x198   : > { %v1388_v24 = vpop.f32.mrf.mxu0  ;;  %v1610_v57 = vpop.f32.mrf.mxu1  ;;  %2899 = vmatprep.subr.mxu0 %v5501_v1  ;;  %3064 = vmatprep.subr.mxu1 %v5501_v1 }
 0x199   : > { %v1389_v0 = vadd.f32 %v1388_v24, %v5497_v40  ;;  %2900 = vmatpush2.msra.mxu0 %v2509_v3  ;;  %3065 = vmatpush1.msra.mxu1 %v2539_v47  ;;  %v2536_v3 = vld [vmem:[%s7307_s3 + $0x258] sm:$0xff] }
 0x19a   : > { %v1390_v31 = vpop.f32.mrf.mxu0  ;;  %v1613_v32 = vpop.f32.mrf.mxu1  ;;  %3287 = vmatprep.subr.mxu0 %v5501_v1  ;;  %3066 = vmatprep.subr.mxu1 %v5501_v1 }
 0x19b   : > { %v5954_v20 = vadd.f32 %v1613_v32, %v1389_v0  ;;  %3067 = vmatpush1.msra.mxu1 %v2538_v46 }
 0x19c   : > { %v1393_v27 = vpop.f32.mrf.mxu0  ;;  %v1615_v12 = vpop.f32.mrf.mxu1  ;;  %3068 = vmatprep.subr.mxu1 %v5977_v23 }
 0x19d   : > { %v1394_v40 = vadd.f32 %v1393_v27, %v5510_v14 }
 0x19e   : > { %v1395_v30 = vpop.f32.mrf.mxu0  ;;  %v1618_v26 = vpop.f32.mrf.mxu1 }
 0x19f   : > { %v5961_v2 = vadd.f32 %v1618_v26, %v1394_v40  ;;  %v2535_v26 = vld [vmem:[%s7307_s3 + $0x250] sm:$0xff] }
 0x1a0   : > { %v1398_v16 = vpop.f32.mrf.mxu0  ;;  %v1620_v7 = vpop.f32.mrf.mxu1 }
 0x1a1   : > { %v1399_v33 = vadd.f32 %v1398_v16, %v5521_v55 }
 0x1a2   : > { %v1400_v14 = vpop.f32.mrf.mxu0  ;;  %v1623_v6 = vpop.f32.mrf.mxu1 }
 0x1a3   : > { %v5968_v25 = vadd.f32 %v1623_v6, %v1399_v33  ;;  %v2534_v6 = vld [vmem:[%s7307_s3 + $0x248] sm:$0xff] }
 0x1a4   : > { %v1403_v22 = vpop.f32.mrf.mxu0  ;;  %v1625_v19 = vpop.f32.mrf.mxu1 }
 0x1a5   : > { %v1404_v36 = vadd.f32 %v1403_v22, %v5532_v34  ;;  %v2537_v34 = vld [vmem:[%s7307_s3 + $0x260] sm:$0xff] }
 0x1a6   : > { %v1405_v55 = vpop.f32.mrf.mxu0  ;;  %v1628_v38 = vpop.f32.mrf.mxu1  ;;  %3069 = vmatpush1.msra.mxu1 %v2537_v34 }
 0x1a7   : > { %v5975_v59 = vadd.f32 %v1628_v38, %v1404_v36  ;;  %3070 = vmatprep.subr.mxu1 %v5977_v23  ;;  %v2533_v38 = vld [vmem:[%s7307_s3 + $0x240] sm:$0xff] }
 0x1a8   : > { %v1408_v21 = vpop.f32.mrf.mxu0  ;;  %v1630_v63 = vpop.f32.mrf.mxu1  ;;  %3071 = vmatpush1.msra.mxu1 %v2536_v3 }
 0x1a9   : > { %v1409_v1 = vadd.f32 %v1408_v21, %v5543_v5  ;;  %3072 = vmatprep.subr.mxu1 %v5977_v23 }
 0x1aa   : > { %v1410_v24 = vpop.f32.mrf.mxu0  ;;  %v1633_v57 = vpop.f32.mrf.mxu1  ;;  %3073 = vmatpush1.msra.mxu1 %v2535_v26 }
 0x1ab   : > { %v5984_v62 = vadd.f32 %v1633_v57, %v1409_v1  ;;  %3074 = vmatprep.subr.mxu1 %v5977_v23  ;;  %v2532_v57 = vld [vmem:[%s7307_s3 + $0x238] sm:$0xff] }
 0x1ac   : > { %v1413_v0 = vpop.f32.mrf.mxu0  ;;  %v1635_v31 = vpop.f32.mrf.mxu1  ;;  %3075 = vmatpush1.msra.mxu1 %v2534_v6 }
 0x1ad   : > { %v1414_v32 = vadd.f32 %v1413_v0, %v5554_v9  ;;  %3076 = vmatprep.subr.mxu1 %v5977_v23 }
 0x1ae   : > { %v1415_v5 = vpop.f32.mrf.mxu0  ;;  %v1638_v27 = vpop.f32.mrf.mxu1  ;;  %3077 = vmatpush1.msra.mxu1 %v2533_v38 }
 0x1af   : > { %v5991_v12 = vadd.f32 %v1638_v27, %v1414_v32  ;;  %3078 = vmatprep.subr.mxu1 %v5977_v23  ;;  %v2531_v27 = vld [vmem:[%s7307_s3 + $0x230] sm:$0xff] }
 0x1b0   : > { %v1418_v40 = vpop.f32.mrf.mxu0  ;;  %v1640_v35 = vpop.f32.mrf.mxu1  ;;  %3079 = vmatpush1.msra.mxu1 %v2532_v57 }
 0x1b1   : > { %v1419_v30 = vadd.f32 %v1418_v40, %v5565_v42  ;;  %3080 = vmatprep.subr.mxu1 %v5977_v23 }
 0x1b2   : > { %v1420_v9 = vpop.f32.mrf.mxu0  ;;  %v1643_v16 = vpop.f32.mrf.mxu1  ;;  %3081 = vmatpush1.msra.mxu1 %v2531_v27 }
 0x1b3   : > { %v5998_v7 = vadd.f32 %v1643_v16, %v1419_v30  ;;  %3082 = vmatprep.subr.mxu1 %v5977_v23  ;;  %v2530_v16 = vld [vmem:[%s7307_s3 + $0x228] sm:$0xff] }
 0x1b4   : > { %v1423_v33 = vpop.f32.mrf.mxu0  ;;  %v1645_v47 = vpop.f32.mrf.mxu1  ;;  %3083 = vmatpush1.msra.mxu1 %v2530_v16 }
 0x1b5   : > { %v1424_v14 = vadd.f32 %v1423_v33, %v5578_v56  ;;  %3084 = vmatprep.subr.mxu1 %v5977_v23 }
 0x1b6   : > { %v1425_v42 = vpop.f32.mrf.mxu0  ;;  %v1648_v22 = vpop.f32.mrf.mxu1 }
 0x1b7   : > { %v6005_v19 = vadd.f32 %v1648_v22, %v1424_v14  ;;  %v2529_v22 = vld [vmem:[%s7307_s3 + $0x220] sm:$0xff] }
 0x1b8   : > { %v1428_v36 = vpop.f32.mrf.mxu0  ;;  %v1650_v46 = vpop.f32.mrf.mxu1  ;;  %3085 = vmatpush1.msra.mxu1 %v2529_v22 }
 0x1b9   : > { %v1429_v55 = vadd.f32 %v1428_v36, %v5592_v54  ;;  %3086 = vmatprep.subr.mxu1 %v5977_v23 }
 0x1ba   : > { %v1430_v56 = vpop.f32.mrf.mxu0  ;;  %v1653_v21 = vpop.f32.mrf.mxu1 }
 0x1bb   : > { %v6012_v63 = vadd.f32 %v1653_v21, %v1429_v55  ;;  %v2528_v21 = vld [vmem:[%s7307_s3 + $0x218] sm:$0xff] }
 0x1bc   : > { %v1433_v1 = vpop.f32.mrf.mxu0  ;;  %v1655_v34 = vpop.f32.mrf.mxu1  ;;  %3087 = vmatpush1.msra.mxu1 %v2528_v21 }
 0x1bd   : > { %v1434_v24 = vadd.f32 %v1433_v1, %v5611_v43  ;;  %3088 = vmatprep.subr.mxu1 %v5977_v23 }
 0x1be   : > { %v1435_v54 = vpop.f32.mrf.mxu0  ;;  %v1658_v0 = vpop.f32.mrf.mxu1 }
 0x1bf   : > { %v6019_v31 = vadd.f32 %v1658_v0, %v1434_v24  ;;  %v2527_v24 = vld [vmem:[%s7307_s3 + $0x210] sm:$0xff]  ;;  %v2526_v0 = vld [vmem:[%s7307_s3 + $0x208] sm:$0xff] }
 0x1c0   : > { %v1438_v32 = vpop.f32.mrf.mxu0  ;;  %v1660_v3 = vpop.f32.mrf.mxu1  ;;  %3089 = vmatpush1.msra.mxu1 %v2527_v24  ;;  %v2554_v24 = vld [vmem:[%s7307_s3 + $0x2e8] sm:$0xff] }
 0x1c1   : > { %v1439_v5 = vadd.f32 %v1438_v32, %v5625_v60  ;;  %3090 = vmatprep.subr.mxu1 %v5977_v23 }
 0x1c2   : > { %v1440_v43 = vpop.f32.mrf.mxu0  ;;  %v1663_v40 = vpop.f32.mrf.mxu1  ;;  %3091 = vmatpush1.msra.mxu1 %v2526_v0 }
 0x1c3   : > { %v6026_v35 = vadd.f32 %v1663_v40, %v1439_v5  ;;  %3092 = vmatprep.subr.mxu1 %v5977_v23 }
 0x1c4   : > { %v1443_v30 = vpop.f32.mrf.mxu0  ;;  %v1665_v26 = vpop.f32.mrf.mxu1 }
 0x1c5   : > { %v1444_v9 = vadd.f32 %v1443_v30, %v5637_v44 }
 0x1c6   : > { %v1445_v60 = vpop.f32.mrf.mxu0  ;;  %v1668_v33 = vpop.f32.mrf.mxu1 }
 0x1c7   : > { %v6033_v47 = vadd.f32 %v1668_v33, %v1444_v9 }
 0x1c8   : > { %v1448_v14 = vpop.f32.mrf.mxu0  ;;  %v1670_v6 = vpop.f32.mrf.mxu1 }
 0x1c9   : > { %v1449_v42 = vadd.f32 %v1448_v14, %v5646_v51  ;;  %v2556_v14 = vld [vmem:[%s7307_s3 + $0x2f8] sm:$0xff] }
 0x1ca   : > { %v1450_v44 = vpop.f32.mrf.mxu0  ;;  %v1673_v36 = vpop.f32.mrf.mxu1 }
 0x1cb   : > { %v6040_v46 = vadd.f32 %v1673_v36, %v1449_v42 }
 0x1cc   : > { %v1453_v55 = vpop.f32.mrf.mxu0  ;;  %v1675_v38 = vpop.f32.mrf.mxu1 }
 0x1cd   : > { %v1454_v56 = vadd.f32 %v1453_v55, %v5655_v8  ;;  %v2555_v55 = vld [vmem:[%s7307_s3 + $0x2f0] sm:$0xff] }
 0x1ce   : > { %v1455_v51 = vpop.f32.mrf.mxu0  ;;  %v1678_v1 = vpop.f32.mrf.mxu1 }
 0x1cf   : > { %v6047_v34 = vadd.f32 %v1678_v1, %v1454_v56 }
 0x1d0   : > { %v1458_v57 = vpop.f32.mrf.mxu0  ;;  %v1680_v54 = vpop.f32.mrf.mxu1 }
 0x1d1   : > { %v1459_v8 = vadd.f32 %v1458_v57, %v5664_v15  ;;  %v2525_v15 = vld [vmem:[%s7307_s3 + $0x200] sm:$0xff] }
 0x1d2   : > { %v1460_v32 = vpop.f32.mrf.mxu0  ;;  %v1683_v3 = vpop.f32.mrf.mxu1  ;;  %3093 = vmatpush1.msra.mxu1 %v2525_v15 }
 0x1d3   : > { %v6058_v5 = vadd.f32 %v1683_v3, %v1459_v8  ;;  %3094 = vmatprep.subr.mxu1 %v5977_v23  ;;  %v2553_v3 = vld [vmem:[%s7307_s3 + $0x2e0] sm:$0xff] }
 0x1d4   : > { %v1463_v27 = vpop.f32.mrf.mxu0  ;;  %v1685_v43 = vpop.f32.mrf.mxu1  ;;  %3095 = vmatpush2.msra.mxu1 %v2556_v14 }
 0x1d5   : > { %v1464_v40 = vadd.f32 %v1463_v27, %v5673_v11  ;;  %3096 = vmatprep.subr.mxu1 %v5977_v23 }
 0x1d6   : > { %v1465_v30 = vpop.f32.mrf.mxu0  ;;  %v1688_v26 = vpop.f32.mrf.mxu1  ;;  %3097 = vmatpush2.msra.mxu1 %v2555_v55 }
 0x1d7   : > { %v6065_v9 = vadd.f32 %v1688_v26, %v1464_v40  ;;  %3098 = vmatprep.subr.mxu1 %v5977_v23  ;;  %v2552_v26 = vld [vmem:[%s7307_s3 + $0x2d8] sm:$0xff] }
 0x1d8   : > { %v1468_v16 = vpop.f32.mrf.mxu0  ;;  %v1690_v60 = vpop.f32.mrf.mxu1  ;;  %3099 = vmatpush2.msra.mxu1 %v2554_v24 }
 0x1d9   : > { %v1469_v33 = vadd.f32 %v1468_v16, %v5682_v17  ;;  %3100 = vmatprep.subr.mxu1 %v5977_v23 }
 0x1da   : > { %v1470_v11 = vpop.f32.mrf.mxu0  ;;  %v1693_v6 = vpop.f32.mrf.mxu1  ;;  %3101 = vmatpush2.msra.mxu1 %v2553_v3 }
 0x1db   : > { %v6072_v42 = vadd.f32 %v1693_v6, %v1469_v33  ;;  %3102 = vmatprep.subr.mxu1 %v5977_v23  ;;  %v2551_v6 = vld [vmem:[%s7307_s3 + $0x2d0] sm:$0xff] }
 0x1dc   : > { %v1473_v22 = vpop.f32.mrf.mxu0  ;;  %v1695_v44 = vpop.f32.mrf.mxu1  ;;  %3103 = vmatpush2.msra.mxu1 %v2552_v26 }
 0x1dd   : > { %v1474_v36 = vadd.f32 %v1473_v22, %v5698_v58  ;;  %3104 = vmatprep.subr.mxu1 %v5977_v23 }
 0x1de   : > { %v1475_v17 = vpop.f32.mrf.mxu0  ;;  %v1698_v38 = vpop.f32.mrf.mxu1  ;;  %3105 = vmatpush2.msra.mxu1 %v2551_v6 }
 0x1df   : > { %v6079_v56 = vadd.f32 %v1698_v38, %v1474_v36  ;;  %3106 = vmatprep.subr.mxu1 %v5977_v23  ;;  %v2550_v38 = vld [vmem:[%s7307_s3 + $0x2c8] sm:$0xff] }
 0x1e0   : > { %v1478_v21 = vpop.f32.mrf.mxu0  ;;  %v1700_v51 = vpop.f32.mrf.mxu1  ;;  %3107 = vmatpush2.msra.mxu1 %v2550_v38 }
 0x1e1   : > { %v1479_v1 = vadd.f32 %v1478_v21, %v5715_v13  ;;  %3108 = vmatprep.subr.mxu1 %v5977_v23 }
 0x1e2   : > { %v1480_v58 = vpop.f32.mrf.mxu0  ;;  %v1703_v57 = vpop.f32.mrf.mxu1 }
 0x1e3   : > { %v6086_v54 = vadd.f32 %v1703_v57, %v1479_v1  ;;  %v2549_v57 = vld [vmem:[%s7307_s3 + $0x2c0] sm:$0xff] }
 0x1e4   : > { %v1483_v8 = vpop.f32.mrf.mxu0  ;;  %v1705_v0 = vpop.f32.mrf.mxu1  ;;  %3109 = vmatpush2.msra.mxu1 %v2549_v57 }
 0x1e5   : > { %v1484_v32 = vadd.f32 %v1483_v8, %v5732_v18  ;;  %3110 = vmatprep.subr.mxu1 %v5977_v23 }
 0x1e6   : > { %v1485_v13 = vpop.f32.mrf.mxu0  ;;  %v1708_v27 = vpop.f32.mrf.mxu1 }
 0x1e7   : > { %v6093_v43 = vadd.f32 %v1708_v27, %v1484_v32  ;;  %v2548_v27 = vld [vmem:[%s7307_s3 + $0x2b8] sm:$0xff] }
 0x1e8   : > { %v1488_v40 = vpop.f32.mrf.mxu0  ;;  %v1710_v15 = vpop.f32.mrf.mxu1  ;;  %3111 = vmatpush2.msra.mxu1 %v2548_v27  ;;  %v2543_v27 = vld [vmem:[%s7307_s3 + $0x290] sm:$0xff] }
 0x1e9   : > { %v1489_v30 = vadd.f32 %v1488_v40, %v5749_v49  ;;  %3112 = vmatprep.subr.mxu1 %v5977_v23 }
 0x1ea   : > { %v1490_v18 = vpop.f32.mrf.mxu0  ;;  %v1713_v16 = vpop.f32.mrf.mxu1 }
 0x1eb   : > { %v6100_v60 = vadd.f32 %v1713_v16, %v1489_v30  ;;  %v2547_v16 = vld [vmem:[%s7307_s3 + $0x2b0] sm:$0xff] }
 0x1ec   : > { %v1493_v33 = vpop.f32.mrf.mxu0  ;;  %v1715_v14 = vpop.f32.mrf.mxu1  ;;  %3113 = vmatpush2.msra.mxu1 %v2547_v16 }
 0x1ed   : > { %v1494_v11 = vadd.f32 %v1493_v33, %v5766_v45  ;;  %3114 = vmatprep.subr.mxu1 %v5977_v23 }
 0x1ee   : > { %v1495_v49 = vpop.f32.mrf.mxu0  ;;  %v1718_v22 = vpop.f32.mrf.mxu1 }
 0x1ef   : > { %v6107_v44 = vadd.f32 %v1718_v22, %v1494_v11  ;;  %v2546_v22 = vld [vmem:[%s7307_s3 + $0x2a8] sm:$0xff] }
 0x1f0   : > { %v1498_v36 = vpop.f32.mrf.mxu0  ;;  %v1720_v55 = vpop.f32.mrf.mxu1  ;;  %3115 = vmatpush2.msra.mxu1 %v2546_v22 }
 0x1f1   : > { %v1499_v17 = vadd.f32 %v1498_v36, %v5783_v41  ;;  %3116 = vmatprep.subr.mxu1 %v5977_v23 }
 0x1f2   : > { %v1500_v45 = vpop.f32.mrf.mxu0  ;;  %v1723_v21 = vpop.f32.mrf.mxu1 }
 0x1f3   : > { %v6114_v51 = vadd.f32 %v1723_v21, %v1499_v17  ;;  %v2545_v21 = vld [vmem:[%s7307_s3 + $0x2a0] sm:$0xff] }
 0x1f4   : > { %v1503_v1 = vpop.f32.mrf.mxu0  ;;  %v1725_v24 = vpop.f32.mrf.mxu1  ;;  %3117 = vmatpush2.msra.mxu1 %v2545_v21  ;;  %v2318_v21 = vrot.slane %v5929_v37, 2 }
 0x1f5   : > { %v1504_v58 = vadd.f32 %v1503_v1, %v5800_v4  ;;  %3118 = vmatprep.subr.mxu1 %v5977_v23 }
 0x1f6   : > { %v1505_v41 = vpop.f32.mrf.mxu0  ;;  %v1728_v8 = vpop.f32.mrf.mxu1 }
 0x1f7   : > { %v6121_v0 = vadd.f32 %v1728_v8, %v1504_v58  ;;  %v2544_v41 = vld [vmem:[%s7307_s3 + $0x298] sm:$0xff] }
 0x1f8   : > { %v1508_v32 = vpop.f32.mrf.mxu0  ;;  %v1730_v3 = vpop.f32.mrf.mxu1  ;;  %3119 = vmatpush2.msra.mxu1 %v2544_v41 }
 0x1f9   : > { %v1509_v13 = vadd.f32 %v1508_v32, %v5817_v53  ;;  %3120 = vmatprep.subr.mxu1 %v5977_v23 }
 0x1fa   : > { %v1510_v4 = vpop.f32.mrf.mxu0  ;;  %v1733_v40 = vpop.f32.mrf.mxu1  ;;  %3121 = vmatpush2.msra.mxu1 %v2543_v27 }
 0x1fb   : > { %v6128_v15 = vadd.f32 %v1733_v40, %v1509_v13  ;;  %3122 = vmatprep.subr.mxu1 %v5977_v23 }
 0x1fc   : > { %v1513_v30 = vpop.f32.mrf.mxu0  ;;  %v1735_v26 = vpop.f32.mrf.mxu1 }
 0x1fd   : > { %v1514_v18 = vadd.f32 %v1513_v30, %v5837_v39 }
 0x1fe   : > { %v1515_v53 = vpop.f32.mrf.mxu0  ;;  %v1738_v33 = vpop.f32.mrf.mxu1 }
 0x1ff   : > { %v6135_v14 = vadd.f32 %v1738_v33, %v1514_v18 }
 0x200   : > { %v1518_v11 = vpop.f32.mrf.mxu0  ;;  %v1740_v6 = vpop.f32.mrf.mxu1 }
 0x201   : > { %v1519_v49 = vadd.f32 %v1518_v11, %v5855_v61  ;;  %v2541_v6 = vld [vmem:[%s7307_s3 + $0x280] sm:$0xff] }
 0x202   : > { %v1520_v39 = vpop.f32.mrf.mxu0  ;;  %v1743_v36 = vpop.f32.mrf.mxu1 }
 0x203   : > { %v6142_v55 = vadd.f32 %v1743_v36, %v1519_v49 }
 0x204   : > { %v1523_v17 = vpop.f32.mrf.mxu0  ;;  %v1745_v38 = vpop.f32.mrf.mxu1 }
 0x205   : > { %v1524_v45 = vadd.f32 %v1523_v17, %v5874_v48 }
 0x206   : > { %v1525_v61 = vpop.f32.mrf.mxu0  ;;  %v1748_v1 = vpop.f32.mrf.mxu1 }
 0x207   : > { %v6149_v24 = vadd.f32 %v1748_v1, %v1524_v45 }
 0x208   : > { %v6152_v58 = vpop.f32.mrf.mxu0  ;;  %v1750_v57 = vpop.f32.mrf.mxu1 }
 0x20a   : > { %v1530_v8 = vpop.f32.mrf.mxu0  ;;  %v6157_v48 = vpop.f32.mrf.mxu1 }
 0x20c   : > { %v4065_v32 = vpop.f32.mrf.mxu0  ;;  %v1755_v3 = vpop.f32.mrf.mxu1 }
 0x20d   : > { %v1829_v13 = vadd.f32 %v4065_v32, %v5919_v29  ;;  %v2542_v29 = vld [vmem:[%s7307_s3 + $0x288] sm:$0xff]  ;;  %v2571_v3 = vld [vmem:[%s7307_s3 + $0x370] sm:$0xff] }
 0x20e   : > { %v1823_v4 = vpop.f32.mrf.mxu0  ;;  %3123 = vmatpush2.msra.mxu1 %v2542_v29 }
 0x20f   : > { %v1983_v40 = vmax.f32 %v1829_v13, 0.0  ;;  %v1824_v30 = vadd.f32 %v1823_v4, %v5901_v52  ;;  %3124 = vmatprep.subr.mxu1 %v5977_v23 }
 0x210   : > { %v4068_v26 = vpop.f32.mrf.mxu0  ;;  %3125 = vmatpush2.msra.mxu1 %v2541_v6  ;;  %v2570_v6 = vld [vmem:[%s7307_s3 + $0x368] sm:$0xff] }
 0x211   : > { %2070 = vst [vmem:[#allocation3 + $0x21] sm:$0xff] %v1983_v40  ;;  %v1982_v18 = vmax.f32 %v1824_v30, 0.0  ;;  %v1839_v16 = vadd.f32 %v4068_v26, %v5954_v20 }
 0x212   : > { %v1833_v53 = vpop.f32.mrf.mxu0 }
 0x213   : > { %2069 = vst [vmem:[#allocation3 + $0x19] sm:$0xff] %v1982_v18  ;;  %v1985_v33 = vmax.f32 %v1839_v16, 0.0  ;;  %v1834_v11 = vadd.f32 %v1833_v53, %v5939_v50  ;;  %v2604_v50 = vld [vmem:[%s7307_s3 + $0x478] sm:$0xff] }
 0x214   : > { %v4071_v52 = vpop.f32.mrf.mxu0  ;;  %4111 = vmatprep.subr.mxu1 %v2604_v50 }
 0x215   : > { %2072 = vst [vmem:[#allocation3 + $0x39] sm:$0xff] %v1985_v33  ;;  %v1984_v49 = vmax.f32 %v1834_v11, 0.0  ;;  %v1849_v20 = vadd.f32 %v4071_v52, %v5968_v25 }
 0x216   : > { %v1843_v22 = vpop.f32.mrf.mxu0 }
 0x217   : > { %2071 = vst [vmem:[#allocation3 + $0x31] sm:$0xff] %v1984_v49  ;;  %v1987_v39 = vmax.f32 %v1849_v20, 0.0  ;;  %v1844_v36 = vadd.f32 %v1843_v22, %v5961_v2  ;;  %v2572_v2 = vld [vmem:[%s7307_s3 + $0x378] sm:$0xff] }
 0x218   : > { %v4074_v17 = vpop.f32.mrf.mxu0  ;;  %v2106_v8 = vld [vmem:[#allocation3 + $0x28] sm:$0x3] }
 0x219   : > { %2074 = vst [vmem:[#allocation3 + $0x51] sm:$0xff] %v1987_v39  ;;  %v1986_v38 = vmax.f32 %v1844_v36, 0.0  ;;  %v1859_v45 = vadd.f32 %v4074_v17, %v5984_v62  ;;  %v2211_v30 = vrot.slane %v2106_v8, 1 }
 0x21a   : > { %v1853_v61 = vpop.f32.mrf.mxu0  ;;  %v2104_v25 = vld [vmem:[#allocation3 + $0x18] sm:$0xff]  ;;  %v6182_v1 = vld [vmem:[#allocation3 + $0x20] sm:$0xff] }
 0x21b   : > { %2073 = vst [vmem:[#allocation3 + $0x49] sm:$0xff] %v1986_v38  ;;  %v1989_v57 = vmax.f32 %v1859_v45, 0.0  ;;  %v1854_v41 = vadd.f32 %v1853_v61, %v5975_v59  ;;  %2901 = vmatprep.mubr.f32.mxu0 %v2104_v25  ;;  %v2208_v62 = vrot.slane %v2104_v25, 1  ;;  %v2209_v37 = vrot.slane %v6182_v1, 1  ;;  %v2569_v45 = vld [vmem:[%s7307_s3 + $0x360] sm:$0xff] }
 0x21c   : > { %v4077_v32 = vpop.f32.mrf.mxu0  ;;  %2902 = vmatmul.mubr.f32.vlgmr.msra.gmra.mxu0 %v5831_v28  ;;  %v2319_v59 = vsel %vm559_vm1, %v5831_v28, %v2318_v21  ;;  %v2320_v16 = vrot.slane %v2104_v25, 2  ;;  %v2321_v29 = vrot.slane %v6182_v1, 2  ;;  %v2109_v17 = vld [vmem:[#allocation3 + $0x40] sm:$0x3]  ;;  %v2323_v38 = vrot.slane %v2106_v8, 2 }
 0x21d   : > { %2076 = vst [vmem:[#allocation3 + $0x69] sm:$0xff] %v1989_v57  ;;  %v1988_v13 = vmax.f32 %v1854_v41, 0.0  ;;  %v1869_v27 = vadd.f32 %v4077_v32, %v5998_v7  ;;  %2906 = vmatprep.mubr.f32.mxu0 %v6182_v1  ;;  %3288 = vmatpush1.msra.mxu0 %v2572_v2  ;;  %v6198_v40 = vsel %vm446_vm0, %v2208_v62, %v2209_v37  ;;  %v2216_v2 = vrot.slane %v2109_v17, 1 }
 0x21e   : > { %v1863_v4 = vpop.f32.mrf.mxu0  ;;  %v6200_v26 = vld [vmem:[#allocation3 + $0x30] sm:$0xff]  ;;  %v6202_v18 = vld [vmem:[#allocation3 + $0x38] sm:$0xff]  ;;  %3289 = vmatprep.subr.mxu0 %v5977_v23  ;;  %2686 = vmatprep.mubr.f32.mxu1 %v6198_v40  ;;  %v6209_v33 = vsel %vm446_vm0, %v2209_v37, %v2211_v30  ;;  %v6222_v36 = vsel %vm559_vm1, %v2320_v16, %v2321_v29  ;;  %v6240_v57 = vsel %vm559_vm1, %v2321_v29, %v2323_v38 }
 0x21f   : > { %2075 = vst [vmem:[#allocation3 + $0x61] sm:$0xff] %v1988_v13  ;;  %v1991_v7 = vmax.f32 %v1869_v27, 0.0  ;;  %v1864_v53 = vadd.f32 %v1863_v4, %v5991_v12  ;;  %3290 = vmatpush1.msra.mxu0 %v2571_v3  ;;  %2687 = vmatmul.mubr.f32.gmra.mxu1 %v2104_v25  ;;  %v2213_v11 = vrot.slane %v6200_v26, 1  ;;  %v2214_v52 = vrot.slane %v6202_v18, 1 }
 0x220   : > { %v4080_v28 = vpop.f32.mrf.mxu0  ;;  %2907 = vmatmul.mubr.f32.gmra.mxu0 %v2319_v59  ;;  %2691 = vmatprep.mubr.f32.mxu1 %v6209_v33  ;;  %v2326_v32 = vrot.slane %v6202_v18, 2 }
 0x221   : > { %2078 = vst [vmem:[#allocation3 + $0x81] sm:$0xff] %v1991_v7  ;;  %v1990_v49 = vmax.f32 %v1864_v53, 0.0  ;;  %v1879_v12 = vadd.f32 %v4080_v28, %v6012_v63  ;;  %2911 = vmatprep.mubr.f32.mxu0 %v6200_v26  ;;  %3291 = vmatprep.subr.mxu0 %v5977_v23  ;;  %v6226_v63 = vsel %vm446_vm0, %v2213_v11, %v2214_v52  ;;  %v2112_v7 = vld [vmem:[#allocation3 + $0x58] sm:$0x3]  ;;  %v2328_v53 = vrot.slane %v2109_v17, 2  ;;  %v2567_v28 = vld [vmem:[%s7307_s3 + $0x350] sm:$0xff] }
 0x222   : > { %v1873_v20 = vpop.f32.mrf.mxu0  ;;  %3292 = vmatpush1.msra.mxu0 %v2570_v6  ;;  %v6235_v61 = vld [vmem:[#allocation3 + $0x48] sm:$0xff]  ;;  %v6237_v25 = vld [vmem:[#allocation3 + $0x50] sm:$0xff]  ;;  %v6248_v37 = vsel %vm446_vm0, %v2214_v52, %v2216_v2 }
 0x223   : > { %2077 = vst [vmem:[#allocation3 + $0x79] sm:$0xff] %v1990_v49  ;;  %v1993_v22 = vmax.f32 %v1879_v12, 0.0  ;;  %v1874_v39 = vadd.f32 %v1873_v20, %v6005_v19  ;;  %2692 = vmatmul.mubr.f32.gmra.mxu1 %v6182_v1  ;;  %3293 = vmatprep.subr.mxu0 %v5977_v23  ;;  %v2218_v3 = vrot.slane %v6235_v61, 1  ;;  %v2219_v13 = vrot.slane %v6237_v25, 1 }
 0x224   : > { %v4083_v50 = vpop.f32.mrf.mxu0  ;;  %2912 = vmatmul.mubr.f32.gmra.mxu0 %v6222_v36  ;;  %2696 = vmatprep.mubr.f32.mxu1 %v6226_v63  ;;  %v2221_v49 = vrot.slane %v2112_v7, 1  ;;  %v6280_v12 = vsel %vm559_vm1, %v2326_v32, %v2328_v53 }
 0x225   : > { %2080 = vst [vmem:[#allocation3 + $0x99] sm:$0xff] %v1993_v22  ;;  %v1992_v19 = vmax.f32 %v1874_v39, 0.0  ;;  %v1889_v21 = vadd.f32 %v4083_v50, %v6026_v35  ;;  %2916 = vmatprep.mubr.f32.mxu0 %v6202_v18  ;;  %v2325_v35 = vrot.slane %v6200_v26, 2  ;;  %3294 = vmatpush1.msra.mxu0 %v2569_v45  ;;  %v2331_v39 = vrot.slane %v6237_v25, 2 }
 0x226   : > { %v1883_v1 = vpop.f32.mrf.mxu0  ;;  %3295 = vmatprep.subr.mxu0 %v5977_v23  ;;  %v6277_v52 = vld [vmem:[#allocation3 + $0x68] sm:$0xff]  ;;  %v6288_v50 = vsel %vm446_vm0, %v2219_v13, %v2221_v49 }
 0x227   : > { %2079 = vst [vmem:[#allocation3 + $0x91] sm:$0xff] %v1992_v19  ;;  %v1995_v41 = vmax.f32 %v1889_v21, 0.0  ;;  %v1884_v8 = vadd.f32 %v1883_v1, %v6019_v31  ;;  %2697 = vmatmul.mubr.f32.gmra.mxu1 %v6200_v26  ;;  %v2568_v31 = vld [vmem:[%s7307_s3 + $0x358] sm:$0xff]  ;;  %v6262_v16 = vsel %vm559_vm1, %v2325_v35, %v2326_v32  ;;  %v2224_v45 = vrot.slane %v6277_v52, 1  ;;  %v2115_v35 = vld [vmem:[#allocation3 + $0x70] sm:$0x3] }
 0x228   : > { %v4086_v62 = vpop.f32.mrf.mxu0  ;;  %2917 = vmatmul.mubr.f32.gmra.mxu0 %v6240_v57  ;;  %2701 = vmatprep.mubr.f32.mxu1 %v6248_v37 }
 0x229   : > { %2082 = vst [vmem:[#allocation3 + $0xb1] sm:$0xff] %v1995_v41  ;;  %v1994_v27 = vmax.f32 %v1884_v8, 0.0  ;;  %v1899_v59 = vadd.f32 %v4086_v62, %v6040_v46  ;;  %2921 = vmatprep.mubr.f32.mxu0 %v6235_v61  ;;  %3296 = vmatpush1.msra.mxu0 %v2568_v31  ;;  %v6266_v46 = vsel %vm446_vm0, %v2218_v3, %v2219_v13  ;;  %v2333_v62 = vrot.slane %v2112_v7, 2  ;;  %v2565_v3 = vld [vmem:[%s7307_s3 + $0x340] sm:$0xff] }
 0x22a   : > { %v1893_v4 = vpop.f32.mrf.mxu0  ;;  %3297 = vmatprep.subr.mxu0 %v5977_v23  ;;  %v6315_v31 = vld [vmem:[#allocation3 + $0x78] sm:$0xff] }
 0x22b   : > { %2081 = vst [vmem:[#allocation3 + $0xa9] sm:$0xff] %v1994_v27  ;;  %v1997_v30 = vmax.f32 %v1899_v59, 0.0  ;;  %v1894_v26 = vadd.f32 %v1893_v4, %v6033_v47  ;;  %2702 = vmatmul.mubr.f32.gmra.mxu1 %v6202_v18  ;;  %v6275_v18 = vld [vmem:[#allocation3 + $0x60] sm:$0xff]  ;;  %3298 = vmatpush1.msra.mxu0 %v2567_v28  ;;  %v2226_v4 = vrot.slane %v2115_v35, 1 }
 0x22c   : > { %v4089_v29 = vpop.f32.mrf.mxu0  ;;  %2922 = vmatmul.mubr.f32.gmra.mxu0 %v6262_v16  ;;  %2706 = vmatprep.mubr.f32.mxu1 %v6266_v46  ;;  %v2223_v38 = vrot.slane %v6275_v18, 1  ;;  %v6317_v27 = vld [vmem:[#allocation3 + $0x80] sm:$0xff] }
 0x22d   : > { %2084 = vst [vmem:[#allocation3 + $0xc9] sm:$0xff] %v1997_v30  ;;  %v1996_v47 = vmax.f32 %v1894_v26, 0.0  ;;  %v1909_v11 = vadd.f32 %v4089_v29, %v6058_v5  ;;  %2926 = vmatprep.mubr.f32.mxu0 %v6237_v25  ;;  %v2330_v5 = vrot.slane %v6235_v61, 2  ;;  %3299 = vmatprep.subr.mxu0 %v5977_v23  ;;  %v6320_v30 = vsel %vm559_vm1, %v2331_v39, %v2333_v62 }
 0x22e   : > { %v1903_v6 = vpop.f32.mrf.mxu0  ;;  %v2336_v29 = vrot.slane %v6277_v52, 2  ;;  %v6328_v28 = vsel %vm446_vm0, %v2224_v45, %v2226_v4  ;;  %v2340_v62 = vrot.slane %v6315_v31, 2 }
 0x22f   : > { %2083 = vst [vmem:[#allocation3 + $0xc1] sm:$0xff] %v1996_v47  ;;  %v1999_v20 = vmax.f32 %v1909_v11, 0.0  ;;  %v1904_v22 = vadd.f32 %v1903_v6, %v6047_v34  ;;  %2707 = vmatmul.mubr.f32.gmra.mxu1 %v6235_v61  ;;  %v2566_v34 = vld [vmem:[%s7307_s3 + $0x348] sm:$0xff]  ;;  %v6302_v8 = vsel %vm559_vm1, %v2330_v5, %v2331_v39  ;;  %v2228_v47 = vrot.slane %v6315_v31, 1 }
 0x230   : > { %v4092_v17 = vpop.f32.mrf.mxu0  ;;  %2927 = vmatmul.mubr.f32.gmra.mxu0 %v6280_v12  ;;  %2711 = vmatprep.mubr.f32.mxu1 %v6288_v50  ;;  %v2229_v11 = vrot.slane %v6317_v27, 1 }
 0x231   : > { %2086 = vst [vmem:[#allocation3 + $0xe1] sm:$0xff] %v1999_v20  ;;  %v1998_v19 = vmax.f32 %v1904_v22, 0.0  ;;  %v1919_v21 = vadd.f32 %v4092_v17, %v6072_v42  ;;  %2931 = vmatprep.mubr.f32.mxu0 %v6275_v18  ;;  %3300 = vmatpush1.msra.mxu0 %v2566_v34  ;;  %v6306_v42 = vsel %vm446_vm0, %v2223_v38, %v2224_v45  ;;  %v6344_v17 = vld [vmem:[#allocation3 + $0x88] sm:$0x3]  ;;  %v2338_v45 = vrot.slane %v2115_v35, 2  ;;  %v2563_v34 = vld [vmem:[%s7307_s3 + $0x330] sm:$0xff] }
 0x232   : > { %v1913_v1 = vpop.f32.mrf.mxu0  ;;  %3301 = vmatprep.subr.mxu0 %v5977_v23  ;;  %v6348_v38 = vsel %vm446_vm0, %v2228_v47, %v2229_v11 }
 0x233   : > { %2085 = vst [vmem:[#allocation3 + $0xd9] sm:$0xff] %v1998_v19  ;;  %v2001_v2 = vmax.f32 %v1919_v21, 0.0  ;;  %v1914_v41 = vadd.f32 %v1913_v1, %v6065_v9  ;;  %2712 = vmatmul.mubr.f32.gmra.mxu1 %v6237_v25  ;;  %3302 = vmatpush1.msra.mxu0 %v2565_v3  ;;  %v6357_v21 = vld [vmem:[#allocation3 + $0x90] sm:$0xff]  ;;  %v6359_v1 = vld [vmem:[#allocation3 + $0x98] sm:$0xff]  ;;  %v6363_v35 = vsel %vm559_vm1, %v2336_v29, %v2338_v45  ;;  %v2341_v3 = vrot.slane %v6317_v27, 2 }
 0x234   : > { %v4095_v32 = vpop.f32.mrf.mxu0  ;;  %2932 = vmatmul.mubr.f32.gmra.mxu0 %v6302_v8  ;;  %2716 = vmatprep.mubr.f32.mxu1 %v6306_v42  ;;  %v2234_v4 = vrot.slane %v6359_v1, 1 }
 0x235   : > { %2088 = vst [vmem:[#allocation3 + $0xf9] sm:$0xff] %v2001_v2  ;;  %v2000_v9 = vmax.f32 %v1914_v41, 0.0  ;;  %v1929_v13 = vadd.f32 %v4095_v32, %v6086_v54  ;;  %2936 = vmatprep.mubr.f32.mxu0 %v6277_v52  ;;  %v2335_v54 = vrot.slane %v6275_v18, 2  ;;  %3303 = vmatprep.subr.mxu0 %v5977_v23  ;;  %v2231_v41 = vrot.slane %v6344_v17, 1 }
 0x236   : > { %v1923_v59 = vpop.f32.mrf.mxu0 }
 0x237   : > { %2087 = vst [vmem:[#allocation3 + $0xf1] sm:$0xff] %v2000_v9  ;;  %v2003_v26 = vmax.f32 %v1929_v13, 0.0  ;;  %v1924_v7 = vadd.f32 %v1923_v59, %v6079_v56  ;;  %2717 = vmatmul.mubr.f32.gmra.mxu1 %v6275_v18  ;;  %v2564_v56 = vld [vmem:[%s7307_s3 + $0x338] sm:$0xff]  ;;  %v6342_v39 = vsel %vm559_vm1, %v2335_v54, %v2336_v29  ;;  %v6371_v13 = vsel %vm446_vm0, %v2229_v11, %v2231_v41 }
 0x238   : > { %v4098_v53 = vpop.f32.mrf.mxu0  ;;  %2937 = vmatmul.mubr.f32.gmra.mxu0 %v6320_v30  ;;  %2721 = vmatprep.mubr.f32.mxu1 %v6328_v28  ;;  %v2233_v59 = vrot.slane %v6357_v21, 1  ;;  %v1529_v54 = vadd.f32 %v6152_v58, %v5889_v10  ;;  %v6387_v11 = vsel %vm559_vm1, %v2340_v62, %v2341_v3  ;;  %v2343_v10 = vrot.slane %v6344_v17, 2 }
 0x239   : > { %2090 = vst [vmem:[#allocation3 + $0x111] sm:$0xff] %v2003_v26  ;;  %v2002_v6 = vmax.f32 %v1924_v7, 0.0  ;;  %v1939_v49 = vadd.f32 %v4098_v53, %v6100_v60  ;;  %2941 = vmatprep.mubr.f32.mxu0 %v6315_v31  ;;  %3304 = vmatpush1.msra.mxu0 %v2564_v56  ;;  %v6389_v56 = vld [vmem:[#allocation3 + $0xa0] sm:$0x3] }
 0x23a   : > { %v1933_v20 = vpop.f32.mrf.mxu0  ;;  %3305 = vmatprep.subr.mxu0 %v5977_v23  ;;  %v2236_v17 = vrot.slane %v6389_v56, 1  ;;  %v6410_v45 = vsel %vm559_vm1, %v2341_v3, %v2343_v10  ;;  %v6428_v3 = vld [vmem:[#allocation2] sm:$0xff] }
 0x23b   : > { %2089 = vst [vmem:[#allocation3 + $0x109] sm:$0xff] %v2002_v6  ;;  %v2005_v22 = vmax.f32 %v1939_v49, 0.0  ;;  %v1934_v5 = vadd.f32 %v1933_v20, %v6093_v43  ;;  %2722 = vmatmul.mubr.f32.gmra.mxu1 %v6277_v52  ;;  %3306 = vmatpush1.msra.mxu0 %v2563_v34  ;;  %v6393_v6 = vsel %vm446_vm0, %v2233_v59, %v2234_v4  ;;  %v6403_v20 = vld [vmem:[#allocation3 + $0xa8] sm:$0xff] }
 0x23c   : > { %v4101_v60 = vpop.f32.mrf.mxu0  ;;  %2942 = vmatmul.mubr.f32.gmra.mxu0 %v6342_v39  ;;  %2726 = vmatprep.mubr.f32.mxu1 %v6348_v38  ;;  %v2238_v41 = vrot.slane %v6403_v20, 1  ;;  %v2350_v10 = vrot.slane %v6403_v20, 2 }
 0x23d   : > { %2092 = vst [vmem:[#allocation3 + $0x129] sm:$0xff] %v2005_v22  ;;  %v2004_v43 = vmax.f32 %v1934_v5, 0.0  ;;  %v1949_v19 = vadd.f32 %v4101_v60, %v6114_v51  ;;  %2946 = vmatprep.mubr.f32.mxu0 %v6317_v27  ;;  %3307 = vmatprep.subr.mxu0 %v5977_v23  ;;  %v6405_v22 = vld [vmem:[#allocation3 + $0xb0] sm:$0xff]  ;;  %v1754_v5 = vadd.f32 %v6157_v48, %v1529_v54 }
 0x23e   : > { %v1943_v2 = vpop.f32.mrf.mxu0 }
 0x23f   : > { %2091 = vst [vmem:[#allocation3 + $0x121] sm:$0xff] %v2004_v43  ;;  %v2007_v32 = vmax.f32 %v1949_v19, 0.0  ;;  %v1944_v51 = vadd.f32 %v1943_v2, %v6107_v44  ;;  %2727 = vmatmul.mubr.f32.gmra.mxu1 %v6315_v31  ;;  %v2562_v44 = vld [vmem:[%s7307_s3 + $0x328] sm:$0xff]  ;;  %v2345_v43 = vrot.slane %v6357_v21, 2  ;;  %v2346_v19 = vrot.slane %v6359_v1, 2 }
 0x240   : > { %v4104_v9 = vpop.f32.mrf.mxu0  ;;  %2947 = vmatmul.mubr.f32.gmra.mxu0 %v6363_v35  ;;  %2731 = vmatprep.mubr.f32.mxu1 %v6371_v13  ;;  %v6418_v2 = vsel %vm446_vm0, %v2234_v4, %v2236_v17  ;;  %v2127_v17 = vld [vmem:[#allocation3 + $0xd0] sm:$0x3] }
 0x241   : > { %2094 = vst [vmem:[#allocation3 + $0x141] sm:$0xff] %v2007_v32  ;;  %v2006_v26 = vmax.f32 %v1944_v51, 0.0  ;;  %v1959_v7 = vadd.f32 %v4104_v9, %v6128_v15  ;;  %2951 = vmatprep.mubr.f32.mxu0 %v6357_v21  ;;  %3308 = vmatpush1.msra.mxu0 %v2562_v44  ;;  %v6433_v4 = vsel %vm559_vm1, %v2345_v43, %v2346_v19  ;;  %v2124_v44 = vld [vmem:[#allocation3 + $0xb8] sm:$0x3] }
 0x242   : > { %v1953_v29 = vpop.f32.mrf.mxu0  ;;  %3309 = vmatprep.subr.mxu0 %v5977_v23  ;;  %v2239_v23 = vrot.slane %v6405_v22, 1  ;;  %v2353_v43 = vrot.slane %v2124_v44, 2 }
 0x243   : > { %2093 = vst [vmem:[#allocation3 + $0x139] sm:$0xff] %v2006_v26  ;;  %v2009_v53 = vmax.f32 %v1959_v7, 0.0  ;;  %v1954_v47 = vadd.f32 %v1953_v29, %v6121_v0  ;;  %2732 = vmatmul.mubr.f32.gmra.mxu1 %v6317_v27  ;;  %v2561_v0 = vld [vmem:[%s7307_s3 + $0x320] sm:$0xff]  ;;  %v2559_v7 = vld [vmem:[%s7307_s3 + $0x310] sm:$0xff] }
 0x244   : > { %v4107_v15 = vpop.f32.mrf.mxu0  ;;  %2952 = vmatmul.mubr.f32.gmra.mxu0 %v6387_v11  ;;  %2736 = vmatprep.mubr.f32.mxu1 %v6393_v6  ;;  %v6437_v26 = vsel %vm446_vm0, %v2238_v41, %v2239_v23  ;;  %v6446_v29 = vld [vmem:[#allocation3 + $0xc0] sm:$0xff]  ;;  %v2246_v41 = vrot.slane %v2127_v17, 1 }
 0x245   : > { %2096 = vst [vmem:[#allocation3 + $0x159] sm:$0xff] %v2009_v53  ;;  %v2008_v58 = vmax.f32 %v1954_v47, 0.0  ;;  %v1969_v49 = vadd.f32 %v4107_v15, %v6142_v55  ;;  %2956 = vmatprep.mubr.f32.mxu0 %v6359_v1  ;;  %3310 = vmatpush1.msra.mxu0 %v2561_v0  ;;  %v6448_v53 = vld [vmem:[#allocation3 + $0xc8] sm:$0xff]  ;;  %v2241_v47 = vrot.slane %v2124_v44, 1  ;;  %v2351_v0 = vrot.slane %v6405_v22, 2 }
 0x246   : > { %v1963_v60 = vpop.f32.mrf.mxu0  ;;  %3311 = vmatprep.subr.mxu0 %v6428_v3  ;;  %v2588_v44 = vld [vmem:[%s7307_s3 + $0x3f8] sm:$0xff] }
 0x247   : > { %2095 = vst [vmem:[#allocation3 + $0x151] sm:$0xff] %v2008_v58  ;;  %v2011_v55 = vmax.f32 %v1969_v49, 0.0  ;;  %v1964_v34 = vadd.f32 %v1963_v60, %v6135_v14  ;;  %2737 = vmatmul.mubr.f32.gmra.mxu1 %v6357_v21  ;;  %v2560_v14 = vld [vmem:[%s7307_s3 + $0x318] sm:$0xff]  ;;  %v2243_v58 = vrot.slane %v6446_v29, 1  ;;  %v2244_v49 = vrot.slane %v6448_v53, 1 }
 0x248   : > { %v4110_v48 = vpop.f32.mrf.mxu0  ;;  %2957 = vmatmul.mubr.f32.gmra.mxu0 %v6410_v45  ;;  %2741 = vmatprep.mubr.f32.mxu1 %v6418_v2  ;;  %v6470_v60 = vsel %vm559_vm1, %v2350_v10, %v2351_v0 }
 0x249   : > { %2098 = vst [vmem:[#allocation3 + $0x171] sm:$0xff] %v2011_v55  ;;  %v2010_v32 = vmax.f32 %v1964_v34, 0.0  ;;  %v1979_v51 = vadd.f32 %v4110_v48, %v1754_v5  ;;  %2961 = vmatprep.mubr.f32.mxu0 %v6403_v20  ;;  %3312 = vmatpush1.msra.mxu0 %v2560_v14  ;;  %v2558_v5 = vld [vmem:[%s7307_s3 + $0x308] sm:$0xff]  ;;  %v6474_v55 = vsel %vm446_vm0, %v2243_v58, %v2244_v49  ;;  %v2557_v34 = vld [vmem:[%s7307_s3 + $0x300] sm:$0xff]  ;;  %v6484_v48 = vld [vmem:[#allocation3 + $0xe0] sm:$0xff] }
 0x24a   : > { %v1973_v62 = vpop.f32.mrf.mxu0  ;;  %3313 = vmatprep.subr.mxu0 %v6428_v3  ;;  %7487 = vst [vmem:[#allocation6_spill] sm:$0xff] %v6484_v48  ;;  %v6490_v14 = vsel %vm559_vm1, %v2351_v0, %v2353_v43  ;;  %v2587_v0 = vld [vmem:[%s7307_s3 + $0x3f0] sm:$0xff] }
 0x24b   : > { %2097 = vst [vmem:[#allocation3 + $0x169] sm:$0xff] %v2010_v32  ;;  %v2013_v9 = vmax.f32 %v1979_v51, 0.0  ;;  %v1974_v59 = vadd.f32 %v1973_v62, %v6149_v24  ;;  %2742 = vmatmul.mubr.f32.gmra.mxu1 %v6359_v1  ;;  %v2348_v24 = vrot.slane %v6389_v56, 2  ;;  %3314 = vmatpush1.msra.mxu0 %v2559_v7  ;;  %v6458_v56 = vsel %vm446_vm0, %v2239_v23, %v2241_v47  ;;  %v2130_v47 = vld [vmem:[#allocation3 + $0xe8] sm:$0x3] }
 0x24c   : > { %2962 = vmatmul.mubr.f32.gmra.mxu0 %v6433_v4  ;;  %2746 = vmatprep.mubr.f32.mxu1 %v6437_v26  ;;  %v2355_v32 = vrot.slane %v6446_v29, 2  ;;  %v2356_v51 = vrot.slane %v6448_v53, 2  ;;  %v6496_v62 = vsel %vm446_vm0, %v2244_v49, %v2246_v41  ;;  %v2358_v49 = vrot.slane %v2127_v17, 2 }
 0x24d   : > { %2100 = vst [vmem:[#allocation3 + $0x189] sm:$0xff] %v2013_v9  ;;  %v2012_v54 = vmax.f32 %v1974_v59, 0.0  ;;  %2966 = vmatprep.mubr.f32.mxu0 %v6405_v22  ;;  %v6452_v15 = vsel %vm559_vm1, %v2346_v19, %v2348_v24  ;;  %3315 = vmatprep.subr.mxu0 %v6428_v3  ;;  %v6482_v19 = vld [vmem:[#allocation3 + $0xd8] sm:$0xff]  ;;  %v2249_v59 = vrot.slane %v6484_v48, 1  ;;  %v2251_v43 = vrot.slane %v2130_v47, 1 }
 0x24e   : > { %3316 = vmatpush1.msra.mxu0 %v2558_v5  ;;  %v2248_v9 = vrot.slane %v6482_v19, 1  ;;  %v6510_v24 = vsel %vm559_vm1, %v2355_v32, %v2356_v51  ;;  %v6522_v5 = vld [vmem:[#allocation3 + $0xf0] sm:$0xff]  ;;  %v6528_v41 = vsel %vm559_vm1, %v2356_v51, %v2358_v49  ;;  %v2360_v32 = vrot.slane %v6482_v19, 2  ;;  %v2586_v51 = vld [vmem:[%s7307_s3 + $0x3e8] sm:$0xff] }
 0x24f   : > { %2099 = vst [vmem:[#allocation3 + $0x181] sm:$0xff] %v2012_v54  ;;  %2747 = vmatmul.mubr.f32.gmra.mxu1 %v6403_v20  ;;  %3317 = vmatprep.subr.mxu0 %v6428_v3  ;;  %7490 = vst [vmem:[#allocation10_spill] sm:$0xff] %v6522_v5  ;;  %v2253_v17 = vrot.slane %v6522_v5, 1  ;;  %v2585_v49 = vld [vmem:[%s7307_s3 + $0x3e0] sm:$0xff] }
 0x250   : > { %2967 = vmatmul.mubr.f32.gmra.mxu0 %v6452_v15  ;;  %2751 = vmatprep.mubr.f32.mxu1 %v6458_v56  ;;  %v6514_v10 = vsel %vm446_vm0, %v2248_v9, %v2249_v59  ;;  %v2361_v9 = vrot.slane %v6484_v48, 2 }
 0x251   : > { %2971 = vmatprep.mubr.f32.mxu0 %v6446_v29  ;;  %3318 = vmatpush1.msra.mxu0 %v2557_v34  ;;  %v6524_v34 = vld [vmem:[#allocation3 + $0xf8] sm:$0xff] }
 0x252   : > { %3319 = vmatprep.subr.mxu0 %v6428_v3  ;;  %7491 = vst [vmem:[#allocation11_spill] sm:$0xff] %v6524_v34 }
 0x253   : > { %2752 = vmatmul.mubr.f32.gmra.mxu1 %v6405_v22  ;;  %v6487_v23 = vpop.f32.mrf.mxu1  ;;  %3320 = vmatpush2.msra.mxu0 %v2588_v44  ;;  %v6534_v44 = vsel %vm446_vm0, %v2249_v59, %v2251_v43  ;;  %v2133_v59 = vld [vmem:[#allocation3 + $0x100] sm:$0x3]  ;;  %v2363_v43 = vrot.slane %v2130_v47, 2 }
 0x254   : > { %2972 = vmatmul.mubr.f32.gmra.mxu0 %v6470_v60  ;;  %2756 = vmatprep.mubr.f32.mxu1 %v6474_v55  ;;  %7488 = vst [vmem:[#allocation7_spill] sm:$0xff] %v6487_v23  ;;  %7492 = vst [vmem:[#allocation4_spill] sm:$0xff] %v6534_v44  ;;  %v2365_v23 = vrot.slane %v6522_v5, 2 }
 0x255   : > { %2976 = vmatprep.mubr.f32.mxu0 %v6448_v53  ;;  %v2680_v7 = vpop.f32.mrf.mxu1  ;;  %3321 = vmatprep.subr.mxu0 %v6428_v3 }
 0x256   : > { %3322 = vmatpush2.msra.mxu0 %v2587_v0  ;;  %v2254_v7 = vrot.slane %v6524_v34, 1  ;;  %v6546_v0 = vsel %vm559_vm1, %v2360_v32, %v2361_v9  ;;  %v6558_v32 = vld [vmem:[#allocation3 + $0x108] sm:$0xff] }
 0x257   : > { %2757 = vmatmul.mubr.f32.gmra.mxu1 %v6446_v29  ;;  %v6507_v54 = vpop.f32.mrf.mxu1  ;;  %3323 = vmatprep.subr.mxu0 %v6428_v3  ;;  %7494 = vst [vmem:[#allocation9_spill] sm:$0xff] %v6558_v32  ;;  %v2258_v47 = vrot.slane %v6558_v32, 1 }
 0x258   : > { %2977 = vmatmul.mubr.f32.gmra.mxu0 %v6490_v14  ;;  %2761 = vmatprep.mubr.f32.mxu1 %v6496_v62  ;;  %7489 = vst [vmem:[#allocation5_spill] sm:$0xff] %v6507_v54  ;;  %v6560_v54 = vld [vmem:[#allocation3 + $0x110] sm:$0xff] }
 0x259   : > { %2981 = vmatprep.mubr.f32.mxu0 %v6482_v19  ;;  %v2685_v58 = vpop.f32.mrf.mxu1  ;;  %3324 = vmatpush2.msra.mxu0 %v2586_v51  ;;  %7495 = vst [vmem:[#allocation15_spill] sm:$0xff] %v6560_v54  ;;  %v2256_v51 = vrot.slane %v2133_v59, 1 }
 0x25a   : > { %v6550_v58 = vsel %vm446_vm0, %v2253_v17, %v2254_v7  ;;  %3325 = vmatprep.subr.mxu0 %v6428_v3  ;;  %v6564_v17 = vsel %vm559_vm1, %v2361_v9, %v2363_v43  ;;  %v2584_v9 = vld [vmem:[%s7307_s3 + $0x3d8] sm:$0xff] }
 0x25b   : > { %2762 = vmatmul.mubr.f32.gmra.mxu1 %v6448_v53  ;;  %7493 = vst [vmem:[#allocation12_spill] sm:$0xff] %v6550_v58  ;;  %7496 = vst [vmem:[#allocation16_spill] sm:$0xff] %v6564_v17  ;;  %3326 = vmatpush2.msra.mxu0 %v2585_v49 }
 0x25c   : > { %2982 = vmatmul.mubr.f32.gmra.mxu0 %v6510_v24  ;;  %2766 = vmatprep.mubr.f32.mxu1 %v6514_v10 }
 0x25d   : > { %2986 = vmatprep.mubr.f32.mxu0 %v6484_v48  ;;  %3327 = vmatprep.subr.mxu0 %v6428_v3 }
 0x25e   : > { %3328 = vmatpush2.msra.mxu0 %v2584_v9 }
 0x25f   : > { %2767 = vmatmul.mubr.f32.gmra.mxu1 %v6482_v19  ;;  %3329 = vmatprep.subr.mxu0 %v6428_v3 }
 0x260   : > { %2987 = vmatmul.mubr.f32.gmra.mxu0 %v6528_v41  ;;  %2771 = vmatprep.mubr.f32.mxu1 %v6534_v44  ;;  %v2259_v44 = vrot.slane %v6560_v54, 1 }
 0x261   : > { %2991 = vmatprep.mubr.f32.mxu0 %v6522_v5 }
 0x262   : > { %v6586_v43 = vsel %vm446_vm0, %v2258_v47, %v2259_v44 }
 0x263   : > { %2772 = vmatmul.mubr.f32.gmra.mxu1 %v6484_v48  ;;  %v2366_v48 = vrot.slane %v6524_v34, 2  ;;  %7499 = vst [vmem:[#allocation18_spill] sm:$0xff] %v6586_v43 }
 0x264   : > { %2992 = vmatmul.mubr.f32.gmra.mxu0 %v6546_v0  ;;  %2776 = vmatprep.mubr.f32.mxu1 %v6550_v58  ;;  %v6570_v58 = vsel %vm446_vm0, %v2254_v7, %v2256_v51  ;;  %v2136_v7 = vld [vmem:[#allocation3 + $0x118] sm:$0x3]  ;;  %v2583_v51 = vld [vmem:[%s7307_s3 + $0x3d0] sm:$0xff] }
 0x265   : > { %2996 = vmatprep.mubr.f32.mxu0 %v6524_v34  ;;  %7497 = vst [vmem:[#allocation8_spill] sm:$0xff] %v6570_v58  ;;  %v6582_v49 = vsel %vm559_vm1, %v2365_v23, %v2366_v48  ;;  %v6594_v23 = vld [vmem:[#allocation3 + $0x120] sm:$0xff]  ;;  %v2261_v9 = vrot.slane %v2136_v7, 1  ;;  %3330 = vmatpush2.msra.mxu0 %v2583_v51 }
 0x266   : > { %7498 = vst [vmem:[#allocation17_spill] sm:$0xff] %v6582_v49  ;;  %7500 = vst [vmem:[#allocation14_spill] sm:$0xff] %v6594_v23  ;;  %3331 = vmatprep.subr.mxu0 %v6428_v3 }
 0x267   : > { %2777 = vmatmul.mubr.f32.gmra.mxu1 %v6522_v5  ;;  %v6596_v5 = vld [vmem:[#allocation3 + $0x128] sm:$0xff] }
 0x268   : > { %2997 = vmatmul.mubr.f32.gmra.mxu0 %v6564_v17  ;;  %2781 = vmatprep.mubr.f32.mxu1 %v6570_v58  ;;  %v2368_v58 = vrot.slane %v2133_v59, 2  ;;  %7501 = vst [vmem:[#allocation21_spill] sm:$0xff] %v6596_v5  ;;  %v2263_v59 = vrot.slane %v6594_v23, 1  ;;  %v2264_v17 = vrot.slane %v6596_v5, 1 }
 0x269   : > { %3001 = vmatprep.mubr.f32.mxu0 %v6558_v32 }
 0x26a   : > { %v6600_v47 = vsel %vm559_vm1, %v2366_v48, %v2368_v58  ;;  %v2582_v48 = vld [vmem:[%s7307_s3 + $0x3c8] sm:$0xff]  ;;  %v6622_v51 = vsel %vm446_vm0, %v2263_v59, %v2264_v17 }
 0x26b   : > { %2782 = vmatmul.mubr.f32.gmra.mxu1 %v6524_v34  ;;  %7502 = vst [vmem:[#allocation22_spill] sm:$0xff] %v6600_v47  ;;  %v2370_v34 = vrot.slane %v6558_v32, 2  ;;  %3332 = vmatpush2.msra.mxu0 %v2582_v48  ;;  %7505 = vst [vmem:[#allocation24_spill] sm:$0xff] %v6622_v51 }
 0x26c   : > { %3002 = vmatmul.mubr.f32.gmra.mxu0 %v6582_v49  ;;  %2786 = vmatprep.mubr.f32.mxu1 %v6586_v43  ;;  %v2371_v49 = vrot.slane %v6560_v54, 2  ;;  %v6606_v43 = vsel %vm446_vm0, %v2259_v44, %v2261_v9  ;;  %v2139_v44 = vld [vmem:[#allocation3 + $0x130] sm:$0x3] }
 0x26d   : > { %3006 = vmatprep.mubr.f32.mxu0 %v6560_v54  ;;  %7503 = vst [vmem:[#allocation13_spill] sm:$0xff] %v6606_v43  ;;  %v2581_v9 = vld [vmem:[%s7307_s3 + $0x3c0] sm:$0xff]  ;;  %v2266_v48 = vrot.slane %v2139_v44, 1  ;;  %3333 = vmatprep.subr.mxu0 %v6428_v3 }
 0x26e   : > { %v6618_v58 = vsel %vm559_vm1, %v2370_v34, %v2371_v49  ;;  %v6630_v34 = vld [vmem:[#allocation3 + $0x138] sm:$0xff]  ;;  %3334 = vmatpush2.msra.mxu0 %v2581_v9 }
 0x26f   : > { %2787 = vmatmul.mubr.f32.gmra.mxu1 %v6558_v32  ;;  %7504 = vst [vmem:[#allocation23_spill] sm:$0xff] %v6618_v58  ;;  %7506 = vst [vmem:[#allocation20_spill] sm:$0xff] %v6630_v34  ;;  %v6632_v32 = vld [vmem:[#allocation3 + $0x140] sm:$0xff]  ;;  %3335 = vmatprep.subr.mxu0 %v6428_v3 }
 0x270   : > { %3007 = vmatmul.mubr.f32.gmra.mxu0 %v6600_v47  ;;  %2791 = vmatprep.mubr.f32.mxu1 %v6606_v43  ;;  %v2373_v43 = vrot.slane %v2136_v7, 2  ;;  %7507 = vst [vmem:[#allocation27_spill] sm:$0xff] %v6632_v32  ;;  %v2268_v7 = vrot.slane %v6630_v34, 1  ;;  %v2269_v47 = vrot.slane %v6632_v32, 1 }
 0x271   : > { %3011 = vmatprep.mubr.f32.mxu0 %v6594_v23 }
 0x272   : > { %v6636_v59 = vsel %vm559_vm1, %v2371_v49, %v2373_v43  ;;  %v2580_v49 = vld [vmem:[%s7307_s3 + $0x3b8] sm:$0xff]  ;;  %v6658_v9 = vsel %vm446_vm0, %v2268_v7, %v2269_v47 }
 0x273   : > { %2792 = vmatmul.mubr.f32.gmra.mxu1 %v6560_v54  ;;  %7508 = vst [vmem:[#allocation28_spill] sm:$0xff] %v6636_v59  ;;  %v2375_v54 = vrot.slane %v6594_v23, 2  ;;  %3336 = vmatpush2.msra.mxu0 %v2580_v49  ;;  %7511 = vst [vmem:[#allocation26_spill] sm:$0xff] %v6658_v9 }
 0x274   : > { %3012 = vmatmul.mubr.f32.gmra.mxu0 %v6618_v58  ;;  %2796 = vmatprep.mubr.f32.mxu1 %v6622_v51  ;;  %v2376_v58 = vrot.slane %v6596_v5, 2  ;;  %v6642_v51 = vsel %vm446_vm0, %v2264_v17, %v2266_v48  ;;  %v2142_v17 = vld [vmem:[#allocation3 + $0x148] sm:$0x3]  ;;  %v2579_v48 = vld [vmem:[%s7307_s3 + $0x3b0] sm:$0xff] }
 0x275   : > { %3016 = vmatprep.mubr.f32.mxu0 %v6596_v5  ;;  %7509 = vst [vmem:[#allocation19_spill] sm:$0xff] %v6642_v51  ;;  %v2271_v49 = vrot.slane %v2142_v17, 1  ;;  %3337 = vmatprep.subr.mxu0 %v6428_v3 }
 0x276   : > { %v6654_v43 = vsel %vm559_vm1, %v2375_v54, %v2376_v58  ;;  %v6666_v54 = vld [vmem:[#allocation3 + $0x150] sm:$0xff]  ;;  %3338 = vmatpush2.msra.mxu0 %v2579_v48 }
 0x277   : > { %2797 = vmatmul.mubr.f32.gmra.mxu1 %v6594_v23  ;;  %7510 = vst [vmem:[#allocation29_spill] sm:$0xff] %v6654_v43  ;;  %v6668_v23 = vld [vmem:[#allocation3 + $0x158] sm:$0xff]  ;;  %3339 = vmatprep.subr.mxu0 %v6428_v3 }
 0x278   : > { %3017 = vmatmul.mubr.f32.gmra.mxu0 %v6636_v59  ;;  %2801 = vmatprep.mubr.f32.mxu1 %v6642_v51  ;;  %v2378_v51 = vrot.slane %v2139_v44, 2  ;;  %7512 = vst [vmem:[#allocation31_spill] sm:$0xff] %v6668_v23  ;;  %v2273_v44 = vrot.slane %v6666_v54, 1  ;;  %v2274_v59 = vrot.slane %v6668_v23, 1 }
 0x279   : > { %3021 = vmatprep.mubr.f32.mxu0 %v6630_v34 }
 0x27a   : > { %v6672_v7 = vsel %vm559_vm1, %v2376_v58, %v2378_v51  ;;  %v2578_v58 = vld [vmem:[%s7307_s3 + $0x3a8] sm:$0xff]  ;;  %v6694_v48 = vsel %vm446_vm0, %v2273_v44, %v2274_v59 }
 0x27b   : > { %2802 = vmatmul.mubr.f32.gmra.mxu1 %v6596_v5  ;;  %7513 = vst [vmem:[#allocation32_spill] sm:$0xff] %v6672_v7  ;;  %v2380_v5 = vrot.slane %v6630_v34, 2  ;;  %3340 = vmatpush2.msra.mxu0 %v2578_v58  ;;  %7516 = vst [vmem:[#allocation34_spill] sm:$0xff] %v6694_v48 }
 0x27c   : > { %3022 = vmatmul.mubr.f32.gmra.mxu0 %v6654_v43  ;;  %2806 = vmatprep.mubr.f32.mxu1 %v6658_v9  ;;  %v2381_v43 = vrot.slane %v6632_v32, 2  ;;  %v6678_v9 = vsel %vm446_vm0, %v2269_v47, %v2271_v49  ;;  %v2145_v47 = vld [vmem:[#allocation3 + $0x160] sm:$0x3]  ;;  %v2577_v49 = vld [vmem:[%s7307_s3 + $0x3a0] sm:$0xff] }
 0x27d   : > { %3026 = vmatprep.mubr.f32.mxu0 %v6632_v32  ;;  %7514 = vst [vmem:[#allocation25_spill] sm:$0xff] %v6678_v9  ;;  %v2276_v58 = vrot.slane %v2145_v47, 1  ;;  %3341 = vmatprep.subr.mxu0 %v6428_v3 }
 0x27e   : > { %v6690_v51 = vsel %vm559_vm1, %v2380_v5, %v2381_v43  ;;  %v6702_v5 = vld [vmem:[#allocation3 + $0x168] sm:$0xff]  ;;  %3342 = vmatpush2.msra.mxu0 %v2577_v49 }
 0x27f   : > { %2807 = vmatmul.mubr.f32.gmra.mxu1 %v6630_v34  ;;  %7515 = vst [vmem:[#allocation33_spill] sm:$0xff] %v6690_v51  ;;  %v6704_v34 = vld [vmem:[#allocation3 + $0x170] sm:$0xff]  ;;  %3343 = vmatprep.subr.mxu0 %v6428_v3 }
 0x280   : > { %3027 = vmatmul.mubr.f32.gmra.mxu0 %v6672_v7  ;;  %2811 = vmatprep.mubr.f32.mxu1 %v6678_v9  ;;  %v2383_v9 = vrot.slane %v2142_v17, 2  ;;  %v2278_v17 = vrot.slane %v6702_v5, 1  ;;  %v2279_v7 = vrot.slane %v6704_v34, 1 }
 0x281   : > { %3031 = vmatprep.mubr.f32.mxu0 %v6666_v54 }
 0x282   : > { %v6708_v44 = vsel %vm559_vm1, %v2381_v43, %v2383_v9  ;;  %v2576_v43 = vld [vmem:[%s7307_s3 + $0x398] sm:$0xff]  ;;  %v6730_v49 = vsel %vm446_vm0, %v2278_v17, %v2279_v7  ;;  %v2390_v17 = vrot.slane %v6702_v5, 2 }
 0x283   : > { %2812 = vmatmul.mubr.f32.gmra.mxu1 %v6632_v32  ;;  %v2385_v32 = vrot.slane %v6666_v54, 2  ;;  %3344 = vmatpush2.msra.mxu0 %v2576_v43  ;;  %7519 = vst [vmem:[#allocation30_spill] sm:$0xff] %v6730_v49 }
 0x284   : > { %3032 = vmatmul.mubr.f32.gmra.mxu0 %v6690_v51  ;;  %2816 = vmatprep.mubr.f32.mxu1 %v6694_v48  ;;  %v2386_v51 = vrot.slane %v6668_v23, 2  ;;  %v6714_v48 = vsel %vm446_vm0, %v2274_v59, %v2276_v58  ;;  %v2148_v59 = vld [vmem:[#allocation3 + $0x178] sm:$0x3]  ;;  %v2575_v58 = vld [vmem:[%s7307_s3 + $0x390] sm:$0xff] }
 0x285   : > { %3036 = vmatprep.mubr.f32.mxu0 %v6668_v23  ;;  %7517 = vst [vmem:[#allocation35_spill] sm:$0xff] %v6714_v48  ;;  %3345 = vmatprep.subr.mxu0 %v6428_v3 }
 0x286   : > { %v6726_v9 = vsel %vm559_vm1, %v2385_v32, %v2386_v51  ;;  %v2281_v32 = vrot.slane %v2148_v59, 1  ;;  %3346 = vmatpush2.msra.mxu0 %v2575_v58  ;;  %v2393_v58 = vrot.slane %v2148_v59, 2  ;;  %v4207_v59 = vld [vmem:[#allocation3 + $0x38] sm:$0xff] }
 0x287   : > { %2817 = vmatmul.mubr.f32.gmra.mxu1 %v6666_v54  ;;  %7518 = vst [vmem:[#allocation36_spill] sm:$0xff] %v6726_v9  ;;  %3347 = vmatprep.subr.mxu0 %v6428_v3 }
 0x288   : > { %3037 = vmatmul.mubr.f32.gmra.mxu0 %v6708_v44  ;;  %2821 = vmatprep.mubr.f32.mxu1 %v6714_v48  ;;  %v2388_v48 = vrot.slane %v2145_v47, 2  ;;  %v2574_v47 = vld [vmem:[%s7307_s3 + $0x388] sm:$0xff] }
 0x289   : > { %3041 = vmatprep.mubr.f32.mxu0 %v6702_v5  ;;  %3348 = vmatpush2.msra.mxu0 %v2574_v47  ;;  %v7529_v47 = vld [vmem:[#allocation11_spill] sm:$0xff] }
 0x28a   : > { %v6740_v43 = vsel %vm559_vm1, %v2386_v51, %v2388_v48  ;;  %v2573_v48 = vld [vmem:[%s7307_s3 + $0x380] sm:$0xff]  ;;  %3349 = vmatprep.subr.mxu0 %v6428_v3 }
 0x28b   : > { %2822 = vmatmul.mubr.f32.gmra.mxu1 %v6668_v23  ;;  %v2391_v23 = vrot.slane %v6704_v34, 2  ;;  %3350 = vmatpush2.msra.mxu0 %v2573_v48 }
 0x28c   : > { %3042 = vmatmul.mubr.f32.gmra.mxu0 %v6726_v9  ;;  %2826 = vmatprep.mubr.f32.mxu1 %v6730_v49  ;;  %v6746_v9 = vsel %vm446_vm0, %v2279_v7, %v2281_v32  ;;  %v6749_v49 = vld [vmem:[#allocation3 + $0x180] sm:$0xff]  ;;  %v6762_v7 = vld [vmem:[#allocation3 + $0x188] sm:$0xff] }
 0x28d   : > { %3046 = vmatprep.mubr.f32.mxu0 %v6704_v34  ;;  %v6758_v51 = vsel %vm559_vm1, %v2390_v17, %v2391_v23  ;;  %v6771_v32 = vsel %vm559_vm1, %v2391_v23, %v2393_v58  ;;  %v2603_v17 = vld [vmem:[%s7307_s3 + $0x470] sm:$0xff]  ;;  %v2602_v23 = vld [vmem:[%s7307_s3 + $0x468] sm:$0xff] }
 0x28e   : > { %v7530_v58 = vld [vmem:[#allocation22_spill] sm:$0xff] }
 0x28f   : > { %2827 = vmatmul.mubr.f32.gmra.mxu1 %v6702_v5 }
 0x290   : > { %3047 = vmatmul.mubr.f32.gmra.mxu0 %v6740_v43  ;;  %2831 = vmatprep.mubr.f32.mxu1 %v6746_v9 }
 0x291   : > { %3051 = vmatprep.mubr.f32.mxu0 %v6749_v49 }
 0x293   : > { %2832 = vmatmul.mubr.f32.gmra.mxu1 %v6704_v34 }
 0x294   : > { %3052 = vmatmul.mubr.f32.gmra.mxu0 %v6758_v51  ;;  %3126 = vmatprep.mubr.f32.mxu1 %v6222_v36  ;;  %v4205_v36 = vld [vmem:[%s7307_s3 + $0x478] sm:$0xff] }
 0x295   : > { %3056 = vmatprep.mubr.f32.mxu0 %v6762_v7 }
 0x297   : > { %3127 = vmatmul.mubr.f32.vlgmr.msra.gmra.mxu1 %v6198_v40  ;;  %v4206_v40 = vld [vmem:[#allocation3 + $0x30] sm:$0xff] }
 0x298   : > { %3057 = vmatmul.mubr.f32.gmra.mxu0 %v6771_v32  ;;  %3131 = vmatprep.mubr.f32.mxu1 %v6240_v57  ;;  %v2601_v57 = vld [vmem:[%s7307_s3 + $0x460] sm:$0xff] }
 0x299   : > { %4112 = vmatpush3.msra.mxu1 %v4205_v36  ;;  %3351 = vmatprep.mubr.f32.mxu0 %v6226_v63 }
 0x29a   : > { %4113 = vmatprep.subr.mxu1 %v2603_v17 }
 0x29b   : > { %4114 = vmatpush3.msra.mxu1 %v2603_v17  ;;  %v7531_v17 = vld [vmem:[#allocation18_spill] sm:$0xff] }
 0x29c   : > { %3132 = vmatmul.mubr.f32.gmra.mxu1 %v6209_v33  ;;  %3352 = vmatmul.mubr.f32.vlgmr.msra.gmra.mxu0 %v4206_v40  ;;  %v2600_v33 = vld [vmem:[%s7307_s3 + $0x458] sm:$0xff] }
 0x29d   : > { %3136 = vmatprep.mubr.f32.mxu1 %v6262_v16  ;;  %3356 = vmatprep.mubr.f32.mxu0 %v6248_v37 }
 0x29e   : > { %4115 = vmatprep.subr.mxu1 %v2602_v23 }
 0x29f   : > { %4116 = vmatpush3.msra.mxu1 %v2602_v23 }
 0x2a0   : > { %3137 = vmatmul.mubr.f32.gmra.mxu1 %v6226_v63  ;;  %3357 = vmatmul.mubr.f32.gmra.mxu0 %v4207_v59  ;;  %v2599_v63 = vld [vmem:[%s7307_s3 + $0x450] sm:$0xff] }
 0x2a1   : > { %3141 = vmatprep.mubr.f32.mxu1 %v6280_v12  ;;  %3361 = vmatprep.mubr.f32.mxu0 %v6266_v46 }
 0x2a2   : > { %4117 = vmatprep.subr.mxu1 %v2601_v57 }
 0x2a3   : > { %4118 = vmatpush3.msra.mxu1 %v2601_v57 }
 0x2a4   : > { %3142 = vmatmul.mubr.f32.gmra.mxu1 %v6248_v37  ;;  %3362 = vmatmul.mubr.f32.gmra.mxu0 %v6235_v61  ;;  %v2598_v61 = vld [vmem:[%s7307_s3 + $0x448] sm:$0xff]  ;;  %v2596_v37 = vld [vmem:[%s7307_s3 + $0x438] sm:$0xff] }
 0x2a5   : > { %3146 = vmatprep.mubr.f32.mxu1 %v6302_v8  ;;  %3366 = vmatprep.mubr.f32.mxu0 %v6288_v50 }
 0x2a6   : > { %4119 = vmatprep.subr.mxu1 %v2600_v33 }
 0x2a7   : > { %4120 = vmatpush3.msra.mxu1 %v2600_v33  ;;  %v7532_v33 = vld [vmem:[#allocation9_spill] sm:$0xff] }
 0x2a8   : > { %3147 = vmatmul.mubr.f32.gmra.mxu1 %v6266_v46  ;;  %3367 = vmatmul.mubr.f32.gmra.mxu0 %v6237_v25  ;;  %v2597_v25 = vld [vmem:[%s7307_s3 + $0x440] sm:$0xff]  ;;  %v2595_v46 = vld [vmem:[%s7307_s3 + $0x430] sm:$0xff] }
 0x2a9   : > { %3151 = vmatprep.mubr.f32.mxu1 %v6320_v30  ;;  %3371 = vmatprep.mubr.f32.mxu0 %v6306_v42 }
 0x2aa   : > { %4121 = vmatprep.subr.mxu1 %v2599_v63 }
 0x2ab   : > { %4122 = vmatpush3.msra.mxu1 %v2599_v63 }
 0x2ac   : > { %3152 = vmatmul.mubr.f32.gmra.mxu1 %v6288_v50  ;;  %3372 = vmatmul.mubr.f32.gmra.mxu0 %v6275_v18  ;;  %v2594_v18 = vld [vmem:[%s7307_s3 + $0x428] sm:$0xff]  ;;  %v2592_v50 = vld [vmem:[%s7307_s3 + $0x418] sm:$0xff] }
 0x2ad   : > { %3156 = vmatprep.mubr.f32.mxu1 %v6342_v39  ;;  %3376 = vmatprep.mubr.f32.mxu0 %v6328_v28 }
 0x2ae   : > { %4123 = vmatprep.subr.mxu1 %v2598_v61 }
 0x2af   : > { %4124 = vmatpush3.msra.mxu1 %v2598_v61  ;;  %v7533_v61 = vld [vmem:[#allocation23_spill] sm:$0xff] }
 0x2b0   : > { %3157 = vmatmul.mubr.f32.gmra.mxu1 %v6306_v42  ;;  %3377 = vmatmul.mubr.f32.gmra.mxu0 %v6277_v52  ;;  %v2593_v52 = vld [vmem:[%s7307_s3 + $0x420] sm:$0xff]  ;;  %v2591_v42 = vld [vmem:[%s7307_s3 + $0x410] sm:$0xff] }
 0x2b1   : > { %3161 = vmatprep.mubr.f32.mxu1 %v6363_v35  ;;  %3381 = vmatprep.mubr.f32.mxu0 %v6348_v38 }
 0x2b2   : > { %4125 = vmatprep.subr.mxu1 %v2597_v25 }
 0x2b3   : > { %4126 = vmatpush3.msra.mxu1 %v2597_v25  ;;  %v7534_v25 = vld [vmem:[#allocation13_spill] sm:$0xff] }
 0x2b4   : > { %3162 = vmatmul.mubr.f32.gmra.mxu1 %v6328_v28  ;;  %3382 = vmatmul.mubr.f32.gmra.mxu0 %v6315_v31  ;;  %v2590_v31 = vld [vmem:[%s7307_s3 + $0x408] sm:$0xff]  ;;  %v7520_v28 = vld [vmem:[#allocation4_spill] sm:$0xff] }
 0x2b5   : > { %3166 = vmatprep.mubr.f32.mxu1 %v6387_v11  ;;  %3386 = vmatprep.mubr.f32.mxu0 %v6371_v13 }
 0x2b6   : > { %4127 = vmatprep.subr.mxu1 %v2596_v37 }
 0x2b7   : > { %4128 = vmatpush3.msra.mxu1 %v2596_v37 }
 0x2b8   : > { %3167 = vmatmul.mubr.f32.gmra.mxu1 %v6348_v38  ;;  %3387 = vmatmul.mubr.f32.gmra.mxu0 %v6317_v27  ;;  %v2589_v27 = vld [vmem:[%s7307_s3 + $0x400] sm:$0xff] }
 0x2b9   : > { %3171 = vmatprep.mubr.f32.mxu1 %v6410_v45  ;;  %3391 = vmatprep.mubr.f32.mxu0 %v6393_v6  ;;  %v6886_v38 = vld [vmem:[%s7308_s4] ss:$0 sm:$0xff] }
 0x2ba   : > { %4129 = vmatprep.subr.mxu1 %v2595_v46 }
 0x2bb   : > { %4130 = vmatpush3.msra.mxu1 %v2595_v46 }
 0x2bc   : > { %3172 = vmatmul.mubr.f32.gmra.mxu1 %v6371_v13  ;;  %3392 = vmatmul.mubr.f32.gmra.mxu0 %v6357_v21  ;;  %v7521_v21 = vld [vmem:[#allocation6_spill] sm:$0xff]  ;;  %v7523_v13 = vld [vmem:[#allocation12_spill] sm:$0xff] }
 0x2bd   : > { %3176 = vmatprep.mubr.f32.mxu1 %v6433_v4  ;;  %3396 = vmatprep.mubr.f32.mxu0 %v6418_v2 }
 0x2be   : > { %4131 = vmatprep.subr.mxu1 %v2594_v18 }
 0x2bf   : > { %4132 = vmatpush3.msra.mxu1 %v2594_v18 }
 0x2c0   : > { %3177 = vmatmul.mubr.f32.gmra.mxu1 %v6393_v6  ;;  %3397 = vmatmul.mubr.f32.gmra.mxu0 %v6359_v1  ;;  %v7522_v1 = vld [vmem:[#allocation16_spill] sm:$0xff]  ;;  %v7524_v6 = vld [vmem:[#allocation7_spill] sm:$0xff] }
 0x2c1   : > { %3181 = vmatprep.mubr.f32.mxu1 %v6452_v15  ;;  %3401 = vmatprep.mubr.f32.mxu0 %v6437_v26 }
 0x2c2   : > { %4133 = vmatprep.subr.mxu1 %v2593_v52 }
 0x2c3   : > { %4134 = vmatpush3.msra.mxu1 %v2593_v52 }
 0x2c4   : > { %3182 = vmatmul.mubr.f32.gmra.mxu1 %v6418_v2  ;;  %3402 = vmatmul.mubr.f32.gmra.mxu0 %v6403_v20  ;;  %v2679_v20 = vadd.f32 %v6886_v38, %v7524_v6  ;;  %v7525_v2 = vld [vmem:[#allocation10_spill] sm:$0xff] }
 0x2c5   : > { %3186 = vmatprep.mubr.f32.mxu1 %v6470_v60  ;;  %3406 = vmatprep.mubr.f32.mxu0 %v6458_v56 }
 0x2c6   : > { %4135 = vmatprep.subr.mxu1 %v2592_v50 }
 0x2c7   : > { %4136 = vmatpush3.msra.mxu1 %v2592_v50 }
 0x2c8   : > { %3187 = vmatmul.mubr.f32.gmra.mxu1 %v6437_v26  ;;  %3407 = vmatmul.mubr.f32.gmra.mxu0 %v6405_v22 }
 0x2c9   : > { %3191 = vmatprep.mubr.f32.mxu1 %v6490_v14  ;;  %3411 = vmatprep.mubr.f32.mxu0 %v6474_v55 }
 0x2ca   : > { %4137 = vmatprep.subr.mxu1 %v2591_v42 }
 0x2cb   : > { %4138 = vmatpush3.msra.mxu1 %v2591_v42  ;;  %v7535_v42 = vld [vmem:[#allocation15_spill] sm:$0xff] }
 0x2cc   : > { %3192 = vmatmul.mubr.f32.gmra.mxu1 %v6458_v56  ;;  %3412 = vmatmul.mubr.f32.gmra.mxu0 %v6446_v29  ;;  %v7526_v29 = vld [vmem:[#allocation17_spill] sm:$0xff] }
 0x2cd   : > { %3196 = vmatprep.mubr.f32.mxu1 %v6510_v24  ;;  %3416 = vmatprep.mubr.f32.mxu0 %v6496_v62 }
 0x2ce   : > { %4139 = vmatprep.subr.mxu1 %v2590_v31 }
 0x2cf   : > { %4140 = vmatpush3.msra.mxu1 %v2590_v31 }
 0x2d0   : > { %3197 = vmatmul.mubr.f32.gmra.mxu1 %v6474_v55  ;;  %3417 = vmatmul.mubr.f32.gmra.mxu0 %v6448_v53  ;;  %v7527_v53 = vld [vmem:[#allocation8_spill] sm:$0xff]  ;;  %v7528_v55 = vld [vmem:[#allocation5_spill] sm:$0xff] }
 0x2d1   : > { %3201 = vmatprep.mubr.f32.mxu1 %v6528_v41  ;;  %3421 = vmatprep.mubr.f32.mxu0 %v6514_v10 }
 0x2d2   : > { %4141 = vmatprep.subr.mxu1 %v2589_v27 }
 0x2d3   : > { %4142 = vmatpush3.msra.mxu1 %v2589_v27  ;;  %v7536_v27 = vld [vmem:[#allocation28_spill] sm:$0xff] }
 0x2d4   : > { %3202 = vmatmul.mubr.f32.gmra.mxu1 %v6496_v62  ;;  %3422 = vmatmul.mubr.f32.gmra.mxu0 %v6482_v19  ;;  %v2684_v19 = vadd.f32 %v6886_v38, %v7528_v55  ;;  %v7540_v55 = vld [vmem:[#allocation19_spill] sm:$0xff] }
 0x2d5   : > { %3206 = vmatprep.mubr.f32.mxu1 %v6546_v0  ;;  %3426 = vmatprep.mubr.f32.mxu0 %v7520_v28 }
 0x2d8   : > { %3207 = vmatmul.mubr.f32.gmra.mxu1 %v6514_v10  ;;  %3427 = vmatmul.mubr.f32.gmra.mxu0 %v7521_v21 }
 0x2d9   : > { %3211 = vmatprep.mubr.f32.mxu1 %v7522_v1  ;;  %3431 = vmatprep.mubr.f32.mxu0 %v7523_v13 }
 0x2dc   : > { %3212 = vmatmul.mubr.f32.gmra.mxu1 %v7520_v28  ;;  %v2903_v22 = vpop.f32.mrf.mxu0  ;;  %3432 = vmatmul.mubr.f32.gmra.mxu0 %v7525_v2  ;;  %v7537_v28 = vld [vmem:[#allocation24_spill] sm:$0xff]  ;;  %v7538_v2 = vld [vmem:[#allocation14_spill] sm:$0xff] }
 0x2dd   : > { %v6896_v26 = vadd.f32 %v2903_v22, %v2679_v20  ;;  %3216 = vmatprep.mubr.f32.mxu1 %v7526_v29  ;;  %3436 = vmatprep.mubr.f32.mxu0 %v7527_v53 }
 0x2de   : > { %v2905_v56 = vpop.f32.mrf.mxu0 }
 0x2df   : > { %v2688_v62 = vpop.f32.mrf.mxu1  ;;  %v7539_v56 = vld [vmem:[#allocation29_spill] sm:$0xff] }
 0x2e0   : > { %3217 = vmatmul.mubr.f32.gmra.mxu1 %v7523_v13  ;;  %v2908_v10 = vpop.f32.mrf.mxu0  ;;  %3437 = vmatmul.mubr.f32.gmra.mxu0 %v7529_v47  ;;  %v2689_v40 = vadd.f32 %v6886_v38, %v2688_v62 }
 0x2e1   : > { %v6904_v48 = vadd.f32 %v2908_v10, %v2684_v19  ;;  %3221 = vmatprep.mubr.f32.mxu1 %v7530_v58  ;;  %3441 = vmatprep.mubr.f32.mxu0 %v7531_v17  ;;  %v2690_v36 = vpop.f32.mrf.mxu1 }
 0x2e2   : > { %v2910_v23 = vpop.f32.mrf.mxu0  ;;  %v7541_v36 = vld [vmem:[#allocation21_spill] sm:$0xff] }
 0x2e3   : > { %v2693_v57 = vpop.f32.mrf.mxu1 }
 0x2e4   : > { %3222 = vmatmul.mubr.f32.gmra.mxu1 %v7527_v53  ;;  %v2913_v59 = vpop.f32.mrf.mxu0  ;;  %3442 = vmatmul.mubr.f32.gmra.mxu0 %v7532_v33  ;;  %v2694_v18 = vadd.f32 %v6886_v38, %v2693_v57  ;;  %v7543_v57 = vld [vmem:[#allocation26_spill] sm:$0xff] }
 0x2e5   : > { %v6911_v63 = vadd.f32 %v2913_v59, %v2689_v40  ;;  %3226 = vmatprep.mubr.f32.mxu1 %v7533_v61  ;;  %3446 = vmatprep.mubr.f32.mxu0 %v7534_v25  ;;  %v2695_v37 = vpop.f32.mrf.mxu1  ;;  %v7542_v40 = vld [vmem:[#allocation32_spill] sm:$0xff] }
 0x2e6   : > { %v2915_v46 = vpop.f32.mrf.mxu0 }
 0x2e7   : > { %v2698_v52 = vpop.f32.mrf.mxu1 }
 0x2e8   : > { %3227 = vmatmul.mubr.f32.gmra.mxu1 %v7531_v17  ;;  %v2918_v50 = vpop.f32.mrf.mxu0  ;;  %3447 = vmatmul.mubr.f32.gmra.mxu0 %v7535_v42  ;;  %v2699_v6 = vadd.f32 %v6886_v38, %v2698_v52  ;;  %v7546_v42 = vld [vmem:[#allocation25_spill] sm:$0xff] }
 0x2e9   : > { %v6918_v31 = vadd.f32 %v2918_v50, %v2694_v18  ;;  %3231 = vmatprep.mubr.f32.mxu1 %v7536_v27  ;;  %3451 = vmatprep.mubr.f32.mxu0 %v7537_v28  ;;  %v2700_v21 = vpop.f32.mrf.mxu1  ;;  %v7544_v18 = vld [vmem:[#allocation20_spill] sm:$0xff]  ;;  %v7545_v50 = vld [vmem:[#allocation33_spill] sm:$0xff] }
 0x2ea   : > { %v2920_v13 = vpop.f32.mrf.mxu0 }
 0x2eb   : > { %v2703_v20 = vpop.f32.mrf.mxu1 }
 0x2ec   : > { %3232 = vmatmul.mubr.f32.gmra.mxu1 %v7534_v25  ;;  %v2923_v22 = vpop.f32.mrf.mxu0  ;;  %3452 = vmatmul.mubr.f32.gmra.mxu0 %v7538_v2  ;;  %v2704_v10 = vadd.f32 %v6886_v38, %v2703_v20 }
 0x2ed   : > { %v6925_v53 = vadd.f32 %v2923_v22, %v2699_v6  ;;  %3236 = vmatprep.mubr.f32.mxu1 %v7539_v56  ;;  %3456 = vmatprep.mubr.f32.mxu0 %v7540_v55  ;;  %v2705_v19 = vpop.f32.mrf.mxu1  ;;  %v7547_v22 = vld [vmem:[#allocation27_spill] sm:$0xff] }
 0x2ee   : > { %v2925_v62 = vpop.f32.mrf.mxu0 }
 0x2ef   : > { %v2708_v47 = vpop.f32.mrf.mxu1 }
 0x2f0   : > { %3237 = vmatmul.mubr.f32.gmra.mxu1 %v7537_v28  ;;  %v2928_v17 = vpop.f32.mrf.mxu0  ;;  %3457 = vmatmul.mubr.f32.gmra.mxu0 %v7541_v36  ;;  %v2709_v25 = vadd.f32 %v6886_v38, %v2708_v47 }
 0x2f1   : > { %v6932_v23 = vadd.f32 %v2928_v17, %v2704_v10  ;;  %3241 = vmatprep.mubr.f32.mxu1 %v7542_v40  ;;  %3461 = vmatprep.mubr.f32.mxu0 %v7543_v57  ;;  %v2710_v59 = vpop.f32.mrf.mxu1 }
 0x2f2   : > { %v2930_v33 = vpop.f32.mrf.mxu0  ;;  %v7550_v59 = vld [vmem:[#allocation35_spill] sm:$0xff] }
 0x2f3   : > { %v2713_v37 = vpop.f32.mrf.mxu1 }
 0x2f4   : > { %3242 = vmatmul.mubr.f32.gmra.mxu1 %v7540_v55  ;;  %v2933_v46 = vpop.f32.mrf.mxu0  ;;  %3462 = vmatmul.mubr.f32.gmra.mxu0 %v7544_v18  ;;  %v2714_v13 = vadd.f32 %v6886_v38, %v2713_v37  ;;  %v7548_v55 = vld [vmem:[#allocation34_spill] sm:$0xff] }
 0x2f5   : > { %v6939_v52 = vadd.f32 %v2933_v46, %v2709_v25  ;;  %3246 = vmatprep.mubr.f32.mxu1 %v7545_v50  ;;  %3466 = vmatprep.mubr.f32.mxu0 %v7546_v42  ;;  %v2715_v28 = vpop.f32.mrf.mxu1 }
 0x2f6   : > { %v2935_v21 = vpop.f32.mrf.mxu0  ;;  %v7551_v28 = vld [vmem:[#allocation31_spill] sm:$0xff] }
 0x2f7   : > { %v2718_v6 = vpop.f32.mrf.mxu1 }
 0x2f8   : > { %3247 = vmatmul.mubr.f32.gmra.mxu1 %v7543_v57  ;;  %v2938_v20 = vpop.f32.mrf.mxu0  ;;  %3467 = vmatmul.mubr.f32.gmra.mxu0 %v7547_v22  ;;  %v2719_v10 = vadd.f32 %v6886_v38, %v2718_v6  ;;  %v7549_v57 = vld [vmem:[#allocation36_spill] sm:$0xff] }
 0x2f9   : > { %v6946_v2 = vadd.f32 %v2938_v20, %v2714_v13  ;;  %3251 = vmatprep.mubr.f32.mxu1 %v6708_v44  ;;  %3471 = vmatprep.mubr.f32.mxu0 %v7548_v55  ;;  %v2720_v19 = vpop.f32.mrf.mxu1 }
 0x2fa   : > { %v2940_v62 = vpop.f32.mrf.mxu0  ;;  %v2431_v19 = vrot.slane %v6762_v7, 1 }
 0x2fb   : > { %v2723_v47 = vpop.f32.mrf.mxu1 }
 0x2fc   : > { %3252 = vmatmul.mubr.f32.gmra.mxu1 %v7546_v42  ;;  %v2943_v17 = vpop.f32.mrf.mxu0  ;;  %3472 = vmatmul.mubr.f32.gmra.mxu0 %v6666_v54  ;;  %v2724_v37 = vadd.f32 %v6886_v38, %v2723_v47  ;;  %v7552_v54 = vld [vmem:[#allocation30_spill] sm:$0xff] }
 0x2fd   : > { %v6953_v36 = vadd.f32 %v2943_v17, %v2719_v10  ;;  %3256 = vmatprep.mubr.f32.mxu1 %v7549_v57  ;;  %3476 = vmatprep.mubr.f32.mxu0 %v7550_v59  ;;  %v2725_v33 = vpop.f32.mrf.mxu1 }
 0x2fe   : > { %v2945_v25 = vpop.f32.mrf.mxu0  ;;  %v2151_v33 = vld [vmem:[#allocation3 + $0x190] sm:$0x3] }
 0x2ff   : > { %v2728_v46 = vpop.f32.mrf.mxu1 }
 0x300   : > { %3257 = vmatmul.mubr.f32.gmra.mxu1 %v7548_v55  ;;  %v2948_v18 = vpop.f32.mrf.mxu0  ;;  %3477 = vmatmul.mubr.f32.gmra.mxu0 %v7551_v28  ;;  %v2729_v6 = vadd.f32 %v6886_v38, %v2728_v46  ;;  %v2430_v55 = vrot.slane %v6749_v49, 1  ;;  %v2438_v46 = vrot.slane %v6762_v7, 2 }
 0x301   : > { %v6960_v42 = vadd.f32 %v2948_v18, %v2724_v37  ;;  %3261 = vmatprep.mubr.f32.mxu1 %v6740_v43  ;;  %3481 = vmatprep.mubr.f32.mxu0 %v7552_v54  ;;  %v2730_v21 = vpop.f32.mrf.mxu1  ;;  %v2437_v37 = vrot.slane %v6749_v49, 2 }
 0x302   : > { %v2950_v13 = vpop.f32.mrf.mxu0 }
 0x303   : > { %v2733_v20 = vpop.f32.mrf.mxu1  ;;  %v2433_v13 = vrot.slane %v2151_v33, 1 }
 0x304   : > { %3262 = vmatmul.mubr.f32.gmra.mxu1 %v7550_v59  ;;  %v2953_v22 = vpop.f32.mrf.mxu0  ;;  %3482 = vmatmul.mubr.f32.gmra.mxu0 %v6702_v5  ;;  %v2734_v17 = vadd.f32 %v6886_v38, %v2733_v20  ;;  %v2432_v5 = vsel %vm446_vm0, %v2430_v55, %v2431_v19  ;;  %v6984_v20 = vld [vmem:[#allocation3 + $0x1a8] sm:$0x3]  ;;  %v6988_v55 = vsel %vm559_vm1, %v2437_v37, %v2438_v46 }
 0x305   : > { %v6969_v62 = vadd.f32 %v2953_v22, %v2729_v6  ;;  %3266 = vmatprep.mubr.f32.mxu1 %v6758_v51  ;;  %3486 = vmatprep.mubr.f32.mxu0 %v6746_v9  ;;  %v2735_v10 = vpop.f32.mrf.mxu1  ;;  %v2447_v6 = vrot.slane %v6428_v3, 1 }
 0x306   : > { %v2955_v47 = vpop.f32.mrf.mxu0  ;;  %v2434_v10 = vsel %vm446_vm0, %v2431_v19, %v2433_v13 }
 0x307   : > { %v2738_v25 = vpop.f32.mrf.mxu1 }
 0x308   : > { %3267 = vmatmul.mubr.f32.gmra.mxu1 %v7552_v54  ;;  %v2958_v59 = vpop.f32.mrf.mxu0  ;;  %3487 = vmatmul.mubr.f32.gmra.mxu0 %v6704_v34  ;;  %v2739_v54 = vadd.f32 %v6886_v38, %v2738_v25  ;;  %v2440_v25 = vrot.slane %v2151_v33, 2 }
 0x309   : > { %v6979_v18 = vadd.f32 %v2958_v59, %v2734_v17  ;;  %3271 = vmatprep.mubr.f32.mxu1 %v6771_v32  ;;  %3491 = vmatprep.mubr.f32.mxu0 %v2432_v5  ;;  %v2740_v28 = vpop.f32.mrf.mxu1  ;;  %v2450_v59 = vrot.slane %v6984_v20, 1 }
 0x30a   : > { %v2960_v21 = vpop.f32.mrf.mxu0 }
 0x30b   : > { %v2743_v34 = vpop.f32.mrf.mxu1  ;;  %v6998_v21 = vsel %vm559_vm1, %v2438_v46, %v2440_v25  ;;  %v2451_v33 = vsel %vm446_vm0, %v2447_v6, %v2450_v59 }
 0x30c   : > { %3272 = vmatmul.mubr.f32.gmra.mxu1 %v6746_v9  ;;  %v2963_v22 = vpop.f32.mrf.mxu0  ;;  %3492 = vmatmul.mubr.f32.gmra.mxu0 %v6749_v49  ;;  %v2744_v9 = vadd.f32 %v6886_v38, %v2743_v34 }
 0x30d   : > { %v6992_v47 = vadd.f32 %v2963_v22, %v2739_v54  ;;  %3276 = vmatprep.mubr.f32.mxu1 %v6988_v55  ;;  %3496 = vmatprep.mubr.f32.mxu0 %v2434_v10  ;;  %v2745_v3 = vpop.f32.mrf.mxu1  ;;  %v7006_v22 = vld [vmem:[#allocation2] sm:$0xff] }
 0x30e   : > { %v2965_v17 = vpop.f32.mrf.mxu0 }
 0x30f   : > { %v2748_v28 = vpop.f32.mrf.mxu1 }
 0x310   : > { %3277 = vmatmul.mubr.f32.gmra.mxu1 %v2432_v5  ;;  %v2968_v37 = vpop.f32.mrf.mxu0  ;;  %3497 = vmatmul.mubr.f32.gmra.mxu0 %v6762_v7  ;;  %v2749_v54 = vadd.f32 %v6886_v38, %v2748_v28 }
 0x311   : > { %v7001_v49 = vadd.f32 %v2968_v37, %v2744_v9  ;;  %3281 = vmatprep.mubr.f32.mxu1 %v6998_v21  ;;  %3501 = vmatprep.mubr.f32.mxu0 %v2447_v6  ;;  %v2750_v19 = vpop.f32.mrf.mxu1 }
 0x312   : > { %v2970_v13 = vpop.f32.mrf.mxu0 }
 0x313   : > { %v2753_v34 = vpop.f32.mrf.mxu1 }
 0x314   : > { %3282 = vmatmul.mubr.f32.gmra.mxu1 %v2434_v10  ;;  %v2973_v5 = vpop.f32.mrf.mxu0  ;;  %3502 = vmatmul.mubr.f32.gmra.mxu0 %v7006_v22  ;;  %v2754_v17 = vadd.f32 %v6886_v38, %v2753_v34 }
 0x315   : > { %v7009_v46 = vadd.f32 %v2973_v5, %v2749_v54  ;;  %4143 = vmatprep.mubr.f32.mxu1 %v6262_v16  ;;  %3506 = vmatprep.mubr.f32.mxu0 %v2451_v33  ;;  %v2755_v7 = vpop.f32.mrf.mxu1 }
 0x316   : > { %v2975_v3 = vpop.f32.mrf.mxu0 }
 0x317   : > { %v2758_v25 = vpop.f32.mrf.mxu1 }
 0x318   : > { %4144 = vmatmul.mubr.f32.vlgmr.msra.gmra.mxu1 %v6280_v12  ;;  %v2978_v6 = vpop.f32.mrf.mxu0  ;;  %3507 = vmatmul.mubr.f32.gmra.mxu0 %v7006_v22  ;;  %v2759_v28 = vadd.f32 %v6886_v38, %v2758_v25 }
 0x319   : > { %v7015_v10 = vadd.f32 %v2978_v6, %v2754_v17  ;;  %4146 = vmatprep.mubr.f32.mxu1 %v6302_v8  ;;  %v2760_v59 = vpop.f32.mrf.mxu1 }
 0x31a   : > { %v2980_v9 = vpop.f32.mrf.mxu0 }
 0x31b   : > { %v2763_v16 = vpop.f32.mrf.mxu1 }
 0x31c   : > { %4147 = vmatmul.mubr.f32.gmra.mxu1 %v6320_v30  ;;  %v2983_v37 = vpop.f32.mrf.mxu0  ;;  %v2764_v33 = vadd.f32 %v6886_v38, %v2763_v16 }
 0x31d   : > { %v7020_v19 = vadd.f32 %v2983_v37, %v2759_v28  ;;  %4149 = vmatprep.mubr.f32.mxu1 %v6342_v39  ;;  %v2765_v12 = vpop.f32.mrf.mxu1 }
 0x31e   : > { %v2985_v13 = vpop.f32.mrf.mxu0 }
 0x31f   : > { %v2768_v54 = vpop.f32.mrf.mxu1 }
 0x320   : > { %4150 = vmatmul.mubr.f32.gmra.mxu1 %v6363_v35  ;;  %v2988_v8 = vpop.f32.mrf.mxu0  ;;  %v2769_v30 = vadd.f32 %v6886_v38, %v2768_v54 }
 0x321   : > { %v7025_v34 = vadd.f32 %v2988_v8, %v2764_v33  ;;  %4152 = vmatprep.mubr.f32.mxu1 %v6387_v11  ;;  %v2770_v5 = vpop.f32.mrf.mxu1 }
 0x322   : > { %v2990_v7 = vpop.f32.mrf.mxu0 }
 0x323   : > { %v2773_v3 = vpop.f32.mrf.mxu1 }
 0x324   : > { %4153 = vmatmul.mubr.f32.gmra.mxu1 %v6410_v45  ;;  %v2993_v39 = vpop.f32.mrf.mxu0  ;;  %v2774_v35 = vadd.f32 %v6886_v38, %v2773_v3 }
 0x325   : > { %v7030_v17 = vadd.f32 %v2993_v39, %v2769_v30  ;;  %4155 = vmatprep.mubr.f32.mxu1 %v6433_v4  ;;  %v2775_v25 = vpop.f32.mrf.mxu1 }
 0x326   : > { %v2995_v6 = vpop.f32.mrf.mxu0 }
 0x327   : > { %v2778_v59 = vpop.f32.mrf.mxu1 }
 0x328   : > { %4156 = vmatmul.mubr.f32.gmra.mxu1 %v6452_v15  ;;  %v2998_v11 = vpop.f32.mrf.mxu0  ;;  %v2779_v45 = vadd.f32 %v6886_v38, %v2778_v59 }
 0x329   : > { %v7035_v9 = vadd.f32 %v2998_v11, %v2774_v35  ;;  %4158 = vmatprep.mubr.f32.mxu1 %v6470_v60  ;;  %v2780_v28 = vpop.f32.mrf.mxu1 }
 0x32a   : > { %v3000_v16 = vpop.f32.mrf.mxu0 }
 0x32b   : > { %v2783_v37 = vpop.f32.mrf.mxu1 }
 0x32c   : > { %4159 = vmatmul.mubr.f32.gmra.mxu1 %v6490_v14  ;;  %v3003_v4 = vpop.f32.mrf.mxu0  ;;  %v2784_v15 = vadd.f32 %v6886_v38, %v2783_v37 }
 0x32d   : > { %v7040_v12 = vadd.f32 %v3003_v4, %v2779_v45  ;;  %4161 = vmatprep.mubr.f32.mxu1 %v6510_v24  ;;  %v2785_v13 = vpop.f32.mrf.mxu1 }
 0x32e   : > { %v3005_v33 = vpop.f32.mrf.mxu0 }
 0x32f   : > { %v2788_v54 = vpop.f32.mrf.mxu1 }
 0x330   : > { %4162 = vmatmul.mubr.f32.gmra.mxu1 %v6528_v41  ;;  %v3008_v60 = vpop.f32.mrf.mxu0  ;;  %v2789_v14 = vadd.f32 %v6886_v38, %v2788_v54 }
 0x331   : > { %v7045_v8 = vadd.f32 %v3008_v60, %v2784_v15  ;;  %4164 = vmatprep.mubr.f32.mxu1 %v6546_v0  ;;  %v2790_v5 = vpop.f32.mrf.mxu1 }
 0x332   : > { %v3010_v7 = vpop.f32.mrf.mxu0 }
 0x333   : > { %v2793_v30 = vpop.f32.mrf.mxu1 }
 0x334   : > { %4165 = vmatmul.mubr.f32.gmra.mxu1 %v7522_v1  ;;  %v3013_v24 = vpop.f32.mrf.mxu0  ;;  %v2794_v41 = vadd.f32 %v6886_v38, %v2793_v30 }
 0x335   : > { %v7050_v3 = vadd.f32 %v3013_v24, %v2789_v14  ;;  %4167 = vmatprep.mubr.f32.mxu1 %v7526_v29  ;;  %v2795_v39 = vpop.f32.mrf.mxu1 }
 0x336   : > { %v3015_v25 = vpop.f32.mrf.mxu0 }
 0x337   : > { %v2798_v6 = vpop.f32.mrf.mxu1 }
 0x338   : > { %4168 = vmatmul.mubr.f32.gmra.mxu1 %v7530_v58  ;;  %v3018_v0 = vpop.f32.mrf.mxu0  ;;  %v2799_v1 = vadd.f32 %v6886_v38, %v2798_v6 }
 0x339   : > { %v7055_v35 = vadd.f32 %v3018_v0, %v2794_v41  ;;  %4170 = vmatprep.mubr.f32.mxu1 %v7533_v61  ;;  %v2800_v59 = vpop.f32.mrf.mxu1 }
 0x33a   : > { %v3020_v11 = vpop.f32.mrf.mxu0 }
 0x33b   : > { %v2803_v28 = vpop.f32.mrf.mxu1 }
 0x33c   : > { %4171 = vmatmul.mubr.f32.gmra.mxu1 %v7536_v27  ;;  %v3023_v29 = vpop.f32.mrf.mxu0  ;;  %v2804_v58 = vadd.f32 %v6886_v38, %v2803_v28 }
 0x33d   : > { %v7060_v16 = vadd.f32 %v3023_v29, %v2799_v1  ;;  %4173 = vmatprep.mubr.f32.mxu1 %v7539_v56  ;;  %v2805_v45 = vpop.f32.mrf.mxu1 }
 0x33e   : > { %v3025_v37 = vpop.f32.mrf.mxu0 }
 0x33f   : > { %v2808_v4 = vpop.f32.mrf.mxu1 }
 0x340   : > { %4174 = vmatmul.mubr.f32.gmra.mxu1 %v7542_v40  ;;  %v3028_v61 = vpop.f32.mrf.mxu0  ;;  %v2809_v27 = vadd.f32 %v6886_v38, %v2808_v4 }
 0x341   : > { %v7065_v13 = vadd.f32 %v3028_v61, %v2804_v58  ;;  %4176 = vmatprep.mubr.f32.mxu1 %v7545_v50  ;;  %v2810_v33 = vpop.f32.mrf.mxu1 }
 0x342   : > { %v3030_v15 = vpop.f32.mrf.mxu0 }
 0x343   : > { %v2813_v54 = vpop.f32.mrf.mxu1 }
 0x344   : > { %4177 = vmatmul.mubr.f32.gmra.mxu1 %v6708_v44  ;;  %v3033_v56 = vpop.f32.mrf.mxu0  ;;  %v2814_v40 = vadd.f32 %v6886_v38, %v2813_v54  ;;  %v2454_v44 = vrot.slane %v7006_v22, 2 }
 0x345   : > { %v7070_v60 = vadd.f32 %v3033_v56, %v2809_v27  ;;  %4179 = vmatprep.mubr.f32.mxu1 %v7549_v57  ;;  %v2815_v5 = vpop.f32.mrf.mxu1 }
 0x346   : > { %v3035_v7 = vpop.f32.mrf.mxu0 }
 0x347   : > { %v2818_v14 = vpop.f32.mrf.mxu1 }
 0x348   : > { %4180 = vmatmul.mubr.f32.gmra.mxu1 %v6740_v43  ;;  %v3038_v50 = vpop.f32.mrf.mxu0  ;;  %v2819_v25 = vadd.f32 %v6886_v38, %v2818_v14  ;;  %v2457_v43 = vrot.slane %v6984_v20, 2 }
 0x349   : > { %v7075_v30 = vadd.f32 %v3038_v50, %v2814_v40  ;;  %4182 = vmatprep.mubr.f32.mxu1 %v6758_v51  ;;  %v2820_v24 = vpop.f32.mrf.mxu1 }
 0x34a   : > { %v3040_v39 = vpop.f32.mrf.mxu0 }
 0x34b   : > { %v2823_v41 = vpop.f32.mrf.mxu1 }
 0x34c   : > { %4183 = vmatmul.mubr.f32.gmra.mxu1 %v6771_v32  ;;  %v3043_v57 = vpop.f32.mrf.mxu0  ;;  %v2824_v51 = vadd.f32 %v6886_v38, %v2823_v41  ;;  %v2458_v32 = vsel %vm559_vm1, %v2454_v44, %v2457_v43 }
 0x34d   : > { %v7081_v6 = vadd.f32 %v3043_v57, %v2819_v25  ;;  %4185 = vmatprep.mubr.f32.mxu1 %v6988_v55  ;;  %v2825_v0 = vpop.f32.mrf.mxu1 }
 0x34e   : > { %v3045_v59 = vpop.f32.mrf.mxu0 }
 0x34f   : > { %v2828_v11 = vpop.f32.mrf.mxu1 }
 0x350   : > { %4186 = vmatmul.mubr.f32.gmra.mxu1 %v6998_v21  ;;  %v3048_v22 = vpop.f32.mrf.mxu0  ;;  %v2829_v45 = vadd.f32 %v6886_v38, %v2828_v11 }
 0x351   : > { %v7087_v1 = vadd.f32 %v3048_v22, %v2824_v51  ;;  %4188 = vmatprep.mubr.f32.mxu1 %v2454_v44  ;;  %v2830_v28 = vpop.f32.mrf.mxu1 }
 0x352   : > { %v3050_v29 = vpop.f32.mrf.mxu0 }
 0x353   : > { %v2833_v55 = vpop.f32.mrf.mxu1 }
 0x354   : > { %4189 = vmatmul.mubr.f32.gmra.mxu1 %v2458_v32  ;;  %v3053_v20 = vpop.f32.mrf.mxu0  ;;  %v2834_v61 = vadd.f32 %v6886_v38, %v2833_v55 }
 0x355   : > { %v7091_v37 = vadd.f32 %v3053_v20, %v2829_v45  ;;  %v2835_v58 = vpop.f32.mrf.mxu1 }
 0x356   : > { %v3055_v4 = vpop.f32.mrf.mxu0 }
 0x357   : > { %v3128_v21 = vpop.f32.mrf.mxu1 }
 0x358   : > { %v3058_v33 = vpop.f32.mrf.mxu0  ;;  %v3129_v15 = vadd.f32 %v3128_v21, %v6896_v26 }
 0x359   : > { %v7095_v27 = vadd.f32 %v3058_v33, %v2834_v61  ;;  %v3130_v54 = vpop.f32.mrf.mxu1 }
 0x35a   : > { %v3060_v56 = vpop.f32.mrf.mxu0 }
 0x35c   : > { %v3133_v5 = vpop.f32.mrf.mxu1  ;;  %v3353_v7 = vpop.f32.mrf.mxu0 }
 0x35d   : > { %v3134_v40 = vadd.f32 %v3133_v5, %v6904_v48  ;;  %v7098_v14 = vadd.f32 %v3353_v7, %v3129_v15 }
 0x35e   : > { %v3135_v50 = vpop.f32.mrf.mxu1  ;;  %v3355_v24 = vpop.f32.mrf.mxu0 }
 0x360   : > { %v3138_v39 = vpop.f32.mrf.mxu1  ;;  %v3358_v44 = vpop.f32.mrf.mxu0 }
 0x361   : > { %v3139_v38 = vadd.f32 %v3138_v39, %v6911_v63  ;;  %v7101_v25 = vadd.f32 %v3358_v44, %v3134_v40 }
 0x362   : > { %v3140_v41 = vpop.f32.mrf.mxu1  ;;  %v3360_v26 = vpop.f32.mrf.mxu0 }
 0x364   : > { %v3143_v57 = vpop.f32.mrf.mxu1  ;;  %v3363_v43 = vpop.f32.mrf.mxu0 }
 0x365   : > { %v3144_v0 = vadd.f32 %v3143_v57, %v6918_v31  ;;  %v7104_v59 = vadd.f32 %v3363_v43, %v3139_v38 }
 0x366   : > { %v3145_v51 = vpop.f32.mrf.mxu1  ;;  %v3365_v48 = vpop.f32.mrf.mxu0 }
 0x368   : > { %v3148_v11 = vpop.f32.mrf.mxu1  ;;  %v3368_v22 = vpop.f32.mrf.mxu0 }
 0x369   : > { %v3149_v32 = vadd.f32 %v3148_v11, %v6925_v53  ;;  %v7107_v28 = vadd.f32 %v3368_v22, %v3144_v0 }
 0x36a   : > { %v3150_v29 = vpop.f32.mrf.mxu1  ;;  %v3370_v63 = vpop.f32.mrf.mxu0 }
 0x36c   : > { %v3153_v45 = vpop.f32.mrf.mxu1  ;;  %v3373_v55 = vpop.f32.mrf.mxu0 }
 0x36d   : > { %v3154_v20 = vadd.f32 %v3153_v45, %v6932_v23  ;;  %v7110_v58 = vadd.f32 %v3373_v55, %v3149_v32 }
 0x36e   : > { %v3155_v4 = vpop.f32.mrf.mxu1  ;;  %v3375_v31 = vpop.f32.mrf.mxu0 }
 0x370   : > { %v3158_v61 = vpop.f32.mrf.mxu1  ;;  %v3378_v21 = vpop.f32.mrf.mxu0 }
 0x371   : > { %v3159_v33 = vadd.f32 %v3158_v61, %v6939_v52  ;;  %v7113_v15 = vadd.f32 %v3378_v21, %v3154_v20 }
 0x372   : > { %v3160_v54 = vpop.f32.mrf.mxu1  ;;  %v3380_v53 = vpop.f32.mrf.mxu0 }
 0x374   : > { %v3163_v56 = vpop.f32.mrf.mxu1  ;;  %v3383_v5 = vpop.f32.mrf.mxu0 }
 0x375   : > { %v3164_v7 = vadd.f32 %v3163_v56, %v6946_v2  ;;  %v7116_v40 = vadd.f32 %v3383_v5, %v3159_v33 }
 0x376   : > { %v3165_v50 = vpop.f32.mrf.mxu1  ;;  %v3385_v23 = vpop.f32.mrf.mxu0 }
 0x378   : > { %v3168_v24 = vpop.f32.mrf.mxu1  ;;  %v3388_v39 = vpop.f32.mrf.mxu0 }
 0x379   : > { %v3169_v44 = vadd.f32 %v3168_v24, %v6953_v36  ;;  %v7119_v38 = vadd.f32 %v3388_v39, %v3164_v7 }
 0x37a   : > { %v3170_v41 = vpop.f32.mrf.mxu1  ;;  %v3390_v52 = vpop.f32.mrf.mxu0 }
 0x37c   : > { %v3173_v26 = vpop.f32.mrf.mxu1  ;;  %v3393_v57 = vpop.f32.mrf.mxu0 }
 0x37d   : > { %v3174_v43 = vadd.f32 %v3173_v26, %v6960_v42  ;;  %v7122_v0 = vadd.f32 %v3393_v57, %v3169_v44 }
 0x37e   : > { %v3175_v51 = vpop.f32.mrf.mxu1  ;;  %v3395_v2 = vpop.f32.mrf.mxu0 }
 0x380   : > { %v3178_v48 = vpop.f32.mrf.mxu1  ;;  %v3398_v11 = vpop.f32.mrf.mxu0 }
 0x381   : > { %v3179_v22 = vadd.f32 %v3178_v48, %v6969_v62  ;;  %v7125_v32 = vadd.f32 %v3398_v11, %v3174_v43 }
 0x382   : > { %v3180_v29 = vpop.f32.mrf.mxu1  ;;  %v3400_v36 = vpop.f32.mrf.mxu0 }
 0x384   : > { %v3183_v63 = vpop.f32.mrf.mxu1  ;;  %v3403_v45 = vpop.f32.mrf.mxu0 }
 0x385   : > { %v3184_v55 = vadd.f32 %v3183_v63, %v6979_v18  ;;  %v7128_v20 = vadd.f32 %v3403_v45, %v3179_v22 }
 0x386   : > { %v3185_v4 = vpop.f32.mrf.mxu1  ;;  %v3405_v42 = vpop.f32.mrf.mxu0 }
 0x388   : > { %v3188_v31 = vpop.f32.mrf.mxu1  ;;  %v3408_v61 = vpop.f32.mrf.mxu0 }
 0x389   : > { %v3189_v21 = vadd.f32 %v3188_v31, %v6992_v47  ;;  %v7131_v33 = vadd.f32 %v3408_v61, %v3184_v55 }
 0x38a   : > { %v3190_v54 = vpop.f32.mrf.mxu1  ;;  %v3410_v62 = vpop.f32.mrf.mxu0 }
 0x38c   : > { %v3193_v53 = vpop.f32.mrf.mxu1  ;;  %v3413_v56 = vpop.f32.mrf.mxu0 }
 0x38d   : > { %v3194_v5 = vadd.f32 %v3193_v53, %v7001_v49  ;;  %v7134_v7 = vadd.f32 %v3413_v56, %v3189_v21 }
 0x38e   : > { %v3195_v50 = vpop.f32.mrf.mxu1  ;;  %v3415_v18 = vpop.f32.mrf.mxu0 }
 0x390   : > { %v3198_v23 = vpop.f32.mrf.mxu1  ;;  %v3418_v24 = vpop.f32.mrf.mxu0 }
 0x391   : > { %v3199_v39 = vadd.f32 %v3198_v23, %v7009_v46  ;;  %v7137_v44 = vadd.f32 %v3418_v24, %v3194_v5 }
 0x392   : > { %v3200_v41 = vpop.f32.mrf.mxu1  ;;  %v3420_v47 = vpop.f32.mrf.mxu0 }
 0x394   : > { %v3203_v52 = vpop.f32.mrf.mxu1  ;;  %v3423_v26 = vpop.f32.mrf.mxu0 }
 0x395   : > { %v3204_v57 = vadd.f32 %v3203_v52, %v7015_v10  ;;  %v7140_v43 = vadd.f32 %v3423_v26, %v3199_v39 }
 0x396   : > { %v3205_v51 = vpop.f32.mrf.mxu1  ;;  %v3425_v49 = vpop.f32.mrf.mxu0 }
 0x398   : > { %v3208_v2 = vpop.f32.mrf.mxu1  ;;  %v3428_v48 = vpop.f32.mrf.mxu0 }
 0x399   : > { %v3209_v11 = vadd.f32 %v3208_v2, %v7020_v19  ;;  %v7143_v22 = vadd.f32 %v3428_v48, %v3204_v57 }
 0x39a   : > { %v3210_v29 = vpop.f32.mrf.mxu1  ;;  %v3430_v46 = vpop.f32.mrf.mxu0 }
 0x39c   : > { %v3213_v36 = vpop.f32.mrf.mxu1  ;;  %v3433_v63 = vpop.f32.mrf.mxu0 }
 0x39d   : > { %v3214_v45 = vadd.f32 %v3213_v36, %v7025_v34  ;;  %v7146_v55 = vadd.f32 %v3433_v63, %v3209_v11 }
 0x39e   : > { %v3215_v4 = vpop.f32.mrf.mxu1  ;;  %v3435_v10 = vpop.f32.mrf.mxu0 }
 0x3a0   : > { %v3218_v42 = vpop.f32.mrf.mxu1  ;;  %v3438_v31 = vpop.f32.mrf.mxu0 }
 0x3a1   : > { %v3219_v61 = vadd.f32 %v3218_v42, %v7030_v17  ;;  %v7149_v21 = vadd.f32 %v3438_v31, %v3214_v45 }
 0x3a2   : > { %v3220_v54 = vpop.f32.mrf.mxu1  ;;  %v3440_v19 = vpop.f32.mrf.mxu0 }
 0x3a4   : > { %v3223_v62 = vpop.f32.mrf.mxu1  ;;  %v3443_v53 = vpop.f32.mrf.mxu0 }
 0x3a5   : > { %v3224_v56 = vadd.f32 %v3223_v62, %v7035_v9  ;;  %v7152_v5 = vadd.f32 %v3443_v53, %v3219_v61 }
 0x3a6   : > { %v3225_v50 = vpop.f32.mrf.mxu1  ;;  %v3445_v34 = vpop.f32.mrf.mxu0 }
 0x3a8   : > { %v3228_v18 = vpop.f32.mrf.mxu1  ;;  %v3448_v23 = vpop.f32.mrf.mxu0 }
 0x3a9   : > { %v3229_v24 = vadd.f32 %v3228_v18, %v7040_v12  ;;  %v7155_v39 = vadd.f32 %v3448_v23, %v3224_v56 }
 0x3aa   : > { %v3230_v41 = vpop.f32.mrf.mxu1  ;;  %v3450_v17 = vpop.f32.mrf.mxu0 }
 0x3ac   : > { %v3233_v47 = vpop.f32.mrf.mxu1  ;;  %v3453_v52 = vpop.f32.mrf.mxu0 }
 0x3ad   : > { %v3234_v26 = vadd.f32 %v3233_v47, %v7045_v8  ;;  %v7158_v57 = vadd.f32 %v3453_v52, %v3229_v24 }
 0x3ae   : > { %v3235_v51 = vpop.f32.mrf.mxu1  ;;  %v3455_v9 = vpop.f32.mrf.mxu0 }
 0x3b0   : > { %v3238_v49 = vpop.f32.mrf.mxu1  ;;  %v3458_v2 = vpop.f32.mrf.mxu0 }
 0x3b1   : > { %v3239_v48 = vadd.f32 %v3238_v49, %v7050_v3  ;;  %v7161_v11 = vadd.f32 %v3458_v2, %v3234_v26 }
 0x3b2   : > { %v3240_v29 = vpop.f32.mrf.mxu1  ;;  %v3460_v12 = vpop.f32.mrf.mxu0 }
 0x3b4   : > { %v3243_v46 = vpop.f32.mrf.mxu1  ;;  %v3463_v36 = vpop.f32.mrf.mxu0 }
 0x3b5   : > { %v3244_v63 = vadd.f32 %v3243_v46, %v7055_v35  ;;  %v7164_v45 = vadd.f32 %v3463_v36, %v3239_v48 }
 0x3b6   : > { %v3245_v4 = vpop.f32.mrf.mxu1  ;;  %v3465_v8 = vpop.f32.mrf.mxu0 }
 0x3b8   : > { %v3248_v10 = vpop.f32.mrf.mxu1  ;;  %v3468_v42 = vpop.f32.mrf.mxu0 }
 0x3b9   : > { %v3249_v31 = vadd.f32 %v3248_v10, %v7060_v16  ;;  %v7167_v61 = vadd.f32 %v3468_v42, %v3244_v63 }
 0x3ba   : > { %v3250_v54 = vpop.f32.mrf.mxu1  ;;  %v3470_v3 = vpop.f32.mrf.mxu0 }
 0x3bc   : > { %v3253_v19 = vpop.f32.mrf.mxu1  ;;  %v3473_v62 = vpop.f32.mrf.mxu0 }
 0x3bd   : > { %v3254_v53 = vadd.f32 %v3253_v19, %v7065_v13  ;;  %v7170_v56 = vadd.f32 %v3473_v62, %v3249_v31 }
 0x3be   : > { %v3255_v50 = vpop.f32.mrf.mxu1  ;;  %v3475_v35 = vpop.f32.mrf.mxu0 }
 0x3bf   : > { %v3738_v50 = vld [vmem:[%s4453_s15 + $0x8] sm:$0xff] }
 0x3c0   : > { %v3258_v34 = vpop.f32.mrf.mxu1  ;;  %v3478_v18 = vpop.f32.mrf.mxu0 }
 0x3c1   : > { %v3259_v23 = vadd.f32 %v3258_v34, %v7070_v60  ;;  %v7173_v24 = vadd.f32 %v3478_v18, %v3254_v53 }
 0x3c2   : > { %v3260_v41 = vpop.f32.mrf.mxu1  ;;  %v3480_v16 = vpop.f32.mrf.mxu0 }
 0x3c4   : > { %v3263_v17 = vpop.f32.mrf.mxu1  ;;  %v3483_v47 = vpop.f32.mrf.mxu0 }
 0x3c5   : > { %v3264_v52 = vadd.f32 %v3263_v17, %v7075_v30  ;;  %v7176_v26 = vadd.f32 %v3483_v47, %v3259_v23  ;;  %v3740_v47 = vld [vmem:[%s4453_s15 + $0x18] sm:$0xff] }
 0x3c6   : > { %v3265_v51 = vpop.f32.mrf.mxu1  ;;  %v3485_v13 = vpop.f32.mrf.mxu0 }
 0x3c8   : > { %v3268_v9 = vpop.f32.mrf.mxu1  ;;  %v3488_v49 = vpop.f32.mrf.mxu0 }
 0x3c9   : > { %v3269_v2 = vadd.f32 %v3268_v9, %v7081_v6  ;;  %v7179_v48 = vadd.f32 %v3488_v49, %v3264_v52  ;;  %v3739_v9 = vld [vmem:[%s4453_s15 + $0x10] sm:$0xff] }
 0x3ca   : > { %v3270_v29 = vpop.f32.mrf.mxu1  ;;  %v3490_v60 = vpop.f32.mrf.mxu0 }
 0x3cb   : > { %v3742_v60 = vld [vmem:[%s4453_s15 + $0x28] sm:$0xff] }
 0x3cc   : > { %v3273_v12 = vpop.f32.mrf.mxu1  ;;  %v3493_v46 = vpop.f32.mrf.mxu0 }
 0x3cd   : > { %v7182_v36 = vadd.f32 %v3273_v12, %v7087_v1  ;;  %v7184_v63 = vadd.f32 %v3493_v46, %v3269_v2 }
 0x3ce   : > { %v3275_v30 = vpop.f32.mrf.mxu1  ;;  %v3495_v4 = vpop.f32.mrf.mxu0 }
 0x3d0   : > { %v3278_v8 = vpop.f32.mrf.mxu1  ;;  %v7186_v10 = vpop.f32.mrf.mxu0 }
 0x3d1   : > { %v3279_v6 = vadd.f32 %v3278_v8, %v7091_v37  ;;  %v3737_v37 = vld [vmem:[%s4453_s15] sm:$0xff] }
 0x3d2   : > { %v3280_v42 = vpop.f32.mrf.mxu1  ;;  %v3500_v31 = vpop.f32.mrf.mxu0 }
 0x3d4   : > { %v7189_v54 = vpop.f32.mrf.mxu1  ;;  %v3503_v3 = vpop.f32.mrf.mxu0 }
 0x3d5   : > { %v7191_v19 = vadd.f32 %v3503_v3, %v3279_v6 }
 0x3d6   : > { %v3285_v1 = vpop.f32.mrf.mxu1  ;;  %v3505_v62 = vpop.f32.mrf.mxu0 }
 0x3d8   : > { %v4145_v53 = vpop.f32.mrf.mxu1  ;;  %v7194_v35 = vpop.f32.mrf.mxu0 }
 0x3d9   : > { %v3584_v34 = vadd.f32 %v4145_v53, %v7101_v25 }
 0x3da   : > { %v3578_v18 = vpop.f32.mrf.mxu1  ;;  %v3510_v23 = vpop.f32.mrf.mxu0 }
 0x3db   : > { %v3770_v41 = vadd.f32 %v3738_v50, %v3584_v34  ;;  %v3579_v16 = vadd.f32 %v3578_v18, %v7098_v14 }
 0x3dc   : > { %v4148_v17 = vpop.f32.mrf.mxu1 }
 0x3dd   : > { %v3802_v52 = vmax.f32 %v3770_v41, 0.0  ;;  %v3769_v25 = vadd.f32 %v3737_v37, %v3579_v16  ;;  %v3594_v51 = vadd.f32 %v4148_v17, %v7107_v28  ;;  %v3741_v28 = vld [vmem:[%s4453_s15 + $0x20] sm:$0xff] }
 0x3de   : > { %v3588_v13 = vpop.f32.mrf.mxu1 }
 0x3df   : > { %3834 = vst [vmem:[%s7204_s13 + $0x8] sm:$0xff] %v3802_v52  ;;  %v3801_v14 = vmax.f32 %v3769_v25, 0.0  ;;  %v3772_v49 = vadd.f32 %v3740_v47, %v3594_v51  ;;  %v3589_v2 = vadd.f32 %v3588_v13, %v7104_v59  ;;  %v3744_v59 = vld [vmem:[%s4453_s15 + $0x38] sm:$0xff] }
 0x3e0   : > { %v4151_v29 = vpop.f32.mrf.mxu1 }
 0x3e1   : > { %3833 = vst [vmem:[%s7204_s13] sm:$0xff] %v3801_v14  ;;  %v3804_v12 = vmax.f32 %v3772_v49, 0.0  ;;  %v3771_v46 = vadd.f32 %v3739_v9, %v3589_v2  ;;  %v3604_v30 = vadd.f32 %v4151_v29, %v7113_v15  ;;  %v3743_v15 = vld [vmem:[%s4453_s15 + $0x30] sm:$0xff] }
 0x3e2   : > { %v3598_v4 = vpop.f32.mrf.mxu1 }
 0x3e3   : > { %3836 = vst [vmem:[%s7204_s13 + $0x18] sm:$0xff] %v3804_v12  ;;  %v3803_v8 = vmax.f32 %v3771_v46, 0.0  ;;  %v3774_v6 = vadd.f32 %v3742_v60, %v3604_v30  ;;  %v3599_v42 = vadd.f32 %v3598_v4, %v7110_v58  ;;  %v3746_v58 = vld [vmem:[%s4453_s15 + $0x48] sm:$0xff] }
 0x3e4   : > { %v4154_v31 = vpop.f32.mrf.mxu1 }
 0x3e5   : > { %3835 = vst [vmem:[%s7204_s13 + $0x10] sm:$0xff] %v3803_v8  ;;  %v3806_v3 = vmax.f32 %v3774_v6, 0.0  ;;  %v3773_v1 = vadd.f32 %v3741_v28, %v3599_v42  ;;  %v3614_v62 = vadd.f32 %v4154_v31, %v7119_v38  ;;  %v3745_v38 = vld [vmem:[%s4453_s15 + $0x40] sm:$0xff] }
 0x3e6   : > { %v3608_v53 = vpop.f32.mrf.mxu1 }
 0x3e7   : > { %3838 = vst [vmem:[%s7204_s13 + $0x28] sm:$0xff] %v3806_v3  ;;  %v3805_v50 = vmax.f32 %v3773_v1, 0.0  ;;  %v3776_v34 = vadd.f32 %v3744_v59, %v3614_v62  ;;  %v3609_v18 = vadd.f32 %v3608_v53, %v7116_v40  ;;  %v3748_v40 = vld [vmem:[%s4453_s15 + $0x58] sm:$0xff] }
 0x3e8   : > { %v4157_v37 = vpop.f32.mrf.mxu1 }
 0x3e9   : > { %3837 = vst [vmem:[%s7204_s13 + $0x20] sm:$0xff] %v3805_v50  ;;  %v3808_v23 = vmax.f32 %v3776_v34, 0.0  ;;  %v3775_v41 = vadd.f32 %v3743_v15, %v3609_v18  ;;  %v3624_v16 = vadd.f32 %v4157_v37, %v7125_v32  ;;  %v3747_v32 = vld [vmem:[%s4453_s15 + $0x50] sm:$0xff] }
 0x3ea   : > { %v3618_v17 = vpop.f32.mrf.mxu1 }
 0x3eb   : > { %3840 = vst [vmem:[%s7204_s13 + $0x38] sm:$0xff] %v3808_v23  ;;  %v3807_v47 = vmax.f32 %v3775_v41, 0.0  ;;  %v3778_v52 = vadd.f32 %v3746_v58, %v3624_v16  ;;  %v3619_v25 = vadd.f32 %v3618_v17, %v7122_v0  ;;  %v3750_v0 = vld [vmem:[%s4453_s15 + $0x68] sm:$0xff] }
 0x3ec   : > { %v4160_v51 = vpop.f32.mrf.mxu1 }
 0x3ed   : > { %3839 = vst [vmem:[%s7204_s13 + $0x30] sm:$0xff] %v3807_v47  ;;  %v3810_v13 = vmax.f32 %v3778_v52, 0.0  ;;  %v3777_v9 = vadd.f32 %v3745_v38, %v3619_v25  ;;  %v3634_v14 = vadd.f32 %v4160_v51, %v7131_v33  ;;  %v3749_v33 = vld [vmem:[%s4453_s15 + $0x60] sm:$0xff] }
 0x3ee   : > { %v3628_v49 = vpop.f32.mrf.mxu1 }
 0x3ef   : > { %3842 = vst [vmem:[%s7204_s13 + $0x48] sm:$0xff] %v3810_v13  ;;  %v3809_v2 = vmax.f32 %v3777_v9, 0.0  ;;  %v3780_v29 = vadd.f32 %v3748_v40, %v3634_v14  ;;  %v3629_v60 = vadd.f32 %v3628_v49, %v7128_v20  ;;  %v3752_v20 = vld [vmem:[%s4453_s15 + $0x78] sm:$0xff] }
 0x3f0   : > { %v4163_v12 = vpop.f32.mrf.mxu1 }
 0x3f1   : > { %3841 = vst [vmem:[%s7204_s13 + $0x40] sm:$0xff] %v3809_v2  ;;  %v3812_v46 = vmax.f32 %v3780_v29, 0.0  ;;  %v3779_v30 = vadd.f32 %v3747_v32, %v3629_v60  ;;  %v3644_v4 = vadd.f32 %v4163_v12, %v7137_v44  ;;  %v3751_v44 = vld [vmem:[%s4453_s15 + $0x70] sm:$0xff] }
 0x3f2   : > { %v3638_v28 = vpop.f32.mrf.mxu1 }
 0x3f3   : > { %3844 = vst [vmem:[%s7204_s13 + $0x58] sm:$0xff] %v3812_v46  ;;  %v3811_v8 = vmax.f32 %v3779_v30, 0.0  ;;  %v3782_v6 = vadd.f32 %v3750_v0, %v3644_v4  ;;  %v3639_v42 = vadd.f32 %v3638_v28, %v7134_v7  ;;  %v3754_v7 = vld [vmem:[%s4453_s15 + $0x88] sm:$0xff] }
 0x3f4   : > { %v4166_v31 = vpop.f32.mrf.mxu1 }
 0x3f5   : > { %3843 = vst [vmem:[%s7204_s13 + $0x50] sm:$0xff] %v3811_v8  ;;  %v3814_v59 = vmax.f32 %v3782_v6, 0.0  ;;  %v3781_v3 = vadd.f32 %v3749_v33, %v3639_v42  ;;  %v3654_v1 = vadd.f32 %v4166_v31, %v7143_v22  ;;  %v3753_v22 = vld [vmem:[%s4453_s15 + $0x80] sm:$0xff] }
 0x3f6   : > { %v3648_v62 = vpop.f32.mrf.mxu1 }
 0x3f7   : > { %3846 = vst [vmem:[%s7204_s13 + $0x68] sm:$0xff] %v3814_v59  ;;  %v3813_v53 = vmax.f32 %v3781_v3, 0.0  ;;  %v3784_v15 = vadd.f32 %v3752_v20, %v3654_v1  ;;  %v3649_v50 = vadd.f32 %v3648_v62, %v7140_v43  ;;  %v3756_v43 = vld [vmem:[%s4453_s15 + $0x98] sm:$0xff] }
 0x3f8   : > { %v4169_v34 = vpop.f32.mrf.mxu1 }
 0x3f9   : > { %3845 = vst [vmem:[%s7204_s13 + $0x60] sm:$0xff] %v3813_v53  ;;  %v3816_v18 = vmax.f32 %v3784_v15, 0.0  ;;  %v3783_v37 = vadd.f32 %v3751_v44, %v3649_v50  ;;  %v3664_v58 = vadd.f32 %v4169_v34, %v7149_v21  ;;  %v3755_v21 = vld [vmem:[%s4453_s15 + $0x90] sm:$0xff] }
 0x3fa   : > { %v3658_v23 = vpop.f32.mrf.mxu1 }
 0x3fb   : > { %3848 = vst [vmem:[%s7204_s13 + $0x78] sm:$0xff] %v3816_v18  ;;  %v3815_v41 = vmax.f32 %v3783_v37, 0.0  ;;  %v3786_v16 = vadd.f32 %v3754_v7, %v3664_v58  ;;  %v3659_v17 = vadd.f32 %v3658_v23, %v7146_v55  ;;  %v3758_v55 = vld [vmem:[%s4453_s15 + $0xa8] sm:$0xff]  ;;  %v3499_v37 = vadd.f32 %v7186_v10, %v7182_v36  ;;  %v3765_v36 = vld [vmem:[%s4453_s15 + $0xe0] sm:$0xff] }
 0x3fc   : > { %v4172_v38 = vpop.f32.mrf.mxu1 }
 0x3fd   : > { %3847 = vst [vmem:[%s7204_s13 + $0x70] sm:$0xff] %v3815_v41  ;;  %v3818_v47 = vmax.f32 %v3786_v16, 0.0  ;;  %v3785_v52 = vadd.f32 %v3753_v22, %v3659_v17  ;;  %v3674_v25 = vadd.f32 %v4172_v38, %v7155_v39  ;;  %v3757_v39 = vld [vmem:[%s4453_s15 + $0xa0] sm:$0xff]  ;;  %v3766_v41 = vld [vmem:[%s4453_s15 + $0xe8] sm:$0xff]  ;;  %v3284_v16 = vadd.f32 %v7189_v54, %v7095_v27 }
 0x3fe   : > { %v3668_v51 = vpop.f32.mrf.mxu1 }
 0x3ff   : > { %3850 = vst [vmem:[%s7204_s13 + $0x88] sm:$0xff] %v3818_v47  ;;  %v3817_v40 = vmax.f32 %v3785_v52, 0.0  ;;  %v3788_v13 = vadd.f32 %v3756_v43, %v3674_v25  ;;  %v3669_v9 = vadd.f32 %v3668_v51, %v7152_v5  ;;  %v3760_v5 = vld [vmem:[%s4453_s15 + $0xb8] sm:$0xff]  ;;  %v3509_v10 = vadd.f32 %v7194_v35, %v3284_v16 }
 0x400   : > { %v4175_v14 = vpop.f32.mrf.mxu1  ;;  %v3768_v51 = vld [vmem:[%s4453_s15 + $0xf8] sm:$0xff] }
 0x401   : > { %3849 = vst [vmem:[%s7204_s13 + $0x80] sm:$0xff] %v3817_v40  ;;  %v3820_v49 = vmax.f32 %v3788_v13, 0.0  ;;  %v3787_v32 = vadd.f32 %v3755_v21, %v3669_v9  ;;  %v3684_v2 = vadd.f32 %v4175_v14, %v7161_v11  ;;  %v3759_v11 = vld [vmem:[%s4453_s15 + $0xb0] sm:$0xff] }
 0x402   : > { %v3678_v29 = vpop.f32.mrf.mxu1  ;;  %v3767_v13 = vld [vmem:[%s4453_s15 + $0xf0] sm:$0xff] }
 0x403   : > { %3852 = vst [vmem:[%s7204_s13 + $0x98] sm:$0xff] %v3820_v49  ;;  %v3819_v60 = vmax.f32 %v3787_v32, 0.0  ;;  %v3790_v12 = vadd.f32 %v3758_v55, %v3684_v2  ;;  %v3679_v0 = vadd.f32 %v3678_v29, %v7158_v57  ;;  %v3762_v57 = vld [vmem:[%s4453_s15 + $0xc8] sm:$0xff] }
 0x404   : > { %v4178_v46 = vpop.f32.mrf.mxu1 }
 0x405   : > { %3851 = vst [vmem:[%s7204_s13 + $0x90] sm:$0xff] %v3819_v60  ;;  %v3822_v30 = vmax.f32 %v3790_v12, 0.0  ;;  %v3789_v4 = vadd.f32 %v3757_v39, %v3679_v0  ;;  %v3694_v28 = vadd.f32 %v4178_v46, %v7167_v61  ;;  %v3761_v61 = vld [vmem:[%s4453_s15 + $0xc0] sm:$0xff] }
 0x406   : > { %v3688_v33 = vpop.f32.mrf.mxu1 }
 0x407   : > { %3854 = vst [vmem:[%s7204_s13 + $0xa8] sm:$0xff] %v3822_v30  ;;  %v3821_v8 = vmax.f32 %v3789_v4, 0.0  ;;  %v3792_v6 = vadd.f32 %v3760_v5, %v3694_v28  ;;  %v3689_v42 = vadd.f32 %v3688_v33, %v7164_v45  ;;  %v3764_v45 = vld [vmem:[%s4453_s15 + $0xd8] sm:$0xff] }
 0x408   : > { %v4181_v31 = vpop.f32.mrf.mxu1 }
 0x409   : > { %3853 = vst [vmem:[%s7204_s13 + $0xa0] sm:$0xff] %v3821_v8  ;;  %v3824_v20 = vmax.f32 %v3792_v6, 0.0  ;;  %v3791_v59 = vadd.f32 %v3759_v11, %v3689_v42  ;;  %v3704_v3 = vadd.f32 %v4181_v31, %v7173_v24  ;;  %v3763_v24 = vld [vmem:[%s4453_s15 + $0xd0] sm:$0xff] }
 0x40a   : > { %v3698_v1 = vpop.f32.mrf.mxu1 }
 0x40b   : > { %3856 = vst [vmem:[%s7204_s13 + $0xb8] sm:$0xff] %v3824_v20  ;;  %v3823_v62 = vmax.f32 %v3791_v59, 0.0  ;;  %v3794_v44 = vadd.f32 %v3762_v57, %v3704_v3  ;;  %v3699_v53 = vadd.f32 %v3698_v1, %v7170_v56 }
 0x40c   : > { %v4184_v15 = vpop.f32.mrf.mxu1 }
 0x40d   : > { %3855 = vst [vmem:[%s7204_s13 + $0xb0] sm:$0xff] %v3823_v62  ;;  %v3826_v50 = vmax.f32 %v3794_v44, 0.0  ;;  %v3793_v34 = vadd.f32 %v3761_v61, %v3699_v53  ;;  %v3714_v7 = vadd.f32 %v4184_v15, %v7179_v48 }
 0x40e   : > { %v3708_v18 = vpop.f32.mrf.mxu1 }
 0x40f   : > { %3858 = vst [vmem:[%s7204_s13 + $0xc8] sm:$0xff] %v3826_v50  ;;  %v3825_v58 = vmax.f32 %v3793_v34, 0.0  ;;  %v3796_v23 = vadd.f32 %v3764_v45, %v3714_v7  ;;  %v3709_v56 = vadd.f32 %v3708_v18, %v7176_v26 }
 0x410   : > { %v4187_v22 = vpop.f32.mrf.mxu1 }
 0x411   : > { %3857 = vst [vmem:[%s7204_s13 + $0xc0] sm:$0xff] %v3825_v58  ;;  %v3828_v48 = vmax.f32 %v3796_v23, 0.0  ;;  %v3795_v17 = vadd.f32 %v3763_v24, %v3709_v56  ;;  %v3724_v38 = vadd.f32 %v4187_v22, %v3499_v37 }
 0x412   : > { %v3718_v43 = vpop.f32.mrf.mxu1 }
 0x413   : > { %3860 = vst [vmem:[%s7204_s13 + $0xd8] sm:$0xff] %v3828_v48  ;;  %v3827_v26 = vmax.f32 %v3795_v17, 0.0  ;;  %v3798_v47 = vadd.f32 %v3766_v41, %v3724_v38  ;;  %v3719_v52 = vadd.f32 %v3718_v43, %v7184_v63 }
 0x414   : > { %v4190_v25 = vpop.f32.mrf.mxu1 }
 0x415   : > { %3859 = vst [vmem:[%s7204_s13 + $0xd0] sm:$0xff] %v3827_v26  ;;  %v3830_v27 = vmax.f32 %v3798_v47, 0.0  ;;  %v3797_v54 = vadd.f32 %v3765_v36, %v3719_v52  ;;  %v3734_v21 = vadd.f32 %v4190_v25, %v3509_v10 }
 0x416   : > { %v3728_v40 = vpop.f32.mrf.mxu1 }
 0x417   : > { %3862 = vst [vmem:[%s7204_s13 + $0xe8] sm:$0xff] %v3830_v27  ;;  %v3829_v9 = vmax.f32 %v3797_v54, 0.0  ;;  %v3800_v14 = vadd.f32 %v3768_v51, %v3734_v21  ;;  %v3729_v35 = vadd.f32 %v3728_v40, %v7191_v19 }
 0x419   : > { %3861 = vst [vmem:[%s7204_s13 + $0xe0] sm:$0xff] %v3829_v9  ;;  %v3832_v55 = vmax.f32 %v3800_v14, 0.0  ;;  %v3799_v49 = vadd.f32 %v3767_v13, %v3729_v35 }
 0x41b   : > { %3864 = vst [vmem:[%s7204_s13 + $0xf8] sm:$0xff] %v3832_v55  ;;  %v3831_v63 = vmax.f32 %v3799_v49, 0.0 }
 0x41d   : > { %3863 = vst [vmem:[%s7204_s13 + $0xf0] sm:$0xff] %v3831_v63 }
 0x41e PF: > { %s15_s18 = sadd.s32 1, %s4215_s18  }
 0x41f   : > { %p12_p4 = scmp.ge.s32.totalorder %s15_s18, 4  }
 0x421   :  { %14 = sbr.rel (!%p12_p4) target bundleno = 1 (0x1), region = 72 }

</bundles_post_ra>
